<compile_context>
chip_gen: v5e
topology: v5e:2x2
jax: 0.10.0
libtpu: 0.0.40
codegen_flags: <defaults>
</compile_context>

<pallas_src>
import functools

import jax
import jax.numpy as jnp
from jax.experimental import pallas as pl
from jax.experimental.pallas import tpu as pltpu

_MASK_VALUE = -1e30   # finite "-inf": keeps the online softmax NaN-free


# ----------------------------- small helpers -----------------------------

def _vmem_limit_bytes():
    """Per-generation scoped-VMEM request (headroom on v7x's 64 MiB per TC)."""
    try:
        kind = jax.devices()[0].device_kind.lower()
    except Exception:
        return None
    if "v7" in kind:
        return 48 * 1024 * 1024          # 64 MiB physical per TC on v7x
    if any(g in kind for g in ("v4", "v5", "v6")):
        return 96 * 1024 * 1024          # 128 MiB physical
    return None                          # unknown chip: keep compiler default


def _compiler_params(dimension_semantics):
    kwargs = dict(dimension_semantics=dimension_semantics)
    limit = _vmem_limit_bytes()
    if limit is not None:
        kwargs["vmem_limit_bytes"] = limit
    return pltpu.CompilerParams(**kwargs)


def _pick_tile(n, cap):
    """Largest divisor of n that is <= cap."""
    t = min(n, cap)
    while n % t:
        t -= 1
    return t


def _layernorm(v, g, b, eps=1e-5):
    # PyTorch nn.LayerNorm: biased variance over last dim, eps=1e-5.
    mu = jnp.mean(v, axis=-1, keepdims=True)
    var = jnp.mean((v - mu) ** 2, axis=-1, keepdims=True)
    return (v - mu) * jax.lax.rsqrt(var + eps) * g + b


# ----------------------------- Pallas kernels -----------------------------

def _attention(xn_b, wq_ref, wk_ref, wv_ref, *, num_heads, key_block):
    """Multi-head causal attention, heads summed. 1/sqrt(K) folded into wq."""
    T = xn_b.shape[0]
    D = wv_ref.shape[2]
    n_kb = T // key_block
    row_ids = jax.lax.broadcasted_iota(jnp.int32, (T, key_block), 0)
    col_ids = jax.lax.broadcasted_iota(jnp.int32, (T, key_block), 1)

    def head_body(h, attn):
        # Per-head projections straight from the (H, D, *) weight slabs:
        # no fused (T, H*K) activations, no sub-128-lane activation slices.
        q = jnp.dot(xn_b, wq_ref[h],
                    preferred_element_type=jnp.float32).astype(jnp.bfloat16)
        k = jnp.dot(xn_b, wk_ref[h], preferred_element_type=jnp.float32)
        v = jnp.dot(xn_b, wv_ref[h], preferred_element_type=jnp.float32)

        m = jnp.full((T, 1), -jnp.inf, jnp.float32)
        l = jnp.zeros((T, 1), jnp.float32)
        acc = jnp.zeros((T, D), jnp.float32)
        # Flash-style key tiling + online softmax: scores bounded to
        # (T, key_block); f32 row slices at multiples of 8 are clean views.
        for kb in range(n_kb):
            sl = slice(kb * key_block, (kb + 1) * key_block)
            k_blk = k[sl].astype(jnp.bfloat16)           # (BK, K)
            v_blk = v[sl].astype(jnp.bfloat16)           # (BK, D)
            s = jax.lax.dot_general(q, k_blk, (((1,), (1,)), ((), ())),
                                    preferred_element_type=jnp.float32)
            ok = (col_ids + kb * key_block) <= row_ids   # causal, this tile
            s = jnp.where(ok, s, _MASK_VALUE)
            m_new = jnp.maximum(m, jnp.max(s, axis=-1, keepdims=True))
            alpha = jnp.exp(m - m_new)
            p = jnp.exp(s - m_new)
            l = alpha * l + jnp.sum(p, axis=-1, keepdims=True)
            acc = alpha * acc + jnp.dot(p.astype(jnp.bfloat16), v_blk,
                                        preferred_element_type=jnp.float32)
            m = m_new
        return attn + acc * pl.reciprocal(l, approx=True)

    return jax.lax.fori_loop(0, num_heads, head_body,
                             jnp.zeros((T, D), jnp.float32),
                             unroll=(num_heads <= 8))


def fused_blocks_kernel(x_ref, g1_ref, b1_ref, wq_ref, wk_ref, wv_ref,
                        g2_ref, b2_ref, w1_ref, c1_ref, w2_ref, c2_ref,
                        gf_ref, bf_ref, xn_out_ref, xres_ref,
                        *, num_heads, key_block, ffn_chunk):
    layer = pl.program_id(1)

    @pl.when(layer == 0)
    def _():
        xres_ref[...] = x_ref[0]           # seed residual stream (embeddings)

    x = xres_ref[...]                      # (T, D) f32 residual stream
    T, D = x.shape

    # --- LN1 + multi-head causal attention (heads summed) + residual ---
    xn_b = _layernorm(x, g1_ref[0], b1_ref[0]).astype(jnp.bfloat16)
    x = x + _attention(xn_b, wq_ref, wk_ref, wv_ref,
                       num_heads=num_heads, key_block=key_block)

    # --- LN2 + FeedForward (hidden dim streamed in chunks) + residual ---
    xn2_b = _layernorm(x, g2_ref[0], b2_ref[0]).astype(jnp.bfloat16)
    F = w1_ref.shape[1]
    c1 = c1_ref[0]
    ff = jnp.zeros((T, D), jnp.float32)
    for lo in range(0, F, ffn_chunk):      # static chunks, lane-aligned slices
        hi = min(lo + ffn_chunk, F)
        h1 = jnp.dot(xn2_b, w1_ref[:, lo:hi],
                     preferred_element_type=jnp.float32) + c1[lo:hi]
        h1 = jnp.maximum(h1, 0.0)
        ff = ff + jnp.dot(h1.astype(jnp.bfloat16), w2_ref[lo:hi, :],
                          preferred_element_type=jnp.float32)
    x = x + ff + c2_ref[0]

    xres_ref[...] = x                      # carry residual to next layer

    # --- ln_f fused into the last layer's epilogue (bf16 rows for lm_head) ---
    @pl.when(layer == pl.num_programs(1) - 1)
    def _():
        xn_out_ref[0] = _layernorm(x, gf_ref[0], bf_ref[0]).astype(jnp.bfloat16)


def lm_head_kernel(xn_ref, w_ref, b_ref, o_ref):
    # Pure matmul + bias over pre-normalized bf16 rows; lane-dense output tile.
    o_ref[...] = (jnp.dot(xn_ref[...], w_ref[...],
                          preferred_element_type=jnp.float32) + b_ref[0])


# ----------------------------- wrappers -----------------------------

def run_blocks(x, kp, *, key_block=None, ffn_chunk=256):
    """All transformer layers + ln_f in one pallas_call.  Returns bf16 (B,T,D)."""
    B, T, D = x.shape
    L, H = kp['wq'].shape[:2]
    bk = key_block or min(T, 256)
    assert T % bk == 0, "key_block must divide T"

    kern = functools.partial(fused_blocks_kernel, num_heads=H,
                             key_block=bk, ffn_chunk=ffn_chunk)

    def lspec(shape):   # layer-stacked parameter: leading layer dim squeezed
        nd = len(shape)
        return pl.BlockSpec((None,) + shape[1:],
                            lambda b, l, _nd=nd: (l,) + (0,) * (_nd - 1))

    def cspec(shape):   # grid-constant parameter (final LayerNorm)
        nd = len(shape)
        return pl.BlockSpec(shape, lambda b, l, _nd=nd: (0,) * _nd)

    ins = (x, kp['g1'], kp['b1'], kp['wq'], kp['wk'], kp['wv'],
           kp['g2'], kp['b2'], kp['w1'], kp['c1'], kp['w2'], kp['c2'],
           kp['gf'], kp['bf'])
    in_specs = [pl.BlockSpec((1, T, D), lambda b, l: (b, 0, 0))]
    in_specs += [lspec(a.shape) for a in ins[1:12]]
    in_specs += [cspec(a.shape) for a in ins[12:]]

    return pl.pallas_call(
        kern,
        out_shape=jax.ShapeDtypeStruct((B, T, D), jnp.bfloat16),
        grid=(B, L),
        in_specs=in_specs,
        out_specs=pl.BlockSpec((1, T, D), lambda b, l: (b, 0, 0)),
        scratch_shapes=[pltpu.VMEM((T, D), jnp.float32)],
        compiler_params=_compiler_params(("parallel", "arbitrary")),
    )(*ins)


def run_lm_head(xn, kp, *, row_tile=256, vocab_tile=1024):
    """logits = xn @ W + b over (row, vocab) tiles; xn is pre-normalized bf16."""
    B, T, D = xn.shape
    V = kp['lm_w'].shape[1]
    rows = B * T
    TR = _pick_tile(rows, row_tile)
    TV = _pick_tile(V, vocab_tile)
    xr = xn.reshape(rows, D)
    out = pl.pallas_call(
        lm_head_kernel,
        out_shape=jax.ShapeDtypeStruct((rows, V), jnp.float32),
        grid=(rows // TR, V // TV),
        in_specs=[
            pl.BlockSpec((TR, D), lambda r, v: (r, 0)),
            pl.BlockSpec((D, TV), lambda r, v: (0, v)),
            pl.BlockSpec((1, TV), lambda r, v: (0, v)),
        ],
        out_specs=pl.BlockSpec((TR, TV), lambda r, v: (r, v)),
        compiler_params=_compiler_params(("parallel", "parallel")),
    )(xr, kp['lm_w'], kp['lm_b'])
    return out.reshape(B, T, V)


def transformer_lm_forward(token_ids, kp, *, key_block=None, ffn_chunk=256,
                           row_tile=256, vocab_tile=1024):
    """Equivalent of TransformerLM.forward(token_ids, targets=None) -> logits."""
    T = token_ids.shape[1]
    x = jnp.take(kp['tok_emb'], token_ids, axis=0) + kp['pos_emb'][:T]
    xn = run_blocks(x, kp, key_block=key_block, ffn_chunk=ffn_chunk)
    return run_lm_head(xn, kp, row_tile=row_tile, vocab_tile=vocab_tile)


# ----------------------------- parameter init / prep -----------------------------

def init_params(key, V, T, D, H, n_layers):
    """PyTorch-layout parameters (per-head weight stacks), f32."""
    K = D // H

    def nrm(k, shape):
        return 0.02 * jax.random.normal(k, shape, dtype=jnp.float32)

    keys = iter(jax.random.split(key, 3 + 5 * n_layers))
    params = {
        'tok_emb': nrm(next(keys), (V, D)),
        'pos_emb': nrm(next(keys), (T, D)),
        'gf': jnp.ones((1, D), jnp.float32),
        'bf': jnp.zeros((1, D), jnp.float32),
        'lm_w': nrm(next(keys), (D, V)),           # lm_head weight, transposed
        'lm_b': jnp.zeros((1, V), jnp.float32),
        'layers': [],
    }
    for _ in range(n_layers):
        params['layers'].append({
            'g1': jnp.ones((1, D), jnp.float32),
            'b1': jnp.zeros((1, D), jnp.float32),
            'wq': nrm(next(keys), (H, D, K)),
            'wk': nrm(next(keys), (H, D, K)),
            'wv': nrm(next(keys), (H, D, D)),      # value projects to full D
            'g2': jnp.ones((1, D), jnp.float32),
            'b2': jnp.zeros((1, D), jnp.float32),
            'w1': nrm(next(keys), (D, 4 * D)),
            'c1': jnp.zeros((1, 4 * D), jnp.float32),
            'w2': nrm(next(keys), (4 * D, D)),
            'c2': jnp.zeros((1, D), jnp.float32),
        })
    return params


def prepare_params(params):
    """Kernel-ready params: layer-stacked bf16 weights, 1/sqrt(K) folded into Wq."""
    bf16 = jnp.bfloat16
    layers = params['layers']
    H, D, K = layers[0]['wq'].shape
    scale = 1.0 / (float(K) ** 0.5)

    def stack(name):
        return jnp.stack([lp[name] for lp in layers], axis=0)

    return {
        'tok_emb': params['tok_emb'],
        'pos_emb': params['pos_emb'],
        'gf': params['gf'], 'bf': params['bf'],
        'lm_w': params['lm_w'].astype(bf16),
        'lm_b': params['lm_b'],
        'g1': stack('g1'), 'b1': stack('b1'),
        'wq': (stack('wq') * scale).astype(bf16),   # (L, H, D, K), pre-scaled
        'wk': stack('wk').astype(bf16),             # (L, H, D, K)
        'wv': stack('wv').astype(bf16),             # (L, H, D, D)
        'g2': stack('g2'), 'b2': stack('b2'),
        'w1': stack('w1').astype(bf16), 'c1': stack('c1'),
        'w2': stack('w2').astype(bf16), 'c2': stack('c2'),
    }


# ----------------------------- pure-JAX reference -----------------------------

def forward_ref(token_ids, params):
    T = token_ids.shape[1]
    x = jnp.take(params['tok_emb'], token_ids, axis=0) + params['pos_emb'][:T]
    causal = jnp.tril(jnp.ones((T, T), bool))
    for lp in params['layers']:
        xn = _layernorm(x, lp['g1'][0], lp['b1'][0])
        H, _, K = lp['wq'].shape
        attn = jnp.zeros_like(x)
        for h in range(H):
            q = xn @ lp['wq'][h]
            k = xn @ lp['wk'][h]
            v = xn @ lp['wv'][h]
            s = jnp.einsum('btk,bsk->bts', q, k)
            s = jnp.where(causal, s * (1.0 / jnp.sqrt(jnp.float32(K))), -jnp.inf)
            p = jax.nn.softmax(s, axis=-1)
            attn = attn + jnp.einsum('bts,bsd->btd', p, v)
        x = x + attn
        xn2 = _layernorm(x, lp['g2'][0], lp['b2'][0])
        ff = jnp.maximum(xn2 @ lp['w1'] + lp['c1'][0], 0.0) @ lp['w2'] + lp['c2'][0]
        x = x + ff
    xn = _layernorm(x, params['gf'][0], params['bf'][0])
    return xn @ params['lm_w'] + params['lm_b'][0]


# ----------------------------- main -----------------------------

if __name__ == "__main__":
    # Lane-aligned small shapes: D, V multiples of 128; T multiple of 8.
    B, T, D, H, V, n_layers = 2, 16, 128, 4, 256, 2     # head_size K = 32
    key = jax.random.PRNGKey(0)
    pk, dk = jax.random.split(key)
    params = init_params(pk, V, T, D, H, n_layers)
    kparams = prepare_params(params)
    token_ids = jax.random.randint(dk, (B, T), 0, V, dtype=jnp.int32)

    # key_block=8 / ffn_chunk=256 so the online-softmax and FFN-chunk paths are
    # exercised (2 key blocks, 2 hidden chunks) even at these toy shapes.
    fwd = jax.jit(functools.partial(transformer_lm_forward,
                                    key_block=8, ffn_chunk=256))
    logits = jax.block_until_ready(fwd(token_ids, kparams))

    ref = forward_ref(token_ids, params)
    assert logits.shape == (B, T, V)
    assert bool(jnp.all(jnp.isfinite(logits)))
    # bf16 MXU operands + approx reciprocal -> slightly looser tolerance.
    assert bool(jnp.allclose(logits, ref, atol=3e-2, rtol=5e-2))
    print("KERNEL_OK")
</pallas_src>

<mosaic_0001>
module attributes {stable_mosaic.version = 11 : i64} {
  func.func @lm_head_kernel(%arg0: i32, %arg1: i32, %arg2: memref<32x128xbf16, #tpu.memory_space<vmem>>, %arg3: memref<128x256xbf16, #tpu.memory_space<vmem>>, %arg4: memref<1x256xf32, #tpu.memory_space<vmem>>, %arg5: memref<32x256xf32, #tpu.memory_space<vmem>>) attributes {dimension_semantics = [#tpu.dimension_semantics<parallel>, #tpu.dimension_semantics<parallel>], iteration_bounds = array<i64: 1, 1>, scalar_prefetch = 0 : i64, scratch_operands = 0 : i64, tpu.core_type = #tpu.core_type<tc>, window_params = [{transform_indices = @transform_0, window_bounds = array<i64: 32, 128>}, {transform_indices = @transform_1, window_bounds = array<i64: 128, 256>}, {transform_indices = @transform_2, window_bounds = array<i64: 1, 256>}, {transform_indices = @transform_3, window_bounds = array<i64: 32, 256>}]} {
    %c0 = arith.constant 0 : index
    %c0_0 = arith.constant 0 : index
    %0 = vector.load %arg2[%c0, %c0_0] : memref<32x128xbf16, #tpu.memory_space<vmem>>, vector<32x128xbf16>
    %c0_1 = arith.constant 0 : index
    %c0_2 = arith.constant 0 : index
    %1 = vector.load %arg3[%c0_1, %c0_2] : memref<128x256xbf16, #tpu.memory_space<vmem>>, vector<128x256xbf16>
    %cst = arith.constant dense<0.000000e+00> : vector<32x256xf32>
    %2 = tpu.matmul %0, %1, %cst {dimension_numbers = #tpu.dot_dimension_numbers<[1], [0], [0], [1], [0, 0, 1, 1], [], []>} : vector<32x128xbf16>, vector<128x256xbf16>, vector<32x256xf32> -> vector<32x256xf32>
    %c0_3 = arith.constant 0 : index
    %c0_4 = arith.constant 0 : index
    %3 = vector.load %arg4[%c0_3, %c0_4] : memref<1x256xf32, #tpu.memory_space<vmem>>, vector<1x256xf32>
    %4 = vector.shape_cast %3 : vector<1x256xf32> to vector<256xf32>
    %5 = vector.shape_cast %4 : vector<256xf32> to vector<1x256xf32>
    %6 = vector.broadcast %5 : vector<1x256xf32> to vector<32x256xf32>
    %7 = arith.addf %2, %6 : vector<32x256xf32>
    %c0_5 = arith.constant 0 : index
    %c0_6 = arith.constant 0 : index
    %8 = vector.load %arg5[%c0_5, %c0_6] : memref<32x256xf32, #tpu.memory_space<vmem>>, vector<32x256xf32>
    tpu.vector_store %arg5[%c0_5, %c0_6], %7 {strides = array<i32>} : memref<32x256xf32, #tpu.memory_space<vmem>>, vector<32x256xf32>,
    return
  }
  func.func @transform_0(%arg0: i32, %arg1: i32) -> (i32, i32) {
    %c0_i32 = arith.constant 0 : i32
    %c0_i32_0 = arith.constant 0 : i32
    return %arg0, %c0_i32 : i32, i32
  }
  func.func @transform_1(%arg0: i32, %arg1: i32) -> (i32, i32) {
    %c0_i32 = arith.constant 0 : i32
    %c0_i32_0 = arith.constant 0 : i32
    return %c0_i32, %arg1 : i32, i32
  }
  func.func @transform_2(%arg0: i32, %arg1: i32) -> (i32, i32) {
    %c0_i32 = arith.constant 0 : i32
    %c0_i32_0 = arith.constant 0 : i32
    return %c0_i32, %arg1 : i32, i32
  }
  func.func @transform_3(%arg0: i32, %arg1: i32) -> (i32, i32) {
    %c0_i32 = arith.constant 0 : i32
    return %arg0, %arg1 : i32, i32
  }
}

module attributes {stable_mosaic.version = 11 : i64} {
  func.func @fused_blocks_kernel(%arg0: i32, %arg1: i32, %arg2: memref<1x16x128xf32, #tpu.memory_space<vmem>>, %arg3: memref<1x1x128xf32, #tpu.memory_space<vmem>>, %arg4: memref<1x1x128xf32, #tpu.memory_space<vmem>>, %arg5: memref<1x4x128x32xbf16, #tpu.memory_space<vmem>>, %arg6: memref<1x4x128x32xbf16, #tpu.memory_space<vmem>>, %arg7: memref<1x4x128x128xbf16, #tpu.memory_space<vmem>>, %arg8: memref<1x1x128xf32, #tpu.memory_space<vmem>>, %arg9: memref<1x1x128xf32, #tpu.memory_space<vmem>>, %arg10: memref<1x128x512xbf16, #tpu.memory_space<vmem>>, %arg11: memref<1x1x512xf32, #tpu.memory_space<vmem>>, %arg12: memref<1x512x128xbf16, #tpu.memory_space<vmem>>, %arg13: memref<1x1x128xf32, #tpu.memory_space<vmem>>, %arg14: memref<1x128xf32, #tpu.memory_space<vmem>>, %arg15: memref<1x128xf32, #tpu.memory_space<vmem>>, %arg16: memref<1x16x128xbf16, #tpu.memory_space<vmem>>, %arg17: memref<16x128xf32, #tpu.memory_space<vmem>>) attributes {dimension_semantics = [#tpu.dimension_semantics<parallel>, #tpu.dimension_semantics<arbitrary>], iteration_bounds = array<i64: 2, 2>, scalar_prefetch = 0 : i64, scratch_operands = 1 : i64, tpu.core_type = #tpu.core_type<tc>, window_params = [{transform_indices = @transform_0, window_bounds = array<i64: 1, 16, 128>}, {transform_indices = @transform_1, window_bounds = array<i64: 1, 1, 128>}, {transform_indices = @transform_2, window_bounds = array<i64: 1, 1, 128>}, {transform_indices = @transform_3, window_bounds = array<i64: 1, 4, 128, 32>}, {transform_indices = @transform_4, window_bounds = array<i64: 1, 4, 128, 32>}, {transform_indices = @transform_5, window_bounds = array<i64: 1, 4, 128, 128>}, {transform_indices = @transform_6, window_bounds = array<i64: 1, 1, 128>}, {transform_indices = @transform_7, window_bounds = array<i64: 1, 1, 128>}, {transform_indices = @transform_8, window_bounds = array<i64: 1, 128, 512>}, {transform_indices = @transform_9, window_bounds = array<i64: 1, 1, 512>}, {transform_indices = @transform_10, window_bounds = array<i64: 1, 512, 128>}, {transform_indices = @transform_11, window_bounds = array<i64: 1, 1, 128>}, {pipeline_mode = #tpu.pipeline_mode<synchronous>, transform_indices = @transform_12, window_bounds = array<i64: 1, 128>}, {pipeline_mode = #tpu.pipeline_mode<synchronous>, transform_indices = @transform_13, window_bounds = array<i64: 1, 128>}, {transform_indices = @transform_14, window_bounds = array<i64: 1, 16, 128>}]} {
    %c0_i32 = arith.constant 0 : i32
    %0 = arith.cmpi eq, %arg1, %c0_i32 : i32
    %1 = arith.extui %0 : i1 to i32
    %c0_i32_0 = arith.constant 0 : i32
    %2 = arith.cmpi ne, %1, %c0_i32_0 : i32
    scf.if %2 {
      %c0_160 = arith.constant 0 : index
      %c0_161 = arith.constant 0 : index
      %c0_162 = arith.constant 0 : index
      %403 = vector.load %arg2[%c0_160, %c0_161, %c0_162] : memref<1x16x128xf32, #tpu.memory_space<vmem>>, vector<1x16x128xf32>
      %404 = vector.shape_cast %403 : vector<1x16x128xf32> to vector<16x128xf32>
      %c0_163 = arith.constant 0 : index
      %c0_164 = arith.constant 0 : index
      %405 = vector.load %arg17[%c0_163, %c0_164] : memref<16x128xf32, #tpu.memory_space<vmem>>, vector<16x128xf32>
      tpu.vector_store %arg17[%c0_163, %c0_164], %404 {strides = array<i32>} : memref<16x128xf32, #tpu.memory_space<vmem>>, vector<16x128xf32>,
    } else {
    }
    %c0 = arith.constant 0 : index
    %c0_1 = arith.constant 0 : index
    %3 = vector.load %arg17[%c0, %c0_1] : memref<16x128xf32, #tpu.memory_space<vmem>>, vector<16x128xf32>
    %c0_2 = arith.constant 0 : index
    %c0_3 = arith.constant 0 : index
    %c0_4 = arith.constant 0 : index
    %4 = vector.load %arg3[%c0_2, %c0_3, %c0_4] : memref<1x1x128xf32, #tpu.memory_space<vmem>>, vector<1x1x128xf32>
    %5 = vector.shape_cast %4 : vector<1x1x128xf32> to vector<128xf32>
    %c0_5 = arith.constant 0 : index
    %c0_6 = arith.constant 0 : index
    %c0_7 = arith.constant 0 : index
    %6 = vector.load %arg4[%c0_5, %c0_6, %c0_7] : memref<1x1x128xf32, #tpu.memory_space<vmem>>, vector<1x1x128xf32>
    %7 = vector.shape_cast %6 : vector<1x1x128xf32> to vector<128xf32>
    %cst = arith.constant dense<0.000000e+00> : vector<16xf32>
    %8 = vector.multi_reduction <add>, %3, %cst [1] : vector<16x128xf32> to vector<16xf32>
    %9 = vector.shape_cast %8 : vector<16xf32> to vector<16x1xf32>
    %cst_8 = arith.constant 1.280000e+02 : f32
    %10 = vector.broadcast %cst_8 : f32 to vector<16x1xf32>
    %11 = arith.divf %9, %10 : vector<16x1xf32>
    %12 = vector.broadcast %11 : vector<16x1xf32> to vector<16x128xf32>
    %13 = arith.subf %3, %12 : vector<16x128xf32>
    %14 = arith.mulf %13, %13 : vector<16x128xf32>
    %cst_9 = arith.constant dense<0.000000e+00> : vector<16xf32>
    %15 = vector.multi_reduction <add>, %14, %cst_9 [1] : vector<16x128xf32> to vector<16xf32>
    %16 = vector.shape_cast %15 : vector<16xf32> to vector<16x1xf32>
    %cst_10 = arith.constant 1.280000e+02 : f32
    %17 = vector.broadcast %cst_10 : f32 to vector<16x1xf32>
    %18 = arith.divf %16, %17 : vector<16x1xf32>
    %19 = vector.broadcast %11 : vector<16x1xf32> to vector<16x128xf32>
    %20 = arith.subf %3, %19 : vector<16x128xf32>
    %cst_11 = arith.constant 9.99999974E-6 : f32
    %21 = vector.broadcast %cst_11 : f32 to vector<16x1xf32>
    %22 = arith.addf %18, %21 : vector<16x1xf32>
    %23 = math.rsqrt %22 : vector<16x1xf32>
    %24 = vector.broadcast %23 : vector<16x1xf32> to vector<16x128xf32>
    %25 = arith.mulf %20, %24 : vector<16x128xf32>
    %26 = vector.shape_cast %5 : vector<128xf32> to vector<1x128xf32>
    %27 = vector.broadcast %26 : vector<1x128xf32> to vector<16x128xf32>
    %28 = arith.mulf %25, %27 : vector<16x128xf32>
    %29 = vector.shape_cast %7 : vector<128xf32> to vector<1x128xf32>
    %30 = vector.broadcast %29 : vector<1x128xf32> to vector<16x128xf32>
    %31 = arith.addf %28, %30 : vector<16x128xf32>
    %32 = arith.truncf %31 : vector<16x128xf32> to vector<16x128xbf16>
    %33 = tpu.iota {dimensions = array<i32: 0>} : vector<16x8xi32>
    %34 = tpu.iota {dimensions = array<i32: 1>} : vector<16x8xi32>
    %cst_12 = arith.constant 0.000000e+00 : f32
    %35 = vector.broadcast %cst_12 : f32 to vector<16x128xf32>
    %c0_i32_13 = arith.constant 0 : i32
    %c0_14 = arith.constant 0 : index
    %36 = arith.index_cast %c0_i32_13 : i32 to index
    %c0_15 = arith.constant 0 : index
    %c0_16 = arith.constant 0 : index
    %37 = vector.load %arg5[%c0_14, %36, %c0_15, %c0_16] : memref<1x4x128x32xbf16, #tpu.memory_space<vmem>>, vector<1x1x128x32xbf16>
    %38 = vector.shape_cast %37 : vector<1x1x128x32xbf16> to vector<128x32xbf16>
    %cst_17 = arith.constant dense<0.000000e+00> : vector<16x32xf32>
    %39 = tpu.matmul %32, %38, %cst_17 {dimension_numbers = #tpu.dot_dimension_numbers<[1], [0], [0], [1], [0, 0, 1, 1], [], []>} : vector<16x128xbf16>, vector<128x32xbf16>, vector<16x32xf32> -> vector<16x32xf32>
    %40 = arith.truncf %39 : vector<16x32xf32> to vector<16x32xbf16>
    %c0_18 = arith.constant 0 : index
    %41 = arith.index_cast %c0_i32_13 : i32 to index
    %c0_19 = arith.constant 0 : index
    %c0_20 = arith.constant 0 : index
    %42 = vector.load %arg6[%c0_18, %41, %c0_19, %c0_20] : memref<1x4x128x32xbf16, #tpu.memory_space<vmem>>, vector<1x1x128x32xbf16>
    %43 = vector.shape_cast %42 : vector<1x1x128x32xbf16> to vector<128x32xbf16>
    %cst_21 = arith.constant dense<0.000000e+00> : vector<16x32xf32>
    %44 = tpu.matmul %32, %43, %cst_21 {dimension_numbers = #tpu.dot_dimension_numbers<[1], [0], [0], [1], [0, 0, 1, 1], [], []>} : vector<16x128xbf16>, vector<128x32xbf16>, vector<16x32xf32> -> vector<16x32xf32>
    %c0_22 = arith.constant 0 : index
    %45 = arith.index_cast %c0_i32_13 : i32 to index
    %c0_23 = arith.constant 0 : index
    %c0_24 = arith.constant 0 : index
    %46 = vector.load %arg7[%c0_22, %45, %c0_23, %c0_24] : memref<1x4x128x128xbf16, #tpu.memory_space<vmem>>, vector<1x1x128x128xbf16>
    %47 = vector.shape_cast %46 : vector<1x1x128x128xbf16> to vector<128x128xbf16>
    %cst_25 = arith.constant dense<0.000000e+00> : vector<16x128xf32>
    %48 = tpu.matmul %32, %47, %cst_25 {dimension_numbers = #tpu.dot_dimension_numbers<[1], [0], [0], [1], [0, 0, 1, 1], [], []>} : vector<16x128xbf16>, vector<128x128xbf16>, vector<16x128xf32> -> vector<16x128xf32>
    %cst_26 = arith.constant 0xFF800000 : f32
    %49 = vector.broadcast %cst_26 : f32 to vector<16x1xf32>
    %cst_27 = arith.constant 0.000000e+00 : f32
    %50 = vector.broadcast %cst_27 : f32 to vector<16x1xf32>
    %cst_28 = arith.constant 0.000000e+00 : f32
    %51 = vector.broadcast %cst_28 : f32 to vector<16x128xf32>
    %52 = vector.extract_strided_slice %44 {offsets = [0, 0], sizes = [8, 32], strides = [1, 1]} : vector<16x32xf32> to vector<8x32xf32>
    %53 = arith.truncf %52 : vector<8x32xf32> to vector<8x32xbf16>
    %54 = vector.extract_strided_slice %48 {offsets = [0, 0], sizes = [8, 128], strides = [1, 1]} : vector<16x128xf32> to vector<8x128xf32>
    %55 = arith.truncf %54 : vector<8x128xf32> to vector<8x128xbf16>
    %cst_29 = arith.constant dense<0.000000e+00> : vector<16x8xf32>
    %56 = tpu.matmul %40, %53, %cst_29 {dimension_numbers = #tpu.dot_dimension_numbers<[1], [1], [0], [0], [0, 0, 1, 0], [], []>} : vector<16x32xbf16>, vector<8x32xbf16>, vector<16x8xf32> -> vector<16x8xf32>
    %c0_i32_30 = arith.constant 0 : i32
    %57 = vector.broadcast %c0_i32_30 : i32 to vector<16x8xi32>
    %58 = arith.addi %34, %57 : vector<16x8xi32>
    %59 = arith.cmpi sle, %58, %33 : vector<16x8xi32>
    %cst_31 = arith.constant -1.000000e+30 : f32
    %60 = vector.broadcast %cst_31 : f32 to vector<16x8xf32>
    %61 = arith.select %59, %56, %60 : vector<16x8xi1>, vector<16x8xf32>
    %cst_32 = arith.constant dense<0xFF800000> : vector<16xf32>
    %62 = vector.multi_reduction <maximumf>, %61, %cst_32 [1] : vector<16x8xf32> to vector<16xf32>
    %63 = vector.shape_cast %62 : vector<16xf32> to vector<16x1xf32>
    %64 = arith.maximumf %49, %63 : vector<16x1xf32>
    %65 = arith.subf %49, %64 : vector<16x1xf32>
    %66 = math.exp %65 : vector<16x1xf32>
    %67 = vector.broadcast %64 : vector<16x1xf32> to vector<16x8xf32>
    %68 = arith.subf %61, %67 : vector<16x8xf32>
    %69 = math.exp %68 : vector<16x8xf32>
    %70 = arith.mulf %66, %50 : vector<16x1xf32>
    %cst_33 = arith.constant dense<0.000000e+00> : vector<16xf32>
    %71 = vector.multi_reduction <add>, %69, %cst_33 [1] : vector<16x8xf32> to vector<16xf32>
    %72 = vector.shape_cast %71 : vector<16xf32> to vector<16x1xf32>
    %73 = arith.addf %70, %72 : vector<16x1xf32>
    %74 = vector.broadcast %66 : vector<16x1xf32> to vector<16x128xf32>
    %75 = arith.mulf %74, %51 : vector<16x128xf32>
    %76 = arith.truncf %69 : vector<16x8xf32> to vector<16x8xbf16>
    %cst_34 = arith.constant dense<0.000000e+00> : vector<16x128xf32>
    %77 = tpu.matmul %76, %55, %cst_34 {dimension_numbers = #tpu.dot_dimension_numbers<[1], [0], [0], [1], [0, 0, 1, 1], [], []>} : vector<16x8xbf16>, vector<8x128xbf16>, vector<16x128xf32> -> vector<16x128xf32>
    %78 = arith.addf %75, %77 : vector<16x128xf32>
    %79 = vector.extract_strided_slice %44 {offsets = [8, 0], sizes = [8, 32], strides = [1, 1]} : vector<16x32xf32> to vector<8x32xf32>
    %80 = arith.truncf %79 : vector<8x32xf32> to vector<8x32xbf16>
    %81 = vector.extract_strided_slice %48 {offsets = [8, 0], sizes = [8, 128], strides = [1, 1]} : vector<16x128xf32> to vector<8x128xf32>
    %82 = arith.truncf %81 : vector<8x128xf32> to vector<8x128xbf16>
    %cst_35 = arith.constant dense<0.000000e+00> : vector<16x8xf32>
    %83 = tpu.matmul %40, %80, %cst_35 {dimension_numbers = #tpu.dot_dimension_numbers<[1], [1], [0], [0], [0, 0, 1, 0], [], []>} : vector<16x32xbf16>, vector<8x32xbf16>, vector<16x8xf32> -> vector<16x8xf32>
    %c8_i32 = arith.constant 8 : i32
    %84 = vector.broadcast %c8_i32 : i32 to vector<16x8xi32>
    %85 = arith.addi %34, %84 : vector<16x8xi32>
    %86 = arith.cmpi sle, %85, %33 : vector<16x8xi32>
    %cst_36 = arith.constant -1.000000e+30 : f32
    %87 = vector.broadcast %cst_36 : f32 to vector<16x8xf32>
    %88 = arith.select %86, %83, %87 : vector<16x8xi1>, vector<16x8xf32>
    %cst_37 = arith.constant dense<0xFF800000> : vector<16xf32>
    %89 = vector.multi_reduction <maximumf>, %88, %cst_37 [1] : vector<16x8xf32> to vector<16xf32>
    %90 = vector.shape_cast %89 : vector<16xf32> to vector<16x1xf32>
    %91 = arith.maximumf %64, %90 : vector<16x1xf32>
    %92 = arith.subf %64, %91 : vector<16x1xf32>
    %93 = math.exp %92 : vector<16x1xf32>
    %94 = vector.broadcast %91 : vector<16x1xf32> to vector<16x8xf32>
    %95 = arith.subf %88, %94 : vector<16x8xf32>
    %96 = math.exp %95 : vector<16x8xf32>
    %97 = arith.mulf %93, %73 : vector<16x1xf32>
    %cst_38 = arith.constant dense<0.000000e+00> : vector<16xf32>
    %98 = vector.multi_reduction <add>, %96, %cst_38 [1] : vector<16x8xf32> to vector<16xf32>
    %99 = vector.shape_cast %98 : vector<16xf32> to vector<16x1xf32>
    %100 = arith.addf %97, %99 : vector<16x1xf32>
    %101 = vector.broadcast %93 : vector<16x1xf32> to vector<16x128xf32>
    %102 = arith.mulf %101, %78 : vector<16x128xf32>
    %103 = arith.truncf %96 : vector<16x8xf32> to vector<16x8xbf16>
    %cst_39 = arith.constant dense<0.000000e+00> : vector<16x128xf32>
    %104 = tpu.matmul %103, %82, %cst_39 {dimension_numbers = #tpu.dot_dimension_numbers<[1], [0], [0], [1], [0, 0, 1, 1], [], []>} : vector<16x8xbf16>, vector<8x128xbf16>, vector<16x128xf32> -> vector<16x128xf32>
    %105 = arith.addf %102, %104 : vector<16x128xf32>
    %106 = tpu.reciprocal %100 {approx = true} : vector<16x1xf32> -> vector<16x1xf32>
    %107 = vector.broadcast %106 : vector<16x1xf32> to vector<16x128xf32>
    %108 = arith.mulf %105, %107 : vector<16x128xf32>
    %109 = arith.addf %35, %108 : vector<16x128xf32>
    %c1_i32 = arith.constant 1 : i32
    %c0_40 = arith.constant 0 : index
    %110 = arith.index_cast %c1_i32 : i32 to index
    %c0_41 = arith.constant 0 : index
    %c0_42 = arith.constant 0 : index
    %111 = vector.load %arg5[%c0_40, %110, %c0_41, %c0_42] : memref<1x4x128x32xbf16, #tpu.memory_space<vmem>>, vector<1x1x128x32xbf16>
    %112 = vector.shape_cast %111 : vector<1x1x128x32xbf16> to vector<128x32xbf16>
    %cst_43 = arith.constant dense<0.000000e+00> : vector<16x32xf32>
    %113 = tpu.matmul %32, %112, %cst_43 {dimension_numbers = #tpu.dot_dimension_numbers<[1], [0], [0], [1], [0, 0, 1, 1], [], []>} : vector<16x128xbf16>, vector<128x32xbf16>, vector<16x32xf32> -> vector<16x32xf32>
    %114 = arith.truncf %113 : vector<16x32xf32> to vector<16x32xbf16>
    %c0_44 = arith.constant 0 : index
    %115 = arith.index_cast %c1_i32 : i32 to index
    %c0_45 = arith.constant 0 : index
    %c0_46 = arith.constant 0 : index
    %116 = vector.load %arg6[%c0_44, %115, %c0_45, %c0_46] : memref<1x4x128x32xbf16, #tpu.memory_space<vmem>>, vector<1x1x128x32xbf16>
    %117 = vector.shape_cast %116 : vector<1x1x128x32xbf16> to vector<128x32xbf16>
    %cst_47 = arith.constant dense<0.000000e+00> : vector<16x32xf32>
    %118 = tpu.matmul %32, %117, %cst_47 {dimension_numbers = #tpu.dot_dimension_numbers<[1], [0], [0], [1], [0, 0, 1, 1], [], []>} : vector<16x128xbf16>, vector<128x32xbf16>, vector<16x32xf32> -> vector<16x32xf32>
    %c0_48 = arith.constant 0 : index
    %119 = arith.index_cast %c1_i32 : i32 to index
    %c0_49 = arith.constant 0 : index
    %c0_50 = arith.constant 0 : index
    %120 = vector.load %arg7[%c0_48, %119, %c0_49, %c0_50] : memref<1x4x128x128xbf16, #tpu.memory_space<vmem>>, vector<1x1x128x128xbf16>
    %121 = vector.shape_cast %120 : vector<1x1x128x128xbf16> to vector<128x128xbf16>
    %cst_51 = arith.constant dense<0.000000e+00> : vector<16x128xf32>
    %122 = tpu.matmul %32, %121, %cst_51 {dimension_numbers = #tpu.dot_dimension_numbers<[1], [0], [0], [1], [0, 0, 1, 1], [], []>} : vector<16x128xbf16>, vector<128x128xbf16>, vector<16x128xf32> -> vector<16x128xf32>
    %cst_52 = arith.constant 0xFF800000 : f32
    %123 = vector.broadcast %cst_52 : f32 to vector<16x1xf32>
    %cst_53 = arith.constant 0.000000e+00 : f32
    %124 = vector.broadcast %cst_53 : f32 to vector<16x1xf32>
    %cst_54 = arith.constant 0.000000e+00 : f32
    %125 = vector.broadcast %cst_54 : f32 to vector<16x128xf32>
    %126 = vector.extract_strided_slice %118 {offsets = [0, 0], sizes = [8, 32], strides = [1, 1]} : vector<16x32xf32> to vector<8x32xf32>
    %127 = arith.truncf %126 : vector<8x32xf32> to vector<8x32xbf16>
    %128 = vector.extract_strided_slice %122 {offsets = [0, 0], sizes = [8, 128], strides = [1, 1]} : vector<16x128xf32> to vector<8x128xf32>
    %129 = arith.truncf %128 : vector<8x128xf32> to vector<8x128xbf16>
    %cst_55 = arith.constant dense<0.000000e+00> : vector<16x8xf32>
    %130 = tpu.matmul %114, %127, %cst_55 {dimension_numbers = #tpu.dot_dimension_numbers<[1], [1], [0], [0], [0, 0, 1, 0], [], []>} : vector<16x32xbf16>, vector<8x32xbf16>, vector<16x8xf32> -> vector<16x8xf32>
    %c0_i32_56 = arith.constant 0 : i32
    %131 = vector.broadcast %c0_i32_56 : i32 to vector<16x8xi32>
    %132 = arith.addi %34, %131 : vector<16x8xi32>
    %133 = arith.cmpi sle, %132, %33 : vector<16x8xi32>
    %cst_57 = arith.constant -1.000000e+30 : f32
    %134 = vector.broadcast %cst_57 : f32 to vector<16x8xf32>
    %135 = arith.select %133, %130, %134 : vector<16x8xi1>, vector<16x8xf32>
    %cst_58 = arith.constant dense<0xFF800000> : vector<16xf32>
    %136 = vector.multi_reduction <maximumf>, %135, %cst_58 [1] : vector<16x8xf32> to vector<16xf32>
    %137 = vector.shape_cast %136 : vector<16xf32> to vector<16x1xf32>
    %138 = arith.maximumf %123, %137 : vector<16x1xf32>
    %139 = arith.subf %123, %138 : vector<16x1xf32>
    %140 = math.exp %139 : vector<16x1xf32>
    %141 = vector.broadcast %138 : vector<16x1xf32> to vector<16x8xf32>
    %142 = arith.subf %135, %141 : vector<16x8xf32>
    %143 = math.exp %142 : vector<16x8xf32>
    %144 = arith.mulf %140, %124 : vector<16x1xf32>
    %cst_59 = arith.constant dense<0.000000e+00> : vector<16xf32>
    %145 = vector.multi_reduction <add>, %143, %cst_59 [1] : vector<16x8xf32> to vector<16xf32>
    %146 = vector.shape_cast %145 : vector<16xf32> to vector<16x1xf32>
    %147 = arith.addf %144, %146 : vector<16x1xf32>
    %148 = vector.broadcast %140 : vector<16x1xf32> to vector<16x128xf32>
    %149 = arith.mulf %148, %125 : vector<16x128xf32>
    %150 = arith.truncf %143 : vector<16x8xf32> to vector<16x8xbf16>
    %cst_60 = arith.constant dense<0.000000e+00> : vector<16x128xf32>
    %151 = tpu.matmul %150, %129, %cst_60 {dimension_numbers = #tpu.dot_dimension_numbers<[1], [0], [0], [1], [0, 0, 1, 1], [], []>} : vector<16x8xbf16>, vector<8x128xbf16>, vector<16x128xf32> -> vector<16x128xf32>
    %152 = arith.addf %149, %151 : vector<16x128xf32>
    %153 = vector.extract_strided_slice %118 {offsets = [8, 0], sizes = [8, 32], strides = [1, 1]} : vector<16x32xf32> to vector<8x32xf32>
    %154 = arith.truncf %153 : vector<8x32xf32> to vector<8x32xbf16>
    %155 = vector.extract_strided_slice %122 {offsets = [8, 0], sizes = [8, 128], strides = [1, 1]} : vector<16x128xf32> to vector<8x128xf32>
    %156 = arith.truncf %155 : vector<8x128xf32> to vector<8x128xbf16>
    %cst_61 = arith.constant dense<0.000000e+00> : vector<16x8xf32>
    %157 = tpu.matmul %114, %154, %cst_61 {dimension_numbers = #tpu.dot_dimension_numbers<[1], [1], [0], [0], [0, 0, 1, 0], [], []>} : vector<16x32xbf16>, vector<8x32xbf16>, vector<16x8xf32> -> vector<16x8xf32>
    %c8_i32_62 = arith.constant 8 : i32
    %158 = vector.broadcast %c8_i32_62 : i32 to vector<16x8xi32>
    %159 = arith.addi %34, %158 : vector<16x8xi32>
    %160 = arith.cmpi sle, %159, %33 : vector<16x8xi32>
    %cst_63 = arith.constant -1.000000e+30 : f32
    %161 = vector.broadcast %cst_63 : f32 to vector<16x8xf32>
    %162 = arith.select %160, %157, %161 : vector<16x8xi1>, vector<16x8xf32>
    %cst_64 = arith.constant dense<0xFF800000> : vector<16xf32>
    %163 = vector.multi_reduction <maximumf>, %162, %cst_64 [1] : vector<16x8xf32> to vector<16xf32>
    %164 = vector.shape_cast %163 : vector<16xf32> to vector<16x1xf32>
    %165 = arith.maximumf %138, %164 : vector<16x1xf32>
    %166 = arith.subf %138, %165 : vector<16x1xf32>
    %167 = math.exp %166 : vector<16x1xf32>
    %168 = vector.broadcast %165 : vector<16x1xf32> to vector<16x8xf32>
    %169 = arith.subf %162, %168 : vector<16x8xf32>
    %170 = math.exp %169 : vector<16x8xf32>
    %171 = arith.mulf %167, %147 : vector<16x1xf32>
    %cst_65 = arith.constant dense<0.000000e+00> : vector<16xf32>
    %172 = vector.multi_reduction <add>, %170, %cst_65 [1] : vector<16x8xf32> to vector<16xf32>
    %173 = vector.shape_cast %172 : vector<16xf32> to vector<16x1xf32>
    %174 = arith.addf %171, %173 : vector<16x1xf32>
    %175 = vector.broadcast %167 : vector<16x1xf32> to vector<16x128xf32>
    %176 = arith.mulf %175, %152 : vector<16x128xf32>
    %177 = arith.truncf %170 : vector<16x8xf32> to vector<16x8xbf16>
    %cst_66 = arith.constant dense<0.000000e+00> : vector<16x128xf32>
    %178 = tpu.matmul %177, %156, %cst_66 {dimension_numbers = #tpu.dot_dimension_numbers<[1], [0], [0], [1], [0, 0, 1, 1], [], []>} : vector<16x8xbf16>, vector<8x128xbf16>, vector<16x128xf32> -> vector<16x128xf32>
    %179 = arith.addf %176, %178 : vector<16x128xf32>
    %180 = tpu.reciprocal %174 {approx = true} : vector<16x1xf32> -> vector<16x1xf32>
    %181 = vector.broadcast %180 : vector<16x1xf32> to vector<16x128xf32>
    %182 = arith.mulf %179, %181 : vector<16x128xf32>
    %183 = arith.addf %109, %182 : vector<16x128xf32>
    %c2_i32 = arith.constant 2 : i32
    %c0_67 = arith.constant 0 : index
    %184 = arith.index_cast %c2_i32 : i32 to index
    %c0_68 = arith.constant 0 : index
    %c0_69 = arith.constant 0 : index
    %185 = vector.load %arg5[%c0_67, %184, %c0_68, %c0_69] : memref<1x4x128x32xbf16, #tpu.memory_space<vmem>>, vector<1x1x128x32xbf16>
    %186 = vector.shape_cast %185 : vector<1x1x128x32xbf16> to vector<128x32xbf16>
    %cst_70 = arith.constant dense<0.000000e+00> : vector<16x32xf32>
    %187 = tpu.matmul %32, %186, %cst_70 {dimension_numbers = #tpu.dot_dimension_numbers<[1], [0], [0], [1], [0, 0, 1, 1], [], []>} : vector<16x128xbf16>, vector<128x32xbf16>, vector<16x32xf32> -> vector<16x32xf32>
    %188 = arith.truncf %187 : vector<16x32xf32> to vector<16x32xbf16>
    %c0_71 = arith.constant 0 : index
    %189 = arith.index_cast %c2_i32 : i32 to index
    %c0_72 = arith.constant 0 : index
    %c0_73 = arith.constant 0 : index
    %190 = vector.load %arg6[%c0_71, %189, %c0_72, %c0_73] : memref<1x4x128x32xbf16, #tpu.memory_space<vmem>>, vector<1x1x128x32xbf16>
    %191 = vector.shape_cast %190 : vector<1x1x128x32xbf16> to vector<128x32xbf16>
    %cst_74 = arith.constant dense<0.000000e+00> : vector<16x32xf32>
    %192 = tpu.matmul %32, %191, %cst_74 {dimension_numbers = #tpu.dot_dimension_numbers<[1], [0], [0], [1], [0, 0, 1, 1], [], []>} : vector<16x128xbf16>, vector<128x32xbf16>, vector<16x32xf32> -> vector<16x32xf32>
    %c0_75 = arith.constant 0 : index
    %193 = arith.index_cast %c2_i32 : i32 to index
    %c0_76 = arith.constant 0 : index
    %c0_77 = arith.constant 0 : index
    %194 = vector.load %arg7[%c0_75, %193, %c0_76, %c0_77] : memref<1x4x128x128xbf16, #tpu.memory_space<vmem>>, vector<1x1x128x128xbf16>
    %195 = vector.shape_cast %194 : vector<1x1x128x128xbf16> to vector<128x128xbf16>
    %cst_78 = arith.constant dense<0.000000e+00> : vector<16x128xf32>
    %196 = tpu.matmul %32, %195, %cst_78 {dimension_numbers = #tpu.dot_dimension_numbers<[1], [0], [0], [1], [0, 0, 1, 1], [], []>} : vector<16x128xbf16>, vector<128x128xbf16>, vector<16x128xf32> -> vector<16x128xf32>
    %cst_79 = arith.constant 0xFF800000 : f32
    %197 = vector.broadcast %cst_79 : f32 to vector<16x1xf32>
    %cst_80 = arith.constant 0.000000e+00 : f32
    %198 = vector.broadcast %cst_80 : f32 to vector<16x1xf32>
    %cst_81 = arith.constant 0.000000e+00 : f32
    %199 = vector.broadcast %cst_81 : f32 to vector<16x128xf32>
    %200 = vector.extract_strided_slice %192 {offsets = [0, 0], sizes = [8, 32], strides = [1, 1]} : vector<16x32xf32> to vector<8x32xf32>
    %201 = arith.truncf %200 : vector<8x32xf32> to vector<8x32xbf16>
    %202 = vector.extract_strided_slice %196 {offsets = [0, 0], sizes = [8, 128], strides = [1, 1]} : vector<16x128xf32> to vector<8x128xf32>
    %203 = arith.truncf %202 : vector<8x128xf32> to vector<8x128xbf16>
    %cst_82 = arith.constant dense<0.000000e+00> : vector<16x8xf32>
    %204 = tpu.matmul %188, %201, %cst_82 {dimension_numbers = #tpu.dot_dimension_numbers<[1], [1], [0], [0], [0, 0, 1, 0], [], []>} : vector<16x32xbf16>, vector<8x32xbf16>, vector<16x8xf32> -> vector<16x8xf32>
    %c0_i32_83 = arith.constant 0 : i32
    %205 = vector.broadcast %c0_i32_83 : i32 to vector<16x8xi32>
    %206 = arith.addi %34, %205 : vector<16x8xi32>
    %207 = arith.cmpi sle, %206, %33 : vector<16x8xi32>
    %cst_84 = arith.constant -1.000000e+30 : f32
    %208 = vector.broadcast %cst_84 : f32 to vector<16x8xf32>
    %209 = arith.select %207, %204, %208 : vector<16x8xi1>, vector<16x8xf32>
    %cst_85 = arith.constant dense<0xFF800000> : vector<16xf32>
    %210 = vector.multi_reduction <maximumf>, %209, %cst_85 [1] : vector<16x8xf32> to vector<16xf32>
    %211 = vector.shape_cast %210 : vector<16xf32> to vector<16x1xf32>
    %212 = arith.maximumf %197, %211 : vector<16x1xf32>
    %213 = arith.subf %197, %212 : vector<16x1xf32>
    %214 = math.exp %213 : vector<16x1xf32>
    %215 = vector.broadcast %212 : vector<16x1xf32> to vector<16x8xf32>
    %216 = arith.subf %209, %215 : vector<16x8xf32>
    %217 = math.exp %216 : vector<16x8xf32>
    %218 = arith.mulf %214, %198 : vector<16x1xf32>
    %cst_86 = arith.constant dense<0.000000e+00> : vector<16xf32>
    %219 = vector.multi_reduction <add>, %217, %cst_86 [1] : vector<16x8xf32> to vector<16xf32>
    %220 = vector.shape_cast %219 : vector<16xf32> to vector<16x1xf32>
    %221 = arith.addf %218, %220 : vector<16x1xf32>
    %222 = vector.broadcast %214 : vector<16x1xf32> to vector<16x128xf32>
    %223 = arith.mulf %222, %199 : vector<16x128xf32>
    %224 = arith.truncf %217 : vector<16x8xf32> to vector<16x8xbf16>
    %cst_87 = arith.constant dense<0.000000e+00> : vector<16x128xf32>
    %225 = tpu.matmul %224, %203, %cst_87 {dimension_numbers = #tpu.dot_dimension_numbers<[1], [0], [0], [1], [0, 0, 1, 1], [], []>} : vector<16x8xbf16>, vector<8x128xbf16>, vector<16x128xf32> -> vector<16x128xf32>
    %226 = arith.addf %223, %225 : vector<16x128xf32>
    %227 = vector.extract_strided_slice %192 {offsets = [8, 0], sizes = [8, 32], strides = [1, 1]} : vector<16x32xf32> to vector<8x32xf32>
    %228 = arith.truncf %227 : vector<8x32xf32> to vector<8x32xbf16>
    %229 = vector.extract_strided_slice %196 {offsets = [8, 0], sizes = [8, 128], strides = [1, 1]} : vector<16x128xf32> to vector<8x128xf32>
    %230 = arith.truncf %229 : vector<8x128xf32> to vector<8x128xbf16>
    %cst_88 = arith.constant dense<0.000000e+00> : vector<16x8xf32>
    %231 = tpu.matmul %188, %228, %cst_88 {dimension_numbers = #tpu.dot_dimension_numbers<[1], [1], [0], [0], [0, 0, 1, 0], [], []>} : vector<16x32xbf16>, vector<8x32xbf16>, vector<16x8xf32> -> vector<16x8xf32>
    %c8_i32_89 = arith.constant 8 : i32
    %232 = vector.broadcast %c8_i32_89 : i32 to vector<16x8xi32>
    %233 = arith.addi %34, %232 : vector<16x8xi32>
    %234 = arith.cmpi sle, %233, %33 : vector<16x8xi32>
    %cst_90 = arith.constant -1.000000e+30 : f32
    %235 = vector.broadcast %cst_90 : f32 to vector<16x8xf32>
    %236 = arith.select %234, %231, %235 : vector<16x8xi1>, vector<16x8xf32>
    %cst_91 = arith.constant dense<0xFF800000> : vector<16xf32>
    %237 = vector.multi_reduction <maximumf>, %236, %cst_91 [1] : vector<16x8xf32> to vector<16xf32>
    %238 = vector.shape_cast %237 : vector<16xf32> to vector<16x1xf32>
    %239 = arith.maximumf %212, %238 : vector<16x1xf32>
    %240 = arith.subf %212, %239 : vector<16x1xf32>
    %241 = math.exp %240 : vector<16x1xf32>
    %242 = vector.broadcast %239 : vector<16x1xf32> to vector<16x8xf32>
    %243 = arith.subf %236, %242 : vector<16x8xf32>
    %244 = math.exp %243 : vector<16x8xf32>
    %245 = arith.mulf %241, %221 : vector<16x1xf32>
    %cst_92 = arith.constant dense<0.000000e+00> : vector<16xf32>
    %246 = vector.multi_reduction <add>, %244, %cst_92 [1] : vector<16x8xf32> to vector<16xf32>
    %247 = vector.shape_cast %246 : vector<16xf32> to vector<16x1xf32>
    %248 = arith.addf %245, %247 : vector<16x1xf32>
    %249 = vector.broadcast %241 : vector<16x1xf32> to vector<16x128xf32>
    %250 = arith.mulf %249, %226 : vector<16x128xf32>
    %251 = arith.truncf %244 : vector<16x8xf32> to vector<16x8xbf16>
    %cst_93 = arith.constant dense<0.000000e+00> : vector<16x128xf32>
    %252 = tpu.matmul %251, %230, %cst_93 {dimension_numbers = #tpu.dot_dimension_numbers<[1], [0], [0], [1], [0, 0, 1, 1], [], []>} : vector<16x8xbf16>, vector<8x128xbf16>, vector<16x128xf32> -> vector<16x128xf32>
    %253 = arith.addf %250, %252 : vector<16x128xf32>
    %254 = tpu.reciprocal %248 {approx = true} : vector<16x1xf32> -> vector<16x1xf32>
    %255 = vector.broadcast %254 : vector<16x1xf32> to vector<16x128xf32>
    %256 = arith.mulf %253, %255 : vector<16x128xf32>
    %257 = arith.addf %183, %256 : vector<16x128xf32>
    %c3_i32 = arith.constant 3 : i32
    %c0_94 = arith.constant 0 : index
    %258 = arith.index_cast %c3_i32 : i32 to index
    %c0_95 = arith.constant 0 : index
    %c0_96 = arith.constant 0 : index
    %259 = vector.load %arg5[%c0_94, %258, %c0_95, %c0_96] : memref<1x4x128x32xbf16, #tpu.memory_space<vmem>>, vector<1x1x128x32xbf16>
    %260 = vector.shape_cast %259 : vector<1x1x128x32xbf16> to vector<128x32xbf16>
    %cst_97 = arith.constant dense<0.000000e+00> : vector<16x32xf32>
    %261 = tpu.matmul %32, %260, %cst_97 {dimension_numbers = #tpu.dot_dimension_numbers<[1], [0], [0], [1], [0, 0, 1, 1], [], []>} : vector<16x128xbf16>, vector<128x32xbf16>, vector<16x32xf32> -> vector<16x32xf32>
    %262 = arith.truncf %261 : vector<16x32xf32> to vector<16x32xbf16>
    %c0_98 = arith.constant 0 : index
    %263 = arith.index_cast %c3_i32 : i32 to index
    %c0_99 = arith.constant 0 : index
    %c0_100 = arith.constant 0 : index
    %264 = vector.load %arg6[%c0_98, %263, %c0_99, %c0_100] : memref<1x4x128x32xbf16, #tpu.memory_space<vmem>>, vector<1x1x128x32xbf16>
    %265 = vector.shape_cast %264 : vector<1x1x128x32xbf16> to vector<128x32xbf16>
    %cst_101 = arith.constant dense<0.000000e+00> : vector<16x32xf32>
    %266 = tpu.matmul %32, %265, %cst_101 {dimension_numbers = #tpu.dot_dimension_numbers<[1], [0], [0], [1], [0, 0, 1, 1], [], []>} : vector<16x128xbf16>, vector<128x32xbf16>, vector<16x32xf32> -> vector<16x32xf32>
    %c0_102 = arith.constant 0 : index
    %267 = arith.index_cast %c3_i32 : i32 to index
    %c0_103 = arith.constant 0 : index
    %c0_104 = arith.constant 0 : index
    %268 = vector.load %arg7[%c0_102, %267, %c0_103, %c0_104] : memref<1x4x128x128xbf16, #tpu.memory_space<vmem>>, vector<1x1x128x128xbf16>
    %269 = vector.shape_cast %268 : vector<1x1x128x128xbf16> to vector<128x128xbf16>
    %cst_105 = arith.constant dense<0.000000e+00> : vector<16x128xf32>
    %270 = tpu.matmul %32, %269, %cst_105 {dimension_numbers = #tpu.dot_dimension_numbers<[1], [0], [0], [1], [0, 0, 1, 1], [], []>} : vector<16x128xbf16>, vector<128x128xbf16>, vector<16x128xf32> -> vector<16x128xf32>
    %cst_106 = arith.constant 0xFF800000 : f32
    %271 = vector.broadcast %cst_106 : f32 to vector<16x1xf32>
    %cst_107 = arith.constant 0.000000e+00 : f32
    %272 = vector.broadcast %cst_107 : f32 to vector<16x1xf32>
    %cst_108 = arith.constant 0.000000e+00 : f32
    %273 = vector.broadcast %cst_108 : f32 to vector<16x128xf32>
    %274 = vector.extract_strided_slice %266 {offsets = [0, 0], sizes = [8, 32], strides = [1, 1]} : vector<16x32xf32> to vector<8x32xf32>
    %275 = arith.truncf %274 : vector<8x32xf32> to vector<8x32xbf16>
    %276 = vector.extract_strided_slice %270 {offsets = [0, 0], sizes = [8, 128], strides = [1, 1]} : vector<16x128xf32> to vector<8x128xf32>
    %277 = arith.truncf %276 : vector<8x128xf32> to vector<8x128xbf16>
    %cst_109 = arith.constant dense<0.000000e+00> : vector<16x8xf32>
    %278 = tpu.matmul %262, %275, %cst_109 {dimension_numbers = #tpu.dot_dimension_numbers<[1], [1], [0], [0], [0, 0, 1, 0], [], []>} : vector<16x32xbf16>, vector<8x32xbf16>, vector<16x8xf32> -> vector<16x8xf32>
    %c0_i32_110 = arith.constant 0 : i32
    %279 = vector.broadcast %c0_i32_110 : i32 to vector<16x8xi32>
    %280 = arith.addi %34, %279 : vector<16x8xi32>
    %281 = arith.cmpi sle, %280, %33 : vector<16x8xi32>
    %cst_111 = arith.constant -1.000000e+30 : f32
    %282 = vector.broadcast %cst_111 : f32 to vector<16x8xf32>
    %283 = arith.select %281, %278, %282 : vector<16x8xi1>, vector<16x8xf32>
    %cst_112 = arith.constant dense<0xFF800000> : vector<16xf32>
    %284 = vector.multi_reduction <maximumf>, %283, %cst_112 [1] : vector<16x8xf32> to vector<16xf32>
    %285 = vector.shape_cast %284 : vector<16xf32> to vector<16x1xf32>
    %286 = arith.maximumf %271, %285 : vector<16x1xf32>
    %287 = arith.subf %271, %286 : vector<16x1xf32>
    %288 = math.exp %287 : vector<16x1xf32>
    %289 = vector.broadcast %286 : vector<16x1xf32> to vector<16x8xf32>
    %290 = arith.subf %283, %289 : vector<16x8xf32>
    %291 = math.exp %290 : vector<16x8xf32>
    %292 = arith.mulf %288, %272 : vector<16x1xf32>
    %cst_113 = arith.constant dense<0.000000e+00> : vector<16xf32>
    %293 = vector.multi_reduction <add>, %291, %cst_113 [1] : vector<16x8xf32> to vector<16xf32>
    %294 = vector.shape_cast %293 : vector<16xf32> to vector<16x1xf32>
    %295 = arith.addf %292, %294 : vector<16x1xf32>
    %296 = vector.broadcast %288 : vector<16x1xf32> to vector<16x128xf32>
    %297 = arith.mulf %296, %273 : vector<16x128xf32>
    %298 = arith.truncf %291 : vector<16x8xf32> to vector<16x8xbf16>
    %cst_114 = arith.constant dense<0.000000e+00> : vector<16x128xf32>
    %299 = tpu.matmul %298, %277, %cst_114 {dimension_numbers = #tpu.dot_dimension_numbers<[1], [0], [0], [1], [0, 0, 1, 1], [], []>} : vector<16x8xbf16>, vector<8x128xbf16>, vector<16x128xf32> -> vector<16x128xf32>
    %300 = arith.addf %297, %299 : vector<16x128xf32>
    %301 = vector.extract_strided_slice %266 {offsets = [8, 0], sizes = [8, 32], strides = [1, 1]} : vector<16x32xf32> to vector<8x32xf32>
    %302 = arith.truncf %301 : vector<8x32xf32> to vector<8x32xbf16>
    %303 = vector.extract_strided_slice %270 {offsets = [8, 0], sizes = [8, 128], strides = [1, 1]} : vector<16x128xf32> to vector<8x128xf32>
    %304 = arith.truncf %303 : vector<8x128xf32> to vector<8x128xbf16>
    %cst_115 = arith.constant dense<0.000000e+00> : vector<16x8xf32>
    %305 = tpu.matmul %262, %302, %cst_115 {dimension_numbers = #tpu.dot_dimension_numbers<[1], [1], [0], [0], [0, 0, 1, 0], [], []>} : vector<16x32xbf16>, vector<8x32xbf16>, vector<16x8xf32> -> vector<16x8xf32>
    %c8_i32_116 = arith.constant 8 : i32
    %306 = vector.broadcast %c8_i32_116 : i32 to vector<16x8xi32>
    %307 = arith.addi %34, %306 : vector<16x8xi32>
    %308 = arith.cmpi sle, %307, %33 : vector<16x8xi32>
    %cst_117 = arith.constant -1.000000e+30 : f32
    %309 = vector.broadcast %cst_117 : f32 to vector<16x8xf32>
    %310 = arith.select %308, %305, %309 : vector<16x8xi1>, vector<16x8xf32>
    %cst_118 = arith.constant dense<0xFF800000> : vector<16xf32>
    %311 = vector.multi_reduction <maximumf>, %310, %cst_118 [1] : vector<16x8xf32> to vector<16xf32>
    %312 = vector.shape_cast %311 : vector<16xf32> to vector<16x1xf32>
    %313 = arith.maximumf %286, %312 : vector<16x1xf32>
    %314 = arith.subf %286, %313 : vector<16x1xf32>
    %315 = math.exp %314 : vector<16x1xf32>
    %316 = vector.broadcast %313 : vector<16x1xf32> to vector<16x8xf32>
    %317 = arith.subf %310, %316 : vector<16x8xf32>
    %318 = math.exp %317 : vector<16x8xf32>
    %319 = arith.mulf %315, %295 : vector<16x1xf32>
    %cst_119 = arith.constant dense<0.000000e+00> : vector<16xf32>
    %320 = vector.multi_reduction <add>, %318, %cst_119 [1] : vector<16x8xf32> to vector<16xf32>
    %321 = vector.shape_cast %320 : vector<16xf32> to vector<16x1xf32>
    %322 = arith.addf %319, %321 : vector<16x1xf32>
    %323 = vector.broadcast %315 : vector<16x1xf32> to vector<16x128xf32>
    %324 = arith.mulf %323, %300 : vector<16x128xf32>
    %325 = arith.truncf %318 : vector<16x8xf32> to vector<16x8xbf16>
    %cst_120 = arith.constant dense<0.000000e+00> : vector<16x128xf32>
    %326 = tpu.matmul %325, %304, %cst_120 {dimension_numbers = #tpu.dot_dimension_numbers<[1], [0], [0], [1], [0, 0, 1, 1], [], []>} : vector<16x8xbf16>, vector<8x128xbf16>, vector<16x128xf32> -> vector<16x128xf32>
    %327 = arith.addf %324, %326 : vector<16x128xf32>
    %328 = tpu.reciprocal %322 {approx = true} : vector<16x1xf32> -> vector<16x1xf32>
    %329 = vector.broadcast %328 : vector<16x1xf32> to vector<16x128xf32>
    %330 = arith.mulf %327, %329 : vector<16x128xf32>
    %331 = arith.addf %257, %330 : vector<16x128xf32>
    %c4_i32 = arith.constant 4 : i32
    %332 = arith.addf %3, %331 : vector<16x128xf32>
    %c0_121 = arith.constant 0 : index
    %c0_122 = arith.constant 0 : index
    %c0_123 = arith.constant 0 : index
    %333 = vector.load %arg8[%c0_121, %c0_122, %c0_123] : memref<1x1x128xf32, #tpu.memory_space<vmem>>, vector<1x1x128xf32>
    %334 = vector.shape_cast %333 : vector<1x1x128xf32> to vector<128xf32>
    %c0_124 = arith.constant 0 : index
    %c0_125 = arith.constant 0 : index
    %c0_126 = arith.constant 0 : index
    %335 = vector.load %arg9[%c0_124, %c0_125, %c0_126] : memref<1x1x128xf32, #tpu.memory_space<vmem>>, vector<1x1x128xf32>
    %336 = vector.shape_cast %335 : vector<1x1x128xf32> to vector<128xf32>
    %cst_127 = arith.constant dense<0.000000e+00> : vector<16xf32>
    %337 = vector.multi_reduction <add>, %332, %cst_127 [1] : vector<16x128xf32> to vector<16xf32>
    %338 = vector.shape_cast %337 : vector<16xf32> to vector<16x1xf32>
    %cst_128 = arith.constant 1.280000e+02 : f32
    %339 = vector.broadcast %cst_128 : f32 to vector<16x1xf32>
    %340 = arith.divf %338, %339 : vector<16x1xf32>
    %341 = vector.broadcast %340 : vector<16x1xf32> to vector<16x128xf32>
    %342 = arith.subf %332, %341 : vector<16x128xf32>
    %343 = arith.mulf %342, %342 : vector<16x128xf32>
    %cst_129 = arith.constant dense<0.000000e+00> : vector<16xf32>
    %344 = vector.multi_reduction <add>, %343, %cst_129 [1] : vector<16x128xf32> to vector<16xf32>
    %345 = vector.shape_cast %344 : vector<16xf32> to vector<16x1xf32>
    %cst_130 = arith.constant 1.280000e+02 : f32
    %346 = vector.broadcast %cst_130 : f32 to vector<16x1xf32>
    %347 = arith.divf %345, %346 : vector<16x1xf32>
    %348 = vector.broadcast %340 : vector<16x1xf32> to vector<16x128xf32>
    %349 = arith.subf %332, %348 : vector<16x128xf32>
    %cst_131 = arith.constant 9.99999974E-6 : f32
    %350 = vector.broadcast %cst_131 : f32 to vector<16x1xf32>
    %351 = arith.addf %347, %350 : vector<16x1xf32>
    %352 = math.rsqrt %351 : vector<16x1xf32>
    %353 = vector.broadcast %352 : vector<16x1xf32> to vector<16x128xf32>
    %354 = arith.mulf %349, %353 : vector<16x128xf32>
    %355 = vector.shape_cast %334 : vector<128xf32> to vector<1x128xf32>
    %356 = vector.broadcast %355 : vector<1x128xf32> to vector<16x128xf32>
    %357 = arith.mulf %354, %356 : vector<16x128xf32>
    %358 = vector.shape_cast %336 : vector<128xf32> to vector<1x128xf32>
    %359 = vector.broadcast %358 : vector<1x128xf32> to vector<16x128xf32>
    %360 = arith.addf %357, %359 : vector<16x128xf32>
    %361 = arith.truncf %360 : vector<16x128xf32> to vector<16x128xbf16>
    %c0_132 = arith.constant 0 : index
    %c0_133 = arith.constant 0 : index
    %c0_134 = arith.constant 0 : index
    %362 = vector.load %arg11[%c0_132, %c0_133, %c0_134] : memref<1x1x512xf32, #tpu.memory_space<vmem>>, vector<1x1x512xf32>
    %363 = vector.shape_cast %362 : vector<1x1x512xf32> to vector<512xf32>
    %cst_135 = arith.constant 0.000000e+00 : f32
    %364 = vector.broadcast %cst_135 : f32 to vector<16x128xf32>
    %c0_136 = arith.constant 0 : index
    %c0_137 = arith.constant 0 : index
    %c0_138 = arith.constant 0 : index
    %365 = vector.load %arg10[%c0_136, %c0_137, %c0_138] : memref<1x128x512xbf16, #tpu.memory_space<vmem>>, vector<1x128x256xbf16>
    %366 = vector.shape_cast %365 : vector<1x128x256xbf16> to vector<128x256xbf16>
    %cst_139 = arith.constant dense<0.000000e+00> : vector<16x256xf32>
    %367 = tpu.matmul %361, %366, %cst_139 {dimension_numbers = #tpu.dot_dimension_numbers<[1], [0], [0], [1], [0, 0, 1, 1], [], []>} : vector<16x128xbf16>, vector<128x256xbf16>, vector<16x256xf32> -> vector<16x256xf32>
    %368 = vector.extract_strided_slice %363 {offsets = [0], sizes = [256], strides = [1]} : vector<512xf32> to vector<256xf32>
    %369 = vector.shape_cast %368 : vector<256xf32> to vector<1x256xf32>
    %370 = vector.broadcast %369 : vector<1x256xf32> to vector<16x256xf32>
    %371 = arith.addf %367, %370 : vector<16x256xf32>
    %cst_140 = arith.constant 0.000000e+00 : f32
    %372 = vector.broadcast %cst_140 : f32 to vector<16x256xf32>
    %373 = arith.maximumf %371, %372 : vector<16x256xf32>
    %374 = arith.truncf %373 : vector<16x256xf32> to vector<16x256xbf16>
    %c0_141 = arith.constant 0 : index
    %c0_142 = arith.constant 0 : index
    %c0_143 = arith.constant 0 : index
    %375 = vector.load %arg12[%c0_141, %c0_142, %c0_143] : memref<1x512x128xbf16, #tpu.memory_space<vmem>>, vector<1x256x128xbf16>
    %376 = vector.shape_cast %375 : vector<1x256x128xbf16> to vector<256x128xbf16>
    %cst_144 = arith.constant dense<0.000000e+00> : vector<16x128xf32>
    %377 = tpu.matmul %374, %376, %cst_144 {dimension_numbers = #tpu.dot_dimension_numbers<[1], [0], [0], [1], [0, 0, 1, 1], [], []>} : vector<16x256xbf16>, vector<256x128xbf16>, vector<16x128xf32> -> vector<16x128xf32>
    %378 = arith.addf %364, %377 : vector<16x128xf32>
    %c0_145 = arith.constant 0 : index
    %c0_146 = arith.constant 0 : index
    %c256 = arith.constant 256 : index
    %379 = vector.load %arg10[%c0_145, %c0_146, %c256] : memref<1x128x512xbf16, #tpu.memory_space<vmem>>, vector<1x128x256xbf16>
    %380 = vector.shape_cast %379 : vector<1x128x256xbf16> to vector<128x256xbf16>
    %cst_147 = arith.constant dense<0.000000e+00> : vector<16x256xf32>
    %381 = tpu.matmul %361, %380, %cst_147 {dimension_numbers = #tpu.dot_dimension_numbers<[1], [0], [0], [1], [0, 0, 1, 1], [], []>} : vector<16x128xbf16>, vector<128x256xbf16>, vector<16x256xf32> -> vector<16x256xf32>
    %382 = vector.extract_strided_slice %363 {offsets = [256], sizes = [256], strides = [1]} : vector<512xf32> to vector<256xf32>
    %383 = vector.shape_cast %382 : vector<256xf32> to vector<1x256xf32>
    %384 = vector.broadcast %383 : vector<1x256xf32> to vector<16x256xf32>
    %385 = arith.addf %381, %384 : vector<16x256xf32>
    %cst_148 = arith.constant 0.000000e+00 : f32
    %386 = vector.broadcast %cst_148 : f32 to vector<16x256xf32>
    %387 = arith.maximumf %385, %386 : vector<16x256xf32>
    %388 = arith.truncf %387 : vector<16x256xf32> to vector<16x256xbf16>
    %c0_149 = arith.constant 0 : index
    %c256_150 = arith.constant 256 : index
    %c0_151 = arith.constant 0 : index
    %389 = vector.load %arg12[%c0_149, %c256_150, %c0_151] : memref<1x512x128xbf16, #tpu.memory_space<vmem>>, vector<1x256x128xbf16>
    %390 = vector.shape_cast %389 : vector<1x256x128xbf16> to vector<256x128xbf16>
    %cst_152 = arith.constant dense<0.000000e+00> : vector<16x128xf32>
    %391 = tpu.matmul %388, %390, %cst_152 {dimension_numbers = #tpu.dot_dimension_numbers<[1], [0], [0], [1], [0, 0, 1, 1], [], []>} : vector<16x256xbf16>, vector<256x128xbf16>, vector<16x128xf32> -> vector<16x128xf32>
    %392 = arith.addf %378, %391 : vector<16x128xf32>
    %393 = arith.addf %332, %392 : vector<16x128xf32>
    %c0_153 = arith.constant 0 : index
    %c0_154 = arith.constant 0 : index
    %c0_155 = arith.constant 0 : index
    %394 = vector.load %arg13[%c0_153, %c0_154, %c0_155] : memref<1x1x128xf32, #tpu.memory_space<vmem>>, vector<1x1x128xf32>
    %395 = vector.shape_cast %394 : vector<1x1x128xf32> to vector<128xf32>
    %396 = vector.shape_cast %395 : vector<128xf32> to vector<1x128xf32>
    %397 = vector.broadcast %396 : vector<1x128xf32> to vector<16x128xf32>
    %398 = arith.addf %393, %397 : vector<16x128xf32>
    %c0_156 = arith.constant 0 : index
    %c0_157 = arith.constant 0 : index
    %399 = vector.load %arg17[%c0_156, %c0_157] : memref<16x128xf32, #tpu.memory_space<vmem>>, vector<16x128xf32>
    tpu.vector_store %arg17[%c0_156, %c0_157], %398 {strides = array<i32>} : memref<16x128xf32, #tpu.memory_space<vmem>>, vector<16x128xf32>,
    %c1_i32_158 = arith.constant 1 : i32
    %400 = arith.cmpi eq, %arg1, %c1_i32_158 : i32
    %401 = arith.extui %400 : i1 to i32
    %c0_i32_159 = arith.constant 0 : i32
    %402 = arith.cmpi ne, %401, %c0_i32_159 : i32
    scf.if %402 {
      %c0_160 = arith.constant 0 : index
      %c0_161 = arith.constant 0 : index
      %403 = vector.load %arg14[%c0_160, %c0_161] : memref<1x128xf32, #tpu.memory_space<vmem>>, vector<1x128xf32>
      %404 = vector.shape_cast %403 : vector<1x128xf32> to vector<128xf32>
      %c0_162 = arith.constant 0 : index
      %c0_163 = arith.constant 0 : index
      %405 = vector.load %arg15[%c0_162, %c0_163] : memref<1x128xf32, #tpu.memory_space<vmem>>, vector<1x128xf32>
      %406 = vector.shape_cast %405 : vector<1x128xf32> to vector<128xf32>
      %cst_164 = arith.constant dense<0.000000e+00> : vector<16xf32>
      %407 = vector.multi_reduction <add>, %398, %cst_164 [1] : vector<16x128xf32> to vector<16xf32>
      %408 = vector.shape_cast %407 : vector<16xf32> to vector<16x1xf32>
      %cst_165 = arith.constant 1.280000e+02 : f32
      %409 = vector.broadcast %cst_165 : f32 to vector<16x1xf32>
      %410 = arith.divf %408, %409 : vector<16x1xf32>
      %411 = vector.broadcast %410 : vector<16x1xf32> to vector<16x128xf32>
      %412 = arith.subf %398, %411 : vector<16x128xf32>
      %413 = arith.mulf %412, %412 : vector<16x128xf32>
      %cst_166 = arith.constant dense<0.000000e+00> : vector<16xf32>
      %414 = vector.multi_reduction <add>, %413, %cst_166 [1] : vector<16x128xf32> to vector<16xf32>
      %415 = vector.shape_cast %414 : vector<16xf32> to vector<16x1xf32>
      %cst_167 = arith.constant 1.280000e+02 : f32
      %416 = vector.broadcast %cst_167 : f32 to vector<16x1xf32>
      %417 = arith.divf %415, %416 : vector<16x1xf32>
      %418 = vector.broadcast %410 : vector<16x1xf32> to vector<16x128xf32>
      %419 = arith.subf %398, %418 : vector<16x128xf32>
      %cst_168 = arith.constant 9.99999974E-6 : f32
      %420 = vector.broadcast %cst_168 : f32 to vector<16x1xf32>
      %421 = arith.addf %417, %420 : vector<16x1xf32>
      %422 = math.rsqrt %421 : vector<16x1xf32>
      %423 = vector.broadcast %422 : vector<16x1xf32> to vector<16x128xf32>
      %424 = arith.mulf %419, %423 : vector<16x128xf32>
      %425 = vector.shape_cast %404 : vector<128xf32> to vector<1x128xf32>
      %426 = vector.broadcast %425 : vector<1x128xf32> to vector<16x128xf32>
      %427 = arith.mulf %424, %426 : vector<16x128xf32>
      %428 = vector.shape_cast %406 : vector<128xf32> to vector<1x128xf32>
      %429 = vector.broadcast %428 : vector<1x128xf32> to vector<16x128xf32>
      %430 = arith.addf %427, %429 : vector<16x128xf32>
      %431 = arith.truncf %430 : vector<16x128xf32> to vector<16x128xbf16>
      %c0_169 = arith.constant 0 : index
      %c0_170 = arith.constant 0 : index
      %c0_171 = arith.constant 0 : index
      %432 = vector.load %arg16[%c0_169, %c0_170, %c0_171] : memref<1x16x128xbf16, #tpu.memory_space<vmem>>, vector<1x16x128xbf16>
      %433 = vector.shape_cast %432 : vector<1x16x128xbf16> to vector<16x128xbf16>
      %434 = vector.shape_cast %431 : vector<16x128xbf16> to vector<1x16x128xbf16>
      tpu.vector_store %arg16[%c0_169, %c0_170, %c0_171], %434 {strides = array<i32>} : memref<1x16x128xbf16, #tpu.memory_space<vmem>>, vector<1x16x128xbf16>,
    } else {
    }
    return
  }
  func.func @transform_0(%arg0: i32, %arg1: i32) -> (i32, i32, i32) {
    %c0_i32 = arith.constant 0 : i32
    %c0_i32_0 = arith.constant 0 : i32
    %c0_i32_1 = arith.constant 0 : i32
    return %arg0, %c0_i32, %c0_i32_0 : i32, i32, i32
  }
  func.func @transform_1(%arg0: i32, %arg1: i32) -> (i32, i32, i32) {
    %c0_i32 = arith.constant 0 : i32
    %c0_i32_0 = arith.constant 0 : i32
    %c0_i32_1 = arith.constant 0 : i32
    return %arg1, %c0_i32, %c0_i32_0 : i32, i32, i32
  }
  func.func @transform_2(%arg0: i32, %arg1: i32) -> (i32, i32, i32) {
    %c0_i32 = arith.constant 0 : i32
    %c0_i32_0 = arith.constant 0 : i32
    %c0_i32_1 = arith.constant 0 : i32
    return %arg1, %c0_i32, %c0_i32_0 : i32, i32, i32
  }
  func.func @transform_3(%arg0: i32, %arg1: i32) -> (i32, i32, i32, i32) {
    %c0_i32 = arith.constant 0 : i32
    %c0_i32_0 = arith.constant 0 : i32
    %c0_i32_1 = arith.constant 0 : i32
    %c0_i32_2 = arith.constant 0 : i32
    return %arg1, %c0_i32, %c0_i32_0, %c0_i32_1 : i32, i32, i32, i32
  }
  func.func @transform_4(%arg0: i32, %arg1: i32) -> (i32, i32, i32, i32) {
    %c0_i32 = arith.constant 0 : i32
    %c0_i32_0 = arith.constant 0 : i32
    %c0_i32_1 = arith.constant 0 : i32
    %c0_i32_2 = arith.constant 0 : i32
    return %arg1, %c0_i32, %c0_i32_0, %c0_i32_1 : i32, i32, i32, i32
  }
  func.func @transform_5(%arg0: i32, %arg1: i32) -> (i32, i32, i32, i32) {
    %c0_i32 = arith.constant 0 : i32
    %c0_i32_0 = arith.constant 0 : i32
    %c0_i32_1 = arith.constant 0 : i32
    %c0_i32_2 = arith.constant 0 : i32
    return %arg1, %c0_i32, %c0_i32_0, %c0_i32_1 : i32, i32, i32, i32
  }
  func.func @transform_6(%arg0: i32, %arg1: i32) -> (i32, i32, i32) {
    %c0_i32 = arith.constant 0 : i32
    %c0_i32_0 = arith.constant 0 : i32
    %c0_i32_1 = arith.constant 0 : i32
    return %arg1, %c0_i32, %c0_i32_0 : i32, i32, i32
  }
  func.func @transform_7(%arg0: i32, %arg1: i32) -> (i32, i32, i32) {
    %c0_i32 = arith.constant 0 : i32
    %c0_i32_0 = arith.constant 0 : i32
    %c0_i32_1 = arith.constant 0 : i32
    return %arg1, %c0_i32, %c0_i32_0 : i32, i32, i32
  }
  func.func @transform_8(%arg0: i32, %arg1: i32) -> (i32, i32, i32) {
    %c0_i32 = arith.constant 0 : i32
    %c0_i32_0 = arith.constant 0 : i32
    %c0_i32_1 = arith.constant 0 : i32
    return %arg1, %c0_i32, %c0_i32_0 : i32, i32, i32
  }
  func.func @transform_9(%arg0: i32, %arg1: i32) -> (i32, i32, i32) {
    %c0_i32 = arith.constant 0 : i32
    %c0_i32_0 = arith.constant 0 : i32
    %c0_i32_1 = arith.constant 0 : i32
    return %arg1, %c0_i32, %c0_i32_0 : i32, i32, i32
  }
  func.func @transform_10(%arg0: i32, %arg1: i32) -> (i32, i32, i32) {
    %c0_i32 = arith.constant 0 : i32
    %c0_i32_0 = arith.constant 0 : i32
    %c0_i32_1 = arith.constant 0 : i32
    return %arg1, %c0_i32, %c0_i32_0 : i32, i32, i32
  }
  func.func @transform_11(%arg0: i32, %arg1: i32) -> (i32, i32, i32) {
    %c0_i32 = arith.constant 0 : i32
    %c0_i32_0 = arith.constant 0 : i32
    %c0_i32_1 = arith.constant 0 : i32
    return %arg1, %c0_i32, %c0_i32_0 : i32, i32, i32
  }
  func.func @transform_12(%arg0: i32, %arg1: i32) -> (i32, i32) {
    %c0_i32 = arith.constant 0 : i32
    %c0_i32_0 = arith.constant 0 : i32
    %c0_i32_1 = arith.constant 0 : i32
    return %c0_i32, %c0_i32_0 : i32, i32
  }
  func.func @transform_13(%arg0: i32, %arg1: i32) -> (i32, i32) {
    %c0_i32 = arith.constant 0 : i32
    %c0_i32_0 = arith.constant 0 : i32
    %c0_i32_1 = arith.constant 0 : i32
    return %c0_i32, %c0_i32_0 : i32, i32
  }
  func.func @transform_14(%arg0: i32, %arg1: i32) -> (i32, i32, i32) {
    %c0_i32 = arith.constant 0 : i32
    %c0_i32_0 = arith.constant 0 : i32
    %c0_i32_1 = arith.constant 0 : i32
    return %arg0, %c0_i32, %c0_i32_0 : i32, i32, i32
  }
}

</mosaic_0001>

<bundles_post_ra>
// kernel: transformer_lm_forward.3
= control target key start
LH: loop header
LB: loop body
LE: loop exit
PB: predicated region body
PF: predicated region fallthrough
CT: control target
= control target key end

     0   :  { %s463_s0 = inlined_call_operand.vmem [shape: bf16[32,128], index: 0, kind: input, shape index: {}]   ;;  %s464_s1 = inlined_call_operand.vmem [shape: bf16[128,256], index: 1, kind: input, shape index: {}]   ;;  %s465_s2 = inlined_call_operand.vmem [shape: f32[1,256], index: 2, kind: input, shape index: {}]   ;;  %s466_s3 = inlined_call_operand.hbm [shape: f32[32,256], index: 3, kind: output, shape index: {}]  }
   0x1   :  { %v263_v0 = vld [vmem:[%s464_s1 + $0x70] sm:$0xf]  ;;  %v286_v1 = vld [vmem:[%s464_s1 + $0x74] sm:$0xf0]  ;;  %v285_v2 = vld [vmem:[%s464_s1 + $0x74] sm:$0xf] }
   0x2   :  { %v264_v3 = vor.u32 %v286_v1, %v263_v0  ;;  %v265_v4 = vld [vmem:[%s464_s1 + $0x78] sm:$0xf0]  ;;  %v255_v5 = vld [vmem:[%s464_s1 + $0x60] sm:$0xf]  ;;  %v284_v6 = vld [vmem:[%s464_s1 + $0x64] sm:$0xf0] }
   0x3   :  { %v268_v7 = vor.u32 %v285_v2, %v265_v4  ;;  %v283_v8 = vld [vmem:[%s464_s1 + $0x64] sm:$0xf]  ;;  %v257_v9 = vld [vmem:[%s464_s1 + $0x68] sm:$0xf0]  ;;  %v256_v10 = vor.u32 %v284_v6, %v255_v5  ;;  %v247_v12 = vld [vmem:[%s464_s1 + $0x50] sm:$0xf] }
   0x4   :  { %133 = vmatpush.bf16.msra.mxu0 %v264_v3  ;;  %287 = vmatpush.bf16.msra.mxu2 %v264_v3  ;;  %v260_v11 = vor.u32 %v283_v8, %v257_v9  ;;  %v282_v13 = vld [vmem:[%s464_s1 + $0x54] sm:$0xf0]  ;;  %v281_v14 = vld [vmem:[%s464_s1 + $0x54] sm:$0xf]  ;;  %v249_v15 = vld [vmem:[%s464_s1 + $0x58] sm:$0xf0] }
   0x5   :  { %152 = vmatpush.bf16.msra.mxu1 %v268_v7  ;;  %295 = vmatpush.bf16.msra.mxu3 %v268_v7  ;;  %v248_v16 = vor.u32 %v282_v13, %v247_v12  ;;  %v252_v17 = vor.u32 %v281_v14, %v249_v15  ;;  %v239_v18 = vld [vmem:[%s464_s1 + $0x40] sm:$0xf]  ;;  %v280_v19 = vld [vmem:[%s464_s1 + $0x44] sm:$0xf0]  ;;  %v279_v20 = vld [vmem:[%s464_s1 + $0x44] sm:$0xf] }
   0x6   :  { %v241_v21 = vld [vmem:[%s464_s1 + $0x48] sm:$0xf0]  ;;  %v240_v22 = vor.u32 %v280_v19, %v239_v18 }
   0x8   :  { %134 = vmatpush.bf16.msra.mxu0 %v256_v10  ;;  %288 = vmatpush.bf16.msra.mxu2 %v256_v10 }
   0x9   :  { %153 = vmatpush.bf16.msra.mxu1 %v260_v11  ;;  %296 = vmatpush.bf16.msra.mxu3 %v260_v11 }
   0xc   :  { %135 = vmatpush.bf16.msra.mxu0 %v248_v16  ;;  %289 = vmatpush.bf16.msra.mxu2 %v248_v16 }
   0xd   :  { %8 = vsyncpa [#allocation3], 0  ;;  %154 = vmatpush.bf16.msra.mxu1 %v252_v17  ;;  %297 = vmatpush.bf16.msra.mxu3 %v252_v17  ;;  %v244_v23 = vor.u32 %v279_v20, %v241_v21  ;;  %v231_v24 = vld [vmem:[%s464_s1 + $0x30] sm:$0xf]  ;;  %v278_v25 = vld [vmem:[%s464_s1 + $0x34] sm:$0xf0] }
   0xe   :  { %v277_v26 = vld [vmem:[%s464_s1 + $0x34] sm:$0xf]  ;;  %v233_v27 = vld [vmem:[%s464_s1 + $0x38] sm:$0xf0]  ;;  %v232_v28 = vor.u32 %v278_v25, %v231_v24  ;;  %v223_v30 = vld [vmem:[%s464_s1 + $0x20] sm:$0xf] }
   0xf   :  { %v236_v29 = vor.u32 %v277_v26, %v233_v27  ;;  %v276_v31 = vld [vmem:[%s464_s1 + $0x24] sm:$0xf0]  ;;  %v275_v32 = vld [vmem:[%s464_s1 + $0x24] sm:$0xf]  ;;  %v225_v33 = vld [vmem:[%s464_s1 + $0x28] sm:$0xf0] }
  0x10   :  { %136 = vmatpush.bf16.msra.mxu0 %v240_v22  ;;  %290 = vmatpush.bf16.msra.mxu2 %v240_v22  ;;  %v224_v34 = vor.u32 %v276_v31, %v223_v30  ;;  %v228_v35 = vor.u32 %v275_v32, %v225_v33  ;;  %v215_v36 = vld [vmem:[%s464_s1 + $0x10] sm:$0xf]  ;;  %v274_v37 = vld [vmem:[%s464_s1 + $0x14] sm:$0xf0]  ;;  %v273_v38 = vld [vmem:[%s464_s1 + $0x14] sm:$0xf] }
  0x11   :  { %155 = vmatpush.bf16.msra.mxu1 %v244_v23  ;;  %298 = vmatpush.bf16.msra.mxu3 %v244_v23  ;;  %v217_v39 = vld [vmem:[%s464_s1 + $0x18] sm:$0xf0]  ;;  %v216_v40 = vor.u32 %v274_v37, %v215_v36  ;;  %v207_v42 = vld [vmem:[%s464_s1] sm:$0xf]  ;;  %v272_v43 = vld [vmem:[%s464_s1 + $0x4] sm:$0xf0] }
  0x12   :  { %v220_v41 = vor.u32 %v273_v38, %v217_v39  ;;  %v271_v44 = vld [vmem:[%s464_s1 + $0x4] sm:$0xf]  ;;  %v209_v45 = vld [vmem:[%s464_s1 + $0x8] sm:$0xf0]  ;;  %v208_v46 = vor.u32 %v272_v43, %v207_v42  ;;  %v35_v50 = vld [vmem:[%s465_s2] sm:$0x3] }
  0x13   :  { %v212_v47 = vor.u32 %v271_v44, %v209_v45  ;;  %v269_v48 = vld [vmem:[%s463_s0] sm:$0xff]  ;;  %v270_v49 = vld [vmem:[%s463_s0 + $0x8] sm:$0xff]  ;;  %v37_v51 = vperm.slane %v35_v50, 0  ;;  %v38_v52 = vperm.slane %v35_v50, 1  ;;  %s332_s0 = smov [#allocation2]   ;;  %s185_s29 = sshll.u32 %s466_s3, 4  ;;  %s186_s29 = int_to_ptr.hbm [resolvable:$true] %s185_s29 }
  0x14   :  { %137 = vmatpush.bf16.msra.mxu0 %v232_v28  ;;  %291 = vmatpush.bf16.msra.mxu2 %v232_v28  ;;  %s183_s2 = sshll.u32 %s332_s0, 4  ;;  %s333_s30 = smov 256   ;;  %s184_s2 = int_to_ptr.vmem [resolvable:$true] %s183_s2 }
  0x15   :  { %156 = vmatpush.bf16.msra.mxu1 %v236_v29  ;;  %299 = vmatpush.bf16.msra.mxu3 %v236_v29  ;;  %s334_s4 = smov 16  }
  0x18   :  { %138 = vmatpush.bf16.msra.mxu0 %v224_v34  ;;  %292 = vmatpush.bf16.msra.mxu2 %v224_v34 }
  0x19   :  { %157 = vmatpush.bf16.msra.mxu1 %v228_v35  ;;  %300 = vmatpush.bf16.msra.mxu3 %v228_v35 }
  0x1c   :  { %139 = vmatpush.bf16.msra.mxu0 %v216_v40  ;;  %293 = vmatpush.bf16.msra.mxu2 %v216_v40 }
  0x1d   :  { %158 = vmatpush.bf16.msra.mxu1 %v220_v41  ;;  %301 = vmatpush.bf16.msra.mxu3 %v220_v41 }
  0x20   :  { %140 = vmatpush.bf16.msra.mxu0 %v208_v46  ;;  %294 = vmatpush.bf16.msra.mxu2 %v208_v46 }
  0x21   :  { %159 = vmatpush.bf16.msra.mxu1 %v212_v47  ;;  %302 = vmatpush.bf16.msra.mxu3 %v212_v47 }
  0x23   :  { %141 = vmatmul.bf16.vlgmr.msra.gmra.mxu0 %v269_v48  ;;  %146 = vmatmul.bf16.vlgmr.msra.gmra.mxu2 %v270_v49 }
  0x24   :  { %160 = vmatmul.bf16.vlgmr.msra.gmra.mxu1 %v269_v48  ;;  %165 = vmatmul.bf16.vlgmr.msra.gmra.mxu3 %v270_v49 }
  0xa0   :  { %v142_v53 = vpop.f32.mrf.mxu0 }
  0xa1   :  { %v143_v54 = vadd.f32 %v142_v53, %v37_v51  ;;  %v161_v55 = vpop.f32.mrf.mxu1 }
  0xa2   :  { %v162_v56 = vadd.f32 %v161_v55, %v38_v52 }
  0xa3   :  { %171 = vst [vmem:[#allocation2] sm:$0xff] %v143_v54 }
  0xa4   :  { %172 = vst [vmem:[#allocation2 + $0x8] sm:$0xff] %v162_v56 }
  0xa6   :  { %v147_v57 = vpop.f32.mrf.mxu2 }
  0xa7   :  { %v148_v58 = vadd.f32 %v147_v57, %v37_v51  ;;  %v166_v59 = vpop.f32.mrf.mxu3 }
  0xa8   :  { %v167_v60 = vadd.f32 %v166_v59, %v38_v52  ;;  %v144_v61 = vpop.f32.mrf.mxu0 }
  0xa9   :  { %175 = vst [vmem:[#allocation2 + $0x20] sm:$0xff] %v148_v58  ;;  %v145_v62 = vadd.f32 %v144_v61, %v37_v51  ;;  %v163_v63 = vpop.f32.mrf.mxu1 }
  0xaa   :  { %176 = vst [vmem:[#allocation2 + $0x28] sm:$0xff] %v167_v60  ;;  %v164_v0 = vadd.f32 %v163_v63, %v38_v52 }
  0xab   :  { %173 = vst [vmem:[#allocation2 + $0x10] sm:$0xff] %v145_v62 }
  0xac   :  { %174 = vst [vmem:[#allocation2 + $0x18] sm:$0xff] %v164_v0 }
  0xae   :  { %v149_v1 = vpop.f32.mrf.mxu2 }
  0xaf   :  { %v150_v2 = vadd.f32 %v149_v1, %v37_v51  ;;  %v168_v3 = vpop.f32.mrf.mxu3 }
  0xb0   :  { %v169_v4 = vadd.f32 %v168_v3, %v38_v52 }
  0xb1   :  { %177 = vst [vmem:[#allocation2 + $0x30] sm:$0xff] %v150_v2 }
  0xb2   :  { %178 = vst [vmem:[#allocation2 + $0x38] sm:$0xff] %v169_v4 }
  0xb3   :  { %191 = dma.vmem_to_hbm [thread:$0]  %s184_s2, 1024, %s186_s29, [#allocation3], %s333_s30, %s333_s30, %s334_s4  }
  0xb4   :  { %330 = dma.done.wait [#allocation3], 1024  }
  0xb5   :  { %331 = vsyncadd [#allocation3], 4294966272 }
  0xb6   :  { %196 = vsyncpa [#allocation3], 1 }

// kernel: transformer_lm_forward.2
= control target key start
LH: loop header
LB: loop body
LE: loop exit
PB: predicated region body
PF: predicated region fallthrough
CT: control target
= control target key end

     0   :  { %s5338_s0 = inlined_call_operand.vmem [shape: f32[2,16,128], index: 0, kind: input, shape index: {}]   ;;  %s5339_s1 = inlined_call_operand.vmem [shape: f32[2,1,128], index: 1, kind: input, shape index: {}]   ;;  %s5340_s2 = inlined_call_operand.vmem [shape: f32[2,1,128], index: 2, kind: input, shape index: {}]   ;;  %s5341_s3 = inlined_call_operand.vmem [shape: bf16[2,4,128,32], index: 3, kind: input, shape index: {}]   ;;  %s5342_s4 = inlined_call_operand.vmem [shape: bf16[2,4,128,32], index: 4, kind: input, shape index: {}]   ;;  %s5343_s5 = inlined_call_operand.vmem [shape: bf16[2,4,128,128], index: 5, kind: input, shape index: {}]   ;;  %s5344_s6 = inlined_call_operand.vmem [shape: f32[2,1,128], index: 6, kind: input, shape index: {}]   ;;  %s5345_s7 = inlined_call_operand.vmem [shape: f32[2,1,128], index: 7, kind: input, shape index: {}]   ;;  %s5346_s8 = inlined_call_operand.vmem [shape: bf16[2,128,512], index: 8, kind: input, shape index: {}]   ;;  %s5347_s9 = inlined_call_operand.vmem [shape: f32[2,1,512], index: 9, kind: input, shape index: {}]   ;;  %s5348_s10 = inlined_call_operand.hbm [shape: bf16[2,512,128], index: 10, kind: input, shape index: {}]   ;;  %s5349_s11 = inlined_call_operand.vmem [shape: f32[2,1,128], index: 11, kind: input, shape index: {}]   ;;  %s5350_s12 = inlined_call_operand.vmem [shape: f32[1,128], index: 12, kind: input, shape index: {}]   ;;  %s5351_s13 = inlined_call_operand.vmem [shape: f32[1,128], index: 13, kind: input, shape index: {}]   ;;  %s5352_s14 = inlined_call_operand.vmem [shape: bf16[2,16,128], index: 14, kind: output, shape index: {}]  }
   0x1   :  { %5360 = sst [smem:[#allocation15_spill]] %s5338_s0 }
   0x2   :  { %5361 = sst [smem:[#allocation16_spill]] %s5341_s3 }
   0x3   :  { %5362 = sst [smem:[#allocation17_spill]] %s5342_s4 }
   0x4   :  { %5363 = sst [smem:[#allocation18_spill]] %s5343_s5 }
   0x5   :  { %5364 = sst [smem:[#allocation19_spill]] %s5347_s9 }
   0x6   :  { %5365 = sst [smem:[#allocation20_spill]] %s5348_s10 }
   0x7   :  { %5366 = sst [smem:[#allocation21_spill]] %s5349_s11 }
   0x8   :  { %5367 = sst [smem:[#allocation22_spill]] %s5350_s12 }
   0x9   :  { %5368 = sst [smem:[#allocation23_spill]] %s5351_s13 }
   0xa   :  { %5369 = sst [smem:[#allocation24_spill]] %s5352_s14 }
   0xb   :  { %19 = vsyncpa [#allocation4], 0 }
   0xc   :  { %21 = vsyncpa [#allocation4 + $0x1], 0  ;;  %s4606_s29 = smov 0   ;;  %s4608_s30 = smov 0  }
   0xd   :  { %s4610_s15 = smov 0   ;;  %s4612_s16 = smov 0  }
   0xe   :  { %s4614_s17 = smov 0   ;;  %s4616_s18 = smov 0  }
   0xf   :  { %s4618_s19 = smov 0   ;;  %s4620_s20 = smov 0  }
  0x10 LB: > { %5370 = sst [smem:[#allocation6_spill]] %s4501_s30  ;;  %s3253_s21 = sadd.s32 4294967295, %s4525_s20   ;;  %s4525_s20 = sphi %s4620_s20, %s27_s20   ;;  %s4521_s19 = sphi %s4618_s19, %s5403_s19   ;;  %s4517_s18 = sphi %s4616_s18, %s5402_s18   ;;  %s4513_s17 = sphi %s4614_s17, %s5401_s17   ;;  %s4509_s16 = sphi %s4612_s16, %s5400_s16   ;;  %s4505_s15 = sphi %s4610_s15, %s5399_s15   ;;  %s4501_s30 = sphi %s4608_s30, %s5398_s30   ;;  %s4497_s29 = sphi %s4606_s29, %s5397_s29  }
  0x11   : > { %5371 = sst [smem:[#allocation7_spill]] %s4505_s15  ;;  %s36_s22 = sadd.s32 1, %s4517_s18 }
  0x12   : > { %5372 = sst [smem:[#allocation8_spill]] %s4517_s18  ;;  %p37_p0 = scmp.ge.s32.totalorder %s36_s22, 2 }
  0x13   : > { %5373 = sst [smem:[#allocation9_spill]] %s4521_s19  ;;  %s39_s23 = sadd.s32 1, %s4521_s19 }
  0x14   : > { %5374 = sst [smem:[#allocation10_spill]] %s4525_s20  ;;  %s306_s24 = sadd.s32 1, %s4505_s15 }
  0x15   : > { %p313_p1 = scmp.ne.s32.totalorder %s4505_s15, %s4501_s30  ;;  %s5405_s22 = smov (%p37_p0, %s36_s22), 0 }
  0x16   : > { %5375 = sst [smem:[#allocation11_spill]] %s5405_s22  ;;  %s5407_s23 = smov (!%p37_p0, %s39_s23), %s4521_s19 }
  0x17   : > { %s303_s25 = ssub.s32 %s4517_s18, %s5405_s22  ;;  %p314_p2 = scmp.eq.s32.totalorder %s4525_s20, 0 }
  0x18   : > { %p41_p3 = scmp.ge.s32.totalorder %s5407_s23, 2  ;;  %p304_p4 = scmp.eq.s32.totalorder %s303_s25, 0 }
  0x19   : > { %p4656_p5 = por %p314_p2, %p313_p1  ;;  %p319_p6 = scmp.ne.s32.totalorder %s4501_s30, %s4497_s29 }
  0x1a   : > { %s5409_s23 = smov (%p41_p3, %s5407_s23), 0  ;;  %p320_p7 = scmp.eq.s32.totalorder %s3253_s21, 0 }
  0x1b   : > { %5377 = sst [smem:[#allocation12_spill]] %s5409_s23  ;;  %p4257_p8 = scmp.lt.s32.totalorder %s4525_s20, 4 }
  0x1c   : > { %s4664_s27 = scalar_select %p304_p4, %s4505_s15, %s306_s24  }
  0x1d   : > { %s514_s28 = sand.u32 1, %s4505_s15   ;;  %p4668_p9 = por %p320_p7, %p319_p6 }
  0x1e   : > { %5378 = sst [smem:[#allocation13_spill]] %s4664_s27  ;;  %s3257_s25 = sshll.u32 %s514_s28, 8 }
  0x1f   : > { %s4079_s19 = sshll.u32 %s4517_s18, 8  ;;  %s5380_s10 = sld [smem:[#allocation20_spill]] }
  0x20   : > { %s518_s9 = scalar_lea.vmem [#allocation3], %s3257_s25  ;;  %p4254_p10 = pnand %p4257_p8, %p4656_p5 }
  0x21   : > { %s526_s11 = sshll.u32 %s518_s9, 4  ;;  %p3260_p11 = scmp.ge.s32.totalorder %s4525_s20, 1  ;;  %s527_s11 = int_to_ptr.vmem [resolvable:$true] %s526_s11 }
  0x22   : > { %p540_p12 = scmp.lt.s32.totalorder %s4525_s20, 5  ;;  %s515_s21 = scalar_lea.sflag [#allocation4], %s514_s28 }
  0x23   : > { %s4527_s24 = smov 64   ;;  %s4528_s23 = smov 4  }
  0x24   : > { %p541_p13 = pnand %p3260_p11, %p540_p12 }
  0x25   : > { %s523_s14 = scalar_lea.hbm %s5380_s10, %s4079_s19 }
  0x26   : > { %s524_s29 = sshll.u32 %s523_s14, 4  ;;  %544 = sbr.rel (%p541_p13) target bundleno = 3170 (0xc62), region = 76  ;;  %s525_s29 = int_to_ptr.hbm [resolvable:$true] %s524_s29 }
  0x27   : > { %4256 = dma.hbm_to_vmem [thread:$0]  (!%p4254_p10), %s525_s29, 4096, %s527_s11, %s515_s21, %s4527_s24, %s4527_s24, %s4528_s23  }
  0x2b   : > { %s546_s18 = sand.u32 1, %s4501_s30  }
  0x2c   : > { %s3261_s12 = sshll.u32 %s546_s18, 8  ;;  %s547_s13 = scalar_lea.sflag [#allocation4], %s546_s18 }
  0x2d   : > { %s4681_s14 = scalar_lea.vmem [#allocation3], %s3261_s12 }
  0x2e   : > { %5381 = sst [smem:[#allocation14_spill]] %s4681_s14 }
  0x2f   : > { %4492 = dma.done.wait (%p4668_p9), %s547_s13, 4096  }
  0x30   : > { %4494 = vsyncadd (%p4668_p9), %s547_s13, 4294963200  ;;  %p640_p0 = scmp.lt.s32.totalorder %s4513_s17, 1  ;;  %p645_p1 = scmp.lt.s32.totalorder %s4509_s16, 1 }
  0x31   : > { %s5382_s0 = sld [smem:[#allocation15_spill]]  ;;  %p3275_p2 = scmp.ne.s32.totalorder %s4509_s16, 0 }
  0x32   : > { %s5411_s17 = smov (!%p640_p0, %s4513_s17), 1  ;;  %s5383_s3 = sld [smem:[#allocation16_spill]] }
  0x33   : > { %s4691_s9 = scalar_select %p645_p1, %s4509_s16, 1 }
  0x34   : > { %s4080_s11 = sshll.u32 %s5411_s17, 4  ;;  %s4085_s18 = sshll.u32 %s5411_s17, 3 }
  0x35   : > { %s4081_s12 = sshll.u32 %s4691_s9, 8  ;;  %s5384_s4 = sld [smem:[#allocation17_spill]] }
  0x36   : > { %s5385_s5 = sld [smem:[#allocation18_spill]]  ;;  %s671_s10 = scalar_lea.vmem %s5345_s7, %s4691_s9 }
  0x37   : > { %s644_s23 = scalar_lea.vmem %s5382_s0, %s4080_s11  ;;  %s4731_s0 = scalar_lea.vmem %s5346_s8, %s4081_s12 }
  0x38   : > { %s4708_s27 = scalar_lea.vmem %s5383_s3, %s4081_s12  ;;  %s3272_s15 = sshll.u32 %s4691_s9, 2 }
  0x39   : > { %s5387_s20 = sld [smem:[#allocation19_spill]] }
  0x3a   : > { %s5388_s29 = sld [smem:[#allocation24_spill]] }
  0x3b   : > { %s4713_s30 = scalar_lea.vmem %s5384_s4, %s4081_s12  ;;  %s5386_s4 = sld [smem:[#allocation21_spill]] }
  0x3c   : > { %s4718_s22 = scalar_lea.vmem %s5385_s5, %s4081_s12 }
  0x3d   : > { %693 = sbr.rel (%p3275_p2) target bundleno = 69 (0x45), region = 84 }
  0x3f   : > { %s4741_s14 = scalar_lea.vmem %s5387_s20, %s3272_s15 }
  0x40   : > { %s4746_s24 = scalar_lea.vmem %s5388_s29, %s4085_s18 }
  0x41   : > { %s683_s11 = scalar_lea.vmem %s5386_s4, %s4691_s9 }
  0x42   : > { %v694_v0 = vld [vmem:[%s644_s23] sm:$0xff]  ;;  %v695_v1 = vld [vmem:[%s644_s23 + $0x8] sm:$0xff] }
  0x43   : > { %696 = vst [vmem:[#allocation2] sm:$0xff] %v694_v0 }
  0x44   : > { %697 = vst [vmem:[#allocation2 + $0x8] sm:$0xff] %v695_v1 }
  0x45 PF: > { %v4529_v4 = vmov 128.0   ;;  %v4101_v7 = vld [vmem:[%s4713_s30 + $0x38] sm:$0xff]  ;;  %v4100_v9 = vld [vmem:[%s4713_s30 + $0x30] sm:$0xff]  ;;  %v4099_v23 = vld [vmem:[%s4713_s30 + $0x28] sm:$0xff]  ;;  %s5389_s5 = scalar_lea.vmem %s5339_s1, %s4691_s9  ;;  %s5390_s23 = scalar_lea.vmem %s5340_s2, %s4691_s9  ;;  %vm1002_vm7 = vcmask 261120   ;;  %vm1060_vm8 = vcmask 1043456  }
  0x46   : > { %4331 = vrcp.f32 %v4529_v4  ;;  %v4109_v8 = vld [vmem:[%s4718_s22 + $0x38] sm:$0xff]  ;;  %908 = vmatpush.bf16.msra.mxu1 %v4101_v7  ;;  %v4108_v10 = vld [vmem:[%s4718_s22 + $0x30] sm:$0xff]  ;;  %v4107_v24 = vld [vmem:[%s4718_s22 + $0x28] sm:$0xff]  ;;  %vm1027_vm9 = vcmask 64512   ;;  %s5392_s25 = scalar_lea.vmem %s5344_s6, %s4691_s9  ;;  %p4076_p3 = scmp.ne.s32.totalorder %s4509_s16, 1 }
  0x47   : > { %986 = vmatpush.bf16.msra.mxu2 %v4109_v8  ;;  %v4098_v25 = vld [vmem:[%s4713_s30 + $0x20] sm:$0xff]  ;;  %v4093_v27 = vld [vmem:[%s4708_s27 + $0x38] sm:$0xff]  ;;  %v4092_v30 = vld [vmem:[%s4708_s27 + $0x30] sm:$0xff]  ;;  %s5395_s17 = sld [smem:[#allocation23_spill]] (!%p4076_p3) }
  0x48   : > { %v4106_v26 = vld [vmem:[%s4718_s22 + $0x20] sm:$0xff]  ;;  %829 = vmatpush.bf16.msra.mxu0 %v4093_v27  ;;  %v4097_v28 = vld [vmem:[%s4713_s30 + $0x18] sm:$0xff]  ;;  %v4096_v31 = vld [vmem:[%s4713_s30 + $0x10] sm:$0xff] }
  0x49   : > { %v4105_v29 = vld [vmem:[%s4718_s22 + $0x18] sm:$0xff]  ;;  %v4104_v32 = vld [vmem:[%s4718_s22 + $0x10] sm:$0xff]  ;;  %v4091_v33 = vld [vmem:[%s4708_s27 + $0x28] sm:$0xff] }
  0x4a   : > { %v698_v2 = vld [vmem:[#allocation2] sm:$0xff]  ;;  %909 = vmatpush.bf16.msra.mxu1 %v4100_v9  ;;  %v4095_v34 = vld [vmem:[%s4713_s30 + $0x8] sm:$0xff]  ;;  %v4089_v39 = vld [vmem:[%s4708_s27 + $0x18] sm:$0xff] }
  0x4b   : > { %702 = vadd.xlane.f32.xlu0 %v698_v2  ;;  %v699_v3 = vld [vmem:[#allocation2 + $0x8] sm:$0xff]  ;;  %987 = vmatpush.bf16.msra.mxu2 %v4108_v10  ;;  %v4090_v36 = vld [vmem:[%s4708_s27 + $0x20] sm:$0xff]  ;;  %v4117_v40 = vld [vmem:[%s4708_s27 + $0x78] sm:$0xff] }
  0x4c   : > { %v4332_v5 = vpop.eup %4331  ;;  %830 = vmatpush.bf16.msra.mxu0 %v4092_v30  ;;  %v4103_v35 = vld [vmem:[%s4718_s22 + $0x8] sm:$0xff]  ;;  %v4094_v37 = vld [vmem:[%s4713_s30] sm:$0xff]  ;;  %v4125_v41 = vld [vmem:[%s4713_s30 + $0x78] sm:$0xff] }
  0x4d   : > { %v707_v6 = vmul.f32 128.0, %v4332_v5  ;;  %vm711_vm0 = vweird.f32 %v4332_v5  ;;  %v4102_v38 = vld [vmem:[%s4718_s22] sm:$0xff]  ;;  %v4088_v42 = vld [vmem:[%s4708_s27 + $0x10] sm:$0xff]  ;;  %v4087_v45 = vld [vmem:[%s4708_s27 + $0x8] sm:$0xff] }
  0x4e   : > { %910 = vmatpush.bf16.msra.mxu1 %v4099_v23  ;;  %v4116_v43 = vld [vmem:[%s4708_s27 + $0x70] sm:$0xff]  ;;  %v4115_v46 = vld [vmem:[%s4708_s27 + $0x68] sm:$0xff]  ;;  %v4086_v50 = vld [vmem:[%s4708_s27] sm:$0xff] }
  0x4f   : > { %v708_v11 = vsub.f32 1.0, %v707_v6  ;;  %988 = vmatpush.bf16.msra.mxu2 %v4107_v24  ;;  %v4124_v44 = vld [vmem:[%s4713_s30 + $0x70] sm:$0xff]  ;;  %v4123_v47 = vld [vmem:[%s4713_s30 + $0x68] sm:$0xff]  ;;  %v4114_v51 = vld [vmem:[%s4708_s27 + $0x60] sm:$0xff] }
  0x50   : > { %831 = vmatpush.bf16.msra.mxu0 %v4091_v33  ;;  %v4122_v52 = vld [vmem:[%s4713_s30 + $0x60] sm:$0xff]  ;;  %v4113_v54 = vld [vmem:[%s4708_s27 + $0x58] sm:$0xff]  ;;  %v4112_v58 = vld [vmem:[%s4708_s27 + $0x50] sm:$0xff] }
  0x51   : > { %v709_v12 = vmul.f32 %v4332_v5, %v708_v11  ;;  %v4121_v55 = vld [vmem:[%s4713_s30 + $0x58] sm:$0xff]  ;;  %v4120_v59 = vld [vmem:[%s4713_s30 + $0x50] sm:$0xff]  ;;  %v4111_v63 = vld [vmem:[%s4708_s27 + $0x48] sm:$0xff] }
  0x52   : > { %911 = vmatpush.bf16.msra.mxu1 %v4098_v25  ;;  %v4119_v0 = vld [vmem:[%s4713_s30 + $0x48] sm:$0xff]  ;;  %v4118_v4 = vld [vmem:[%s4713_s30 + $0x40] sm:$0xff] }
  0x53   : > { %704 = vadd.xlane.f32.xlu0 %v699_v3  ;;  %v710_v13 = vadd.f32 %v4332_v5, %v709_v12  ;;  %989 = vmatpush.bf16.msra.mxu2 %v4106_v26 }
  0x54   : > { %832 = vmatpush.bf16.msra.mxu0 %v4090_v36 }
  0x55   : > { %v4753_v14 = vsel %vm711_vm0, %v4332_v5, %v710_v13  ;;  %v4326_v13 = vld [vmem:[%s5389_s5] ss:$0 sm:$0xff] }
  0x56   : > { %912 = vmatpush.bf16.msra.mxu1 %v4097_v28 }
  0x57   : > { %990 = vmatpush.bf16.msra.mxu2 %v4105_v29 }
  0x58   : > { %833 = vmatpush.bf16.msra.mxu0 %v4089_v39 }
  0x5a   : > { %913 = vmatpush.bf16.msra.mxu1 %v4096_v31 }
  0x5b   : > { %991 = vmatpush.bf16.msra.mxu2 %v4104_v32 }
  0x5c   : > { %834 = vmatpush.bf16.msra.mxu0 %v4088_v42 }
  0x5e   : > { %914 = vmatpush.bf16.msra.mxu1 %v4095_v34 }
  0x5f   : > { %992 = vmatpush.bf16.msra.mxu2 %v4103_v35 }
  0x60   : > { %835 = vmatpush.bf16.msra.mxu0 %v4087_v45 }
  0x62   : > { %915 = vmatpush.bf16.msra.mxu1 %v4094_v37 }
  0x63   : > { %993 = vmatpush.bf16.msra.mxu2 %v4102_v38 }
  0x64   : > { %836 = vmatpush.bf16.msra.mxu0 %v4086_v50 }
  0x66   : > { %1230 = vmatpush.bf16.msrb.mxu1 %v4117_v40 }
  0x67   : > { %1310 = vmatpush.bf16.msrb.mxu2 %v4125_v41 }
  0x6a   : > { %1231 = vmatpush.bf16.msrb.mxu1 %v4116_v43 }
  0x6b   : > { %1311 = vmatpush.bf16.msrb.mxu2 %v4124_v44 }
  0x6e   : > { %1232 = vmatpush.bf16.msrb.mxu1 %v4115_v46  ;;  %v4157_v46 = vld [vmem:[%s4718_s22 + $0xb8] sm:$0xff] }
  0x6f   : > { %1312 = vmatpush.bf16.msrb.mxu2 %v4123_v47 }
  0x72   : > { %1233 = vmatpush.bf16.msrb.mxu1 %v4114_v51  ;;  %v4155_v51 = vld [vmem:[%s4718_s22 + $0xa8] sm:$0xff] }
  0x73   : > { %1313 = vmatpush.bf16.msrb.mxu2 %v4122_v52  ;;  %v4154_v52 = vld [vmem:[%s4718_s22 + $0xa0] sm:$0xff] }
  0x76   : > { %1234 = vmatpush.bf16.msrb.mxu1 %v4113_v54  ;;  %v4152_v54 = vld [vmem:[%s4718_s22 + $0x90] sm:$0xff] }
  0x77   : > { %1314 = vmatpush.bf16.msrb.mxu2 %v4121_v55  ;;  %v4151_v55 = vld [vmem:[%s4718_s22 + $0x88] sm:$0xff] }
  0x7a   : > { %1235 = vmatpush.bf16.msrb.mxu1 %v4112_v58  ;;  %v4164_v58 = vld [vmem:[%s4708_s27 + $0xf0] sm:$0xff] }
  0x7b   : > { %1315 = vmatpush.bf16.msrb.mxu2 %v4120_v59  ;;  %v4163_v59 = vld [vmem:[%s4708_s27 + $0xe8] sm:$0xff] }
  0x7e   : > { %1236 = vmatpush.bf16.msrb.mxu1 %v4111_v63  ;;  %v4159_v63 = vld [vmem:[%s4708_s27 + $0xc8] sm:$0xff] }
  0x7f   : > { %1316 = vmatpush.bf16.msrb.mxu2 %v4119_v0  ;;  %v4158_v0 = vld [vmem:[%s4708_s27 + $0xc0] sm:$0xff] }
  0x83   : > { %1317 = vmatpush.bf16.msrb.mxu2 %v4118_v4 }
  0xbe   : > { %v703_v15 = vpop.xlane.xlu0 %702 }
  0xbf   : > { %v713_v16 = vmul.f32 %v4753_v14, %v703_v15 }
  0xc1   : > { %v4756_v17 = vsub.f32 %v698_v2, %v713_v16 }
  0xc3   : > { %v717_v18 = vmul.f32 %v4756_v17, %v4756_v17 }
  0xc5   : > { %719 = vadd.xlane.f32.xlu1 %v717_v18 }
  0xc6   : > { %v705_v19 = vpop.xlane.xlu0 %704 }
  0xc7   : > { %v714_v20 = vmul.f32 %v4753_v14, %v705_v19  ;;  %v4327_v19 = vld [vmem:[%s5390_s23] ss:$0 sm:$0xff] }
  0xc9   : > { %v4761_v21 = vsub.f32 %v699_v3, %v714_v20  ;;  %v4110_v3 = vld [vmem:[%s4708_s27 + $0x40] sm:$0xff] }
  0xca   : > { %1237 = vmatpush.bf16.msrb.mxu1 %v4110_v3  ;;  %v760_v3 = vlaneseq }
  0xcb   : > { %v718_v22 = vmul.f32 %v4761_v21, %v4761_v21 }
  0xcc   : > { %v4858_v4 = vshrl.u32 %v760_v3, 7 }
  0xcd   : > { %721 = vadd.xlane.f32.xlu1 %v718_v22 }
 0x138   : > { %v720_v48 = vpop.xlane.xlu1 %719 }
 0x139   : > { %v723_v49 = vmul.f32 %v720_v48, %v4753_v14  ;;  %v4156_v48 = vld [vmem:[%s4718_s22 + $0xb0] sm:$0xff] }
 0x13b   : > { %v725_v53 = vadd.f32 1e-05, %v723_v49 }
 0x13d   : > { %4333 = vrsqrt.f32 %v725_v53  ;;  %vm733_vm2 = vweird.f32 %v725_v53 }
 0x140   : > { %v722_v56 = vpop.xlane.xlu1 %721 }
 0x141   : > { %v724_v57 = vmul.f32 %v722_v56, %v4753_v14  ;;  %v4150_v56 = vld [vmem:[%s4718_s22 + $0x80] sm:$0xff] }
 0x143   : > { %v4334_v60 = vpop.eup %4333  ;;  %v726_v61 = vadd.f32 1e-05, %v724_v57  ;;  %v4165_v57 = vld [vmem:[%s4708_s27 + $0xf8] sm:$0xff] }
 0x144   : > { %v728_v62 = vmul.f32 %v4334_v60, %v725_v53  ;;  %vm734_vm1 = vweird.f32 %v4334_v60  ;;  %v4153_v53 = vld [vmem:[%s4718_s22 + $0x98] sm:$0xff] }
 0x145   : > { %4335 = vrsqrt.f32 %v726_v61  ;;  %vm735_vm3 = vmor %vm733_vm2, %vm734_vm1  ;;  %vm743_vm5 = vweird.f32 %v726_v61 }
 0x146   : > { %v729_v1 = vmul.f32 %v4334_v60, %v728_v62  ;;  %v4160_v62 = vld [vmem:[%s4708_s27 + $0xd0] sm:$0xff] }
 0x148   : > { %v730_v2 = vmul.f32 0.5, %v729_v1  ;;  %v4530_v1 = vmov -inf  }
 0x14a   : > { %v731_v5 = vsub.f32 1.5, %v730_v2  ;;  %v4855_v2 = vsel %vm1027_vm9, -1e+30, %v4530_v1 }
 0x14b   : > { %v4336_v6 = vpop.eup %4335  ;;  %1105 = vmax.xlane.f32.xlu0 %v4855_v2 }
 0x14c   : > { %v732_v7 = vmul.f32 %v4334_v60, %v731_v5  ;;  %v738_v8 = vmul.f32 %v4336_v6, %v726_v61  ;;  %vm744_vm4 = vweird.f32 %v4336_v6  ;;  %v4161_v61 = vld [vmem:[%s4708_s27 + $0xd8] sm:$0xff]  ;;  %v4860_v5 = vand.u32 127, %v760_v3 }
 0x14d   : > { %vm745_vm6 = vmor %vm743_vm5, %vm744_vm4 }
 0x14e   : > { %v739_v9 = vmul.f32 %v4336_v6, %v738_v8  ;;  %v736_v10 = vsel %vm735_vm3, %v4334_v60, %v732_v7  ;;  %v4162_v60 = vld [vmem:[%s4708_s27 + $0xe0] sm:$0xff]  ;;  %v4866_v7 = vadd.s32 8, %v4860_v5  ;;  %vm1023_vm11 = vcmp.le.s32.totalorder %v4860_v5, %v4858_v4 }
 0x14f   : > { %v747_v15 = vmul.f32 %v736_v10, %v4756_v17 }
 0x150   : > { %v740_v11 = vmul.f32 0.5, %v739_v9 }
 0x151   : > { %v752_v20 = vmul.f32 %v4326_v13, %v747_v15 }
 0x152   : > { %v741_v12 = vsub.f32 1.5, %v740_v11 }
 0x153   : > { %v757_v24 = vadd.f32 %v4327_v19, %v752_v20 }
 0x154   : > { %v742_v16 = vmul.f32 %v4336_v6, %v741_v12 }
 0x156   : > { %v746_v18 = vsel %vm745_vm6, %v4336_v6, %v742_v16  ;;  %v4863_v6 = vadd.s32 8, %v4858_v4 }
 0x157   : > { %v748_v22 = vmul.f32 %v746_v18, %v4761_v21 }
 0x158   : > { %vm1101_vm10 = vcmp.le.s32.totalorder %v4866_v7, %v4863_v6  ;;  %vm1024_vm12 = vcmp.le.s32.totalorder %v4860_v5, %v4863_v6 }
 0x159   : > { %v753_v23 = vmul.f32 %v4326_v13, %v748_v22 }
 0x15b   : > { %v758_v25 = vadd.f32 %v4327_v19, %v753_v23 }
 0x15d   : > { %v4815_v26 = vpack.c.bf16 %v758_v25, %v757_v24 }
 0x15f   : > { %837 = vmatmul.bf16.vlgmr.msra.gmra.mxu0 %v4815_v26  ;;  %916 = vmatmul.bf16.vlgmr.msra.gmra.mxu1 %v4815_v26 }
 0x160   : > { %994 = vmatmul.bf16.vlgmr.msra.gmra.mxu2 %v4815_v26 }
 0x16f   : > { %1238 = vmatmul.bf16.vlgmr.msrb.gmra.mxu1 %v4815_v26 }
 0x170   : > { %1318 = vmatmul.bf16.vlgmr.msrb.gmra.mxu2 %v4815_v26 }
 0x1be   : > { %v1106_v16 = vpop.xlane.xlu0 %1105 }
 0x1dc   : > { %v838_v17 = vpop.f32.mrf.mxu0  ;;  %v917_v27 = vpop.f32.mrf.mxu1 }
 0x1dd   : > { %v1000_v28 = vpack.c.bf16 %v917_v27, %v917_v27 }
 0x1df   : > { %v1007_v21 = vsel %vm1002_vm7, %v1000_v28, 0 }
 0x1e0   : > { %1016 = vmatpush.bf16.xpose.msra.mxu3 %v1007_v21  ;;  %v4133_v21 = vld [vmem:[%s4718_s22 + $0x78] sm:$0xff] }
 0x1e3   : > { %v995_v29 = vpop.f32.mrf.mxu2 }
 0x1e4   : > { %v1001_v30 = vpack.c.bf16 %v995_v29, %v995_v29  ;;  %v840_v31 = vpop.f32.mrf.mxu0  ;;  %v919_v32 = vpop.f32.mrf.mxu1 }
 0x1e5   : > { %v4823_v33 = vpack.c.bf16 %v840_v31, %v838_v17  ;;  %v1080_v34 = vpack.c.bf16 %v919_v32, %v919_v32  ;;  %v4131_v31 = vld [vmem:[%s4718_s22 + $0x68] sm:$0xff]  ;;  %v4130_v32 = vld [vmem:[%s4718_s22 + $0x60] sm:$0xff] }
 0x1e6   : > { %v1062_v35 = vsel %vm1060_vm8, %v1001_v30, 0  ;;  %v4132_v30 = vld [vmem:[%s4718_s22 + $0x70] sm:$0xff] }
 0x1e7   : > { %v1083_v36 = vsel %vm1002_vm7, %v1080_v34, 0  ;;  %3372 = vmatmul.msk.bf16.vlgmr.msra.gmra.mxu3 %vm1002_vm7, %v4823_v33  ;;  %v4129_v34 = vld [vmem:[%s4718_s22 + $0x58] sm:$0xff] }
 0x1e8   : > { %1071 = vmatpush.bf16.msrb.mxu3 %v1062_v35  ;;  %v4128_v35 = vld [vmem:[%s4718_s22 + $0x50] sm:$0xff] }
 0x1eb   : > { %v997_v37 = vpop.f32.mrf.mxu2 }
 0x1ec   : > { %1092 = vmatpush.bf16.xpose.msra.mxu3 %v1083_v36  ;;  %v1081_v38 = vpack.c.bf16 %v997_v37, %v997_v37  ;;  %v1239_v43 = vpop.f32.mrf.mxu1  ;;  %v4127_v36 = vld [vmem:[%s4718_s22 + $0x48] sm:$0xff]  ;;  %v4126_v37 = vld [vmem:[%s4718_s22 + $0x40] sm:$0xff] }
 0x1ee   : > { %v1141_v39 = vsel %vm1060_vm8, %v1081_v38, 0  ;;  %v4141_v38 = vld [vmem:[%s4708_s27 + $0xb8] sm:$0xff] }
 0x1ef   : > { %1150 = vmatpush.bf16.msrb.mxu0 %v1141_v39  ;;  %v4140_v39 = vld [vmem:[%s4708_s27 + $0xb0] sm:$0xff] }
 0x1f3   : > { %v1319_v40 = vpop.f32.mrf.mxu2 }
 0x1f4   : > { %v1403_v41 = vpack.c.bf16 %v1319_v40, %v1319_v40  ;;  %v1241_v49 = vpop.f32.mrf.mxu1  ;;  %v4139_v40 = vld [vmem:[%s4708_s27 + $0xa8] sm:$0xff] }
 0x1f5   : > { %v4834_v50 = vpack.c.bf16 %v1241_v49, %v1239_v43  ;;  %v4135_v43 = vld [vmem:[%s4708_s27 + $0x88] sm:$0xff] }
 0x1f6   : > { %v1409_v42 = vsel %vm1002_vm7, %v1403_v41, 0  ;;  %v4137_v41 = vld [vmem:[%s4708_s27 + $0x98] sm:$0xff] }
 0x1f7   : > { %1418 = vmatpush.bf16.xpose.msra.mxu0 %v1409_v42  ;;  %v4136_v42 = vld [vmem:[%s4708_s27 + $0x90] sm:$0xff] }
 0x1fb   : > { %v1321_v44 = vpop.f32.mrf.mxu2 }
 0x1fc   : > { %v1478_v45 = vpack.c.bf16 %v1321_v44, %v1321_v44  ;;  %v4134_v44 = vld [vmem:[%s4708_s27 + $0x80] sm:$0xff] }
 0x1fe   : > { %v1481_v47 = vsel %vm1002_vm7, %v1478_v45, 0 }
 0x1ff   : > { %1490 = vmatpush.bf16.xpose.msra.mxu1 %v1481_v47 }
 0x206   : > { %3522 = vmatmul.msk.bf16.vlgmr.msra.gmra.mxu1 %vm1002_vm7, %v4834_v50 }
 0x207   : > { %1784 = vmatpush.bf16.msrb.mxu1 %v4157_v46 }
 0x20b   : > { %1785 = vmatpush.bf16.msrb.mxu1 %v4156_v48 }
 0x20f   : > { %1786 = vmatpush.bf16.msrb.mxu1 %v4155_v51 }
 0x213   : > { %1787 = vmatpush.bf16.msrb.mxu1 %v4154_v52 }
 0x217   : > { %1788 = vmatpush.bf16.msrb.mxu1 %v4153_v53 }
 0x21b   : > { %1789 = vmatpush.bf16.msrb.mxu1 %v4152_v54 }
 0x21f   : > { %1790 = vmatpush.bf16.msrb.mxu1 %v4151_v55 }
 0x223   : > { %1791 = vmatpush.bf16.msrb.mxu1 %v4150_v56 }
 0x226   : > { %1792 = vmatmul.bf16.vlgmr.msrb.gmra.mxu1 %v4815_v26 }
 0x227   : > { %2020 = vmatpush.bf16.msra.mxu1 %v4165_v57 }
 0x22b   : > { %2021 = vmatpush.bf16.msra.mxu1 %v4164_v58 }
 0x22f   : > { %2022 = vmatpush.bf16.msra.mxu1 %v4163_v59 }
 0x233   : > { %2023 = vmatpush.bf16.msra.mxu1 %v4162_v60 }
 0x237   : > { %2024 = vmatpush.bf16.msra.mxu1 %v4161_v61 }
 0x23b   : > { %2025 = vmatpush.bf16.msra.mxu1 %v4160_v62 }
 0x23f   : > { %2026 = vmatpush.bf16.msra.mxu1 %v4159_v63 }
 0x243   : > { %2027 = vmatpush.bf16.msra.mxu1 %v4158_v0 }
 0x246   : > { %2028 = vmatmul.bf16.vlgmr.msra.gmra.mxu1 %v4815_v26 }
 0x26a   : > { %v1018_v8 = vpop.f32.mrf.mxu3 }
 0x26b   : > { %v1025_v9 = vsel %vm1023_vm11, %v1018_v8, -1e+30 }
 0x26c   : > { %v1028_v10 = vsel %vm1027_vm9, %v1025_v9, -inf }
 0x26d   : > { %1029 = vmax.xlane.f32.xlu2 %v1028_v10 }
 0x272   : > { %v1020_v11 = vpop.f32.mrf.mxu3 }
 0x273   : > { %v1026_v12 = vsel %vm1024_vm12, %v1020_v11, -1e+30 }
 0x274   : > { %v1031_v13 = vsel %vm1027_vm9, %v1026_v12, -inf }
 0x275   : > { %1032 = vmax.xlane.f32.xlu2 %v1031_v13 }
 0x283   : > { %v1492_v15 = vpop.f32.mrf.mxu1 }
 0x2e0   : > { %v1030_v18 = vpop.xlane.xlu2 %1029 }
 0x2e1   : > { %v4882_v19 = vmax.f32 %v1030_v18, %v1106_v16  ;;  %v1040_v22 = vsub.f32 %v1025_v9, %v1030_v18  ;;  %v1034_v45 = vsub.f32 -inf, %v1030_v18 }
 0x2e3   : > { %v1112_v20 = vsub.f32 %v1030_v18, %v4882_v19  ;;  %v1042_v23 = vmul.f32 1.442695, %v1040_v22  ;;  %v1036_v46 = vmul.f32 1.442695, %v1034_v45  ;;  %v1118_v3 = vsub.f32 -1e+30, %v4882_v19 }
 0x2e4   : > { %v4145_v45 = vld [vmem:[%s4713_s30 + $0x98] sm:$0xff] }
 0x2e5   : > { %4337 = vpow2.f32 %v1042_v23  ;;  %v1114_v47 = vmul.f32 1.442695, %v1112_v20  ;;  %v1120_v10 = vmul.f32 1.442695, %v1118_v3 }
 0x2e8   : > { %v4885_v24 = vpop.xlane.xlu2 %1032 }
 0x2e9   : > { %v1041_v25 = vsub.f32 %v1026_v12, %v4885_v24  ;;  %v1035_v0 = vsub.f32 -inf, %v4885_v24 }
 0x2eb   : > { %v1044_v17 = vmul.f32 1.442695, %v1041_v25  ;;  %v4888_v27 = vpop.eup %4337  ;;  %v1038_v1 = vmul.f32 1.442695, %v1035_v0 }
 0x2ed   : > { %4339 = vpow2.f32 %v1044_v17 }
 0x2ee   : > { %4341 = vpow2.f32 %v1036_v46  ;;  %v4144_v46 = vld [vmem:[%s4713_s30 + $0x90] sm:$0xff] }
 0x2ef   : > { %4343 = vpow2.f32 %v1114_v47  ;;  %v4143_v47 = vld [vmem:[%s4713_s30 + $0x88] sm:$0xff] }
 0x2f0   : > { %4345 = vpow2.f32 %v1038_v1 }
 0x2f1   : > { %4347 = vpow2.f32 %v1120_v10 }
 0x2f3   : > { %v4890_v28 = vpop.eup %4339 }
 0x2f4   : > { %v1056_v29 = vpack.c.bf16 %v4890_v28, %v4888_v27  ;;  %v4342_v48 = vpop.eup %4341 }
 0x2f5   : > { %v4915_v49 = vmul.f32 0.0, %v4342_v48  ;;  %v4918_v53 = vpop.eup %4343  ;;  %v4142_v48 = vld [vmem:[%s4713_s30 + $0x80] sm:$0xff] }
 0x2f6   : > { %3373 = vmatmul.msk.bf16.vlgmr.msrb.gmra.mxu3 %vm1027_vm9, %v1056_v29  ;;  %v4346_v16 = vpop.eup %4345  ;;  %v4149_v29 = vld [vmem:[%s4713_s30 + $0xb8] sm:$0xff] }
 0x2f7   : > { %1389 = vmatpush.bf16.msrb.mxu3 %v4133_v21  ;;  %v4931_v18 = vmul.f32 0.0, %v4346_v16  ;;  %v4933_v20 = vpop.eup %4347 }
 0x2f8   : > { %v1126_v6 = vsel %vm1027_vm9, %v4933_v20, 0.0 }
 0x2fb   : > { %1390 = vmatpush.bf16.msrb.mxu3 %v4132_v30  ;;  %v4148_v30 = vld [vmem:[%s4713_s30 + $0xb0] sm:$0xff] }
 0x2ff   : > { %1391 = vmatpush.bf16.msrb.mxu3 %v4131_v31 }
 0x303   : > { %1392 = vmatpush.bf16.msrb.mxu3 %v4130_v32 }
 0x306   : > { %3374 = vmatmul.msk.bf16.vlgmr.msra.gmra.mxu3 %vm1002_vm7, %v4823_v33  ;;  %v4138_v33 = vld [vmem:[%s4708_s27 + $0xa0] sm:$0xff] }
 0x307   : > { %1393 = vmatpush.bf16.msrb.mxu3 %v4129_v34 }
 0x30b   : > { %1394 = vmatpush.bf16.msrb.mxu3 %v4128_v35 }
 0x30f   : > { %1395 = vmatpush.bf16.msrb.mxu3 %v4127_v36 }
 0x313   : > { %1396 = vmatpush.bf16.msrb.mxu3 %v4126_v37 }
 0x316   : > { %1397 = vmatmul.bf16.vlgmr.msrb.gmra.mxu3 %v4815_v26 }
 0x317   : > { %1625 = vmatpush.bf16.msra.mxu3 %v4141_v38  ;;  %v1494_v38 = vpop.f32.mrf.mxu1 }
 0x31b   : > { %1626 = vmatpush.bf16.msra.mxu3 %v4140_v39  ;;  %v1498_v39 = vsel %vm1101_vm10, %v1494_v38, -1e+30 }
 0x31f   : > { %1627 = vmatpush.bf16.msra.mxu3 %v4139_v40 }
 0x323   : > { %1628 = vmatpush.bf16.msra.mxu3 %v4138_v33 }
 0x327   : > { %1629 = vmatpush.bf16.msra.mxu3 %v4137_v41  ;;  %v1502_v41 = vsel %vm1027_vm9, %v1498_v39, -inf }
 0x32b   : > { %1630 = vmatpush.bf16.msra.mxu3 %v4136_v42 }
 0x32f   : > { %1631 = vmatpush.bf16.msra.mxu3 %v4135_v43  ;;  %v4147_v43 = vld [vmem:[%s4713_s30 + $0xa8] sm:$0xff] }
 0x333   : > { %1632 = vmatpush.bf16.msra.mxu3 %v4134_v44  ;;  %v4146_v44 = vld [vmem:[%s4713_s30 + $0xa0] sm:$0xff] }
 0x336   : > { %1633 = vmatmul.bf16.vlgmr.msra.gmra.mxu3 %v4815_v26 }
 0x379   : > { %v1073_v51 = vpop.f32.mrf.mxu3 }
 0x37a   : > { %v1078_v52 = vadd.f32 %v1073_v51, %v4915_v49 }
 0x37c   : > { %v1134_v54 = vmul.f32 %v4918_v53, %v1078_v52 }
 0x381   : > { %v1075_v55 = vpop.f32.mrf.mxu3 }
 0x382   : > { %v1079_v19 = vadd.f32 %v1075_v55, %v4931_v18 }
 0x389   : > { %v1094_v56 = vpop.f32.mrf.mxu3 }
 0x391   : > { %v1096_v57 = vpop.f32.mrf.mxu3 }
 0x392   : > { %v1103_v58 = vsel %vm1101_vm10, %v1096_v57, -1e+30  ;;  %v1793_v57 = vpop.f32.mrf.mxu1 }
 0x393   : > { %v1107_v59 = vsel %vm1027_vm9, %v1103_v58, -inf }
 0x394   : > { %1108 = vmax.xlane.f32.xlu1 %v1107_v59 }
 0x399   : > { %v1398_v60 = vpop.f32.mrf.mxu3 }
 0x39a   : > { %v1404_v23 = vpack.c.bf16 %v1398_v60, %v1398_v60 }
 0x39c   : > { %1500 = vmax.xlane.f32.xlu1 %v4855_v2  ;;  %v1460_v21 = vsel %vm1060_vm8, %v1404_v23, 0 }
 0x3a1   : > { %v1400_v61 = vpop.f32.mrf.mxu3 }
 0x3a2   : > { %v1479_v62 = vpack.c.bf16 %v1400_v61, %v1400_v61 }
 0x3a4   : > { %v1536_v63 = vsel %vm1060_vm8, %v1479_v62, 0 }
 0x3a5   : > { %1545 = vmatpush.bf16.msra.mxu2 %v1536_v63 }
 0x407   : > { %v1109_v8 = vpop.xlane.xlu1 %1108 }
 0x408   : > { %v1111_v9 = vmax.f32 %v4885_v24, %v1109_v8 }
 0x40a   : > { %v1113_v11 = vsub.f32 %v4885_v24, %v1111_v9  ;;  %v1119_v12 = vsub.f32 %v1103_v58, %v1111_v9  ;;  %v1795_v9 = vpop.f32.mrf.mxu1 }
 0x40c   : > { %v1116_v13 = vmul.f32 1.442695, %v1113_v11  ;;  %v1122_v15 = vmul.f32 1.442695, %v1119_v12  ;;  %v1874_v11 = vpack.c.bf16 %v1795_v9, %v1795_v9  ;;  %v4175_v9 = vld [vmem:[%s4718_s22 + $0xc8] sm:$0xff] }
 0x40e   : > { %4349 = vpow2.f32 %v1116_v13 }
 0x40f   : > { %4351 = vpow2.f32 %v1122_v15  ;;  %v1501_v51 = vpop.xlane.xlu1 %1500 }
 0x414   : > { %v4936_v22 = vpop.eup %4349 }
 0x415   : > { %v4938_v25 = vpop.eup %4351  ;;  %v1135_v24 = vmul.f32 %v4936_v22, %v1079_v19  ;;  %v1931_v19 = vsel %vm1060_vm8, %v1874_v11, 0  ;;  %v4174_v11 = vld [vmem:[%s4718_s22 + $0xc0] sm:$0xff] }
 0x416   : > { %v1136_v17 = vpack.c.bf16 %v4938_v25, %v4933_v20 }
 0x418   : > { %3375 = vmatmul.msk.bf16.vlgmr.msrb.gmra.mxu0 %vm1027_vm9, %v1136_v17 }
 0x419   : > { %1469 = vmatpush.bf16.msrb.mxu0 %v1460_v21 }
 0x428   : > { %3520 = vmatmul.msk.bf16.vlgmr.msra.gmra.mxu0 %vm1002_vm7, %v4834_v50 }
 0x429   : > { %1705 = vmatpush.bf16.msra.mxu0 %v4149_v29 }
 0x42d   : > { %1706 = vmatpush.bf16.msra.mxu0 %v4148_v30 }
 0x431   : > { %1707 = vmatpush.bf16.msra.mxu0 %v4147_v43 }
 0x435   : > { %1708 = vmatpush.bf16.msra.mxu0 %v4146_v44 }
 0x439   : > { %1709 = vmatpush.bf16.msra.mxu0 %v4145_v45 }
 0x43d   : > { %1710 = vmatpush.bf16.msra.mxu0 %v4144_v46 }
 0x441   : > { %1711 = vmatpush.bf16.msra.mxu0 %v4143_v47 }
 0x445   : > { %1712 = vmatpush.bf16.msra.mxu0 %v4142_v48  ;;  %v1634_v48 = vpop.f32.mrf.mxu3 }
 0x495   : > { %v1152_v31 = vpop.f32.mrf.mxu0 }
 0x496   : > { %v4949_v32 = vadd.f32 %v1152_v31, %v1134_v54 }
 0x49d   : > { %v1154_v34 = vpop.f32.mrf.mxu0 }
 0x49e   : > { %v4951_v35 = vadd.f32 %v1154_v34, %v1135_v24 }
 0x4a5   : > { %v1420_v36 = vpop.f32.mrf.mxu0 }
 0x4a6   : > { %v1425_v37 = vsel %vm1023_vm11, %v1420_v36, -1e+30 }
 0x4a7   : > { %v1427_v50 = vsel %vm1027_vm9, %v1425_v37, -inf }
 0x4a8   : > { %1428 = vmax.xlane.f32.xlu2 %v1427_v50 }
 0x4ad   : > { %v1422_v40 = vpop.f32.mrf.mxu0 }
 0x4ae   : > { %v1426_v33 = vsel %vm1024_vm12, %v1422_v40, -1e+30 }
 0x4af   : > { %v1430_v42 = vsel %vm1027_vm9, %v1426_v33, -inf }
 0x4b0   : > { %1503 = vmax.xlane.f32.xlu2 %v1502_v41  ;;  %1431 = vmax.xlane.f32.xlu0 %v1430_v42 }
 0x4b8   : > { %1895 = vmax.xlane.f32.xlu2 %v4855_v2 }
 0x51b   : > { %v1429_v52 = vpop.xlane.xlu2 %1428 }
 0x51c   : > { %v1505_v54 = vmax.f32 %v1429_v52, %v1501_v51  ;;  %v1439_v56 = vsub.f32 %v1425_v37, %v1429_v52  ;;  %v1433_v24 = vsub.f32 -inf, %v1429_v52  ;;  %v1799_v51 = vpack.c.bf16 %v1793_v57, %v1793_v57 }
 0x51e   : > { %v1507_v55 = vsub.f32 %v1429_v52, %v1505_v54  ;;  %v1513_v58 = vsub.f32 -1e+30, %v1505_v54  ;;  %v1441_v59 = vmul.f32 1.442695, %v1439_v56  ;;  %v1435_v17 = vmul.f32 1.442695, %v1433_v24 }
 0x51f   : > { %v1855_v56 = vsel %vm1060_vm8, %v1799_v51, 0  ;;  %v4166_v51 = vld [vmem:[%s4713_s30 + $0xc0] sm:$0xff] }
 0x520   : > { %v1515_v0 = vmul.f32 1.442695, %v1513_v58  ;;  %4353 = vpow2.f32 %v1441_v59  ;;  %v1509_v29 = vmul.f32 1.442695, %v1507_v55  ;;  %v1636_v58 = vpop.f32.mrf.mxu3 }
 0x523   : > { %v1504_v60 = vpop.xlane.xlu2 %1503  ;;  %v1432_v61 = vpop.xlane.xlu0 %1431 }
 0x524   : > { %v1440_v62 = vsub.f32 %v1426_v33, %v1432_v61  ;;  %v1506_v63 = vmax.f32 %v1432_v61, %v1504_v60  ;;  %v1434_v21 = vsub.f32 -inf, %v1432_v61  ;;  %v1639_v60 = vpack.c.bf16 %v1636_v58, %v1634_v48  ;;  %v4167_v48 = vld [vmem:[%s4713_s30 + $0xc8] sm:$0xff] }
 0x526   : > { %v1443_v1 = vmul.f32 1.442695, %v1440_v62  ;;  %v1514_v3 = vsub.f32 %v1498_v39, %v1506_v63  ;;  %v4972_v10 = vpop.eup %4353  ;;  %v1437_v30 = vmul.f32 1.442695, %v1434_v21  ;;  %v1508_v34 = vsub.f32 %v1432_v61, %v1506_v63  ;;  %v4181_v62 = vld [vmem:[%s4718_s22 + $0xf8] sm:$0xff]  ;;  %v4180_v63 = vld [vmem:[%s4718_s22 + $0xf0] sm:$0xff] }
 0x528   : > { %4355 = vpow2.f32 %v1443_v1  ;;  %v1517_v8 = vmul.f32 1.442695, %v1514_v3  ;;  %v1511_v37 = vmul.f32 1.442695, %v1508_v34  ;;  %v4178_v1 = vld [vmem:[%s4718_s22 + $0xe0] sm:$0xff]  ;;  %v4177_v3 = vld [vmem:[%s4718_s22 + $0xd8] sm:$0xff] }
 0x529   : > { %4357 = vpow2.f32 %v1515_v0  ;;  %v4179_v0 = vld [vmem:[%s4718_s22 + $0xe8] sm:$0xff]  ;;  %v4172_v34 = vld [vmem:[%s4713_s30 + $0xf0] sm:$0xff] }
 0x52a   : > { %4359 = vpow2.f32 %v1517_v8  ;;  %v4176_v8 = vld [vmem:[%s4718_s22 + $0xd0] sm:$0xff] }
 0x52b   : > { %4361 = vpow2.f32 %v1435_v17 }
 0x52c   : > { %4363 = vpow2.f32 %v1509_v29 }
 0x52d   : > { %4365 = vpow2.f32 %v1437_v30 }
 0x52e   : > { %v4974_v12 = vpop.eup %4355  ;;  %4367 = vpow2.f32 %v1511_v37 }
 0x52f   : > { %v1455_v13 = vpack.c.bf16 %v4974_v12, %v4972_v10  ;;  %v4978_v15 = vpop.eup %4357  ;;  %v1450_v5 = vsel %vm1027_vm9, %v4974_v12, 0.0 }
 0x530   : > { %v4980_v16 = vpop.eup %4359  ;;  %v1521_v7 = vsel %vm1027_vm9, %v4978_v15, 0.0 }
 0x531   : > { %3521 = vmatmul.msk.bf16.vlgmr.msrb.gmra.mxu0 %vm1027_vm9, %v1455_v13  ;;  %v1531_v23 = vpack.c.bf16 %v4980_v16, %v4978_v15  ;;  %v4362_v31 = vpop.eup %4361 }
 0x532   : > { %1940 = vmatpush.bf16.msrb.mxu0 %v1931_v19  ;;  %v4988_v36 = vmul.f32 0.0, %v4362_v31  ;;  %v4991_v39 = vpop.eup %4363  ;;  %v4173_v31 = vld [vmem:[%s4713_s30 + $0xf8] sm:$0xff] }
 0x533   : > { %3523 = vmatmul.msk.bf16.vlgmr.msra.gmra.mxu2 %vm1027_vm9, %v1531_v23  ;;  %v4366_v33 = vpop.eup %4365 }
 0x534   : > { %v4994_v41 = vmul.f32 0.0, %v4366_v33  ;;  %v4997_v45 = vpop.eup %4367  ;;  %v4171_v33 = vld [vmem:[%s4713_s30 + $0xe8] sm:$0xff] }
 0x541   : > { %1713 = vmatmul.bf16.vlgmr.msra.gmra.mxu0 %v4815_v26 }
 0x5ae   : > { %v1471_v50 = vpop.f32.mrf.mxu0 }
 0x5af   : > { %v1476_v38 = vadd.f32 %v1471_v50, %v4988_v36 }
 0x5b1   : > { %v1529_v40 = vmul.f32 %v4991_v39, %v1476_v38 }
 0x5b6   : > { %v1473_v42 = vpop.f32.mrf.mxu0  ;;  %v1547_v44 = vpop.f32.mrf.mxu2 }
 0x5b7   : > { %v1477_v43 = vadd.f32 %v1473_v42, %v4994_v41  ;;  %v4999_v46 = vadd.f32 %v1547_v44, %v1529_v40  ;;  %v1051_v40 = vsel %vm1027_vm9, %v4890_v28, 0.0  ;;  %v4170_v42 = vld [vmem:[%s4713_s30 + $0xe0] sm:$0xff]  ;;  %v4168_v44 = vld [vmem:[%s4713_s30 + $0xd0] sm:$0xff] }
 0x5b9   : > { %v5002_v47 = vmul.f32 %v4997_v45, %v1477_v43  ;;  %v4169_v43 = vld [vmem:[%s4713_s30 + $0xd8] sm:$0xff]  ;;  %s5391_s30 = sld [smem:[#allocation14_spill]] }
 0x5be   : > { %v1714_v52 = vpop.f32.mrf.mxu0  ;;  %v5018_v13 = vpop.f32.mrf.mxu2 }
 0x5bf   : > { %v1798_v54 = vpack.c.bf16 %v1714_v52, %v1714_v52  ;;  %v1896_v52 = vpop.xlane.xlu2 %1895 }
 0x5c1   : > { %v1804_v55 = vsel %vm1002_vm7, %v1798_v54, 0 }
 0x5c2   : > { %1813 = vmatpush.bf16.xpose.msrb.mxu2 %v1804_v55 }
 0x5c6   : > { %v1716_v59 = vpop.f32.mrf.mxu0 }
 0x5c7   : > { %v1873_v61 = vpack.c.bf16 %v1716_v59, %v1716_v59 }
 0x5c9   : > { %v1876_v57 = vsel %vm1002_vm7, %v1873_v61, 0  ;;  %3668 = vmatmul.msk.bf16.vlgmr.msrb.gmra.mxu2 %vm1002_vm7, %v1639_v60 }
 0x5ca   : > { %1864 = vmatpush.bf16.msra.mxu2 %v1855_v56  ;;  %1885 = vmatpush.bf16.xpose.msrb.mxu3 %v1876_v57 }
 0x5ce   : > { %2100 = vmatpush.bf16.msrb.mxu2 %v4173_v31 }
 0x5d1   : > { %3670 = vmatmul.msk.bf16.vlgmr.msrb.gmra.mxu3 %vm1002_vm7, %v1639_v60 }
 0x5d2   : > { %2179 = vmatpush.bf16.msra.mxu3 %v4181_v62  ;;  %2101 = vmatpush.bf16.msrb.mxu2 %v4172_v34 }
 0x5d6   : > { %2180 = vmatpush.bf16.msra.mxu3 %v4180_v63  ;;  %2102 = vmatpush.bf16.msrb.mxu2 %v4171_v33 }
 0x5da   : > { %2181 = vmatpush.bf16.msra.mxu3 %v4179_v0  ;;  %2103 = vmatpush.bf16.msrb.mxu2 %v4170_v42 }
 0x5de   : > { %2182 = vmatpush.bf16.msra.mxu3 %v4178_v1  ;;  %2104 = vmatpush.bf16.msrb.mxu2 %v4169_v43 }
 0x5e2   : > { %2183 = vmatpush.bf16.msra.mxu3 %v4177_v3  ;;  %2105 = vmatpush.bf16.msrb.mxu2 %v4168_v44 }
 0x5e6   : > { %2184 = vmatpush.bf16.msra.mxu3 %v4176_v8  ;;  %2106 = vmatpush.bf16.msrb.mxu2 %v4167_v48 }
 0x5ea   : > { %2185 = vmatpush.bf16.msra.mxu3 %v4175_v9  ;;  %2107 = vmatpush.bf16.msrb.mxu2 %v4166_v51 }
 0x5ee   : > { %2186 = vmatpush.bf16.msra.mxu3 %v4174_v11 }
 0x5f1   : > { %2187 = vmatmul.bf16.vlgmr.msra.gmra.mxu3 %v4815_v26 }
 0x64c   : > { %v1815_v19 = vpop.f32.mrf.mxu2 }
 0x64d   : > { %v1820_v23 = vsel %vm1023_vm11, %v1815_v19, -1e+30 }
 0x64e   : > { %v1822_v24 = vsel %vm1027_vm9, %v1820_v23, -inf }
 0x64f   : > { %1823 = vmax.xlane.f32.xlu0 %v1822_v24 }
 0x654   : > { %v1817_v17 = vpop.f32.mrf.mxu2  ;;  %v1887_v21 = vpop.f32.mrf.mxu3 }
 0x655   : > { %v1821_v29 = vsel %vm1024_vm12, %v1817_v17, -1e+30 }
 0x656   : > { %v1825_v30 = vsel %vm1027_vm9, %v1821_v29, -inf }
 0x657   : > { %1826 = vmax.xlane.f32.xlu1 %v1825_v30 }
 0x65c   : > { %v1889_v37 = vpop.f32.mrf.mxu3 }
 0x65d   : > { %v1893_v50 = vsel %vm1101_vm10, %v1889_v37, -1e+30 }
 0x65e   : > { %v1897_v38 = vsel %vm1027_vm9, %v1893_v50, -inf }
 0x65f   : > { %1898 = vmax.xlane.f32.xlu0 %v1897_v38 }
 0x667   : > { %2290 = vmax.xlane.f32.xlu0 %v4855_v2 }
 0x66f   : > { %1052 = vadd.xlane.f32.xlu0 %v1051_v40 }
 0x674   : > { %v5043_v28 = vpop.f32.mrf.mxu3 }
 0x67c   : > { %v2190_v63 = vpop.f32.mrf.mxu3 }
 0x67d   : > { %v2269_v8 = vpack.c.bf16 %v2190_v63, %v2190_v63 }
 0x67f   : > { %v2326_v21 = vsel %vm1060_vm8, %v2269_v8, 0 }
 0x6c2   : > { %v1824_v54 = vpop.xlane.xlu0 %1823 }
 0x6c3   : > { %v1834_v55 = vsub.f32 %v1820_v23, %v1824_v54  ;;  %v1900_v2 = vmax.f32 %v1824_v54, %v1896_v52  ;;  %v1129_v23 = vsel %vm1027_vm9, %v4938_v25, 0.0  ;;  %v1828_v34 = vsub.f32 -inf, %v1824_v54 }
 0x6c5   : > { %v1836_v56 = vmul.f32 1.442695, %v1834_v55  ;;  %v1902_v58 = vsub.f32 %v1824_v54, %v1900_v2  ;;  %v1908_v0 = vsub.f32 -1e+30, %v1900_v2  ;;  %v1830_v37 = vmul.f32 1.442695, %v1828_v34 }
 0x6c7   : > { %4369 = vpow2.f32 %v1836_v56  ;;  %v1910_v11 = vmul.f32 1.442695, %v1908_v0 }
 0x6ca   : > { %v1827_v59 = vpop.xlane.xlu1 %1826 }
 0x6cb   : > { %v1835_v60 = vsub.f32 %v1821_v29, %v1827_v59  ;;  %v1829_v54 = vsub.f32 -inf, %v1827_v59 }
 0x6cd   : > { %v4370_v61 = vpop.eup %4369  ;;  %v1838_v62 = vmul.f32 1.442695, %v1835_v60 }
 0x6ce   : > { %v1842_v57 = vsel %vm1027_vm9, %v4370_v61, 0.0 }
 0x6cf   : > { %4371 = vpow2.f32 %v1838_v62  ;;  %1843 = vadd.xlane.f32.xlu0 %v1842_v57 }
 0x6d0   : > { %4373 = vpow2.f32 %v1910_v11 }
 0x6d2   : > { %v1899_v1 = vpop.xlane.xlu0 %1898 }
 0x6d3   : > { %v1901_v3 = vmax.f32 %v1827_v59, %v1899_v1 }
 0x6d5   : > { %v5046_v9 = vpop.eup %4371  ;;  %v1909_v19 = vsub.f32 %v1893_v50, %v1901_v3  ;;  %v1904_v50 = vmul.f32 1.442695, %v1902_v58  ;;  %v1832_v58 = vmul.f32 1.442695, %v1829_v54  ;;  %v1903_v60 = vsub.f32 %v1827_v59, %v1901_v3  ;;  %v2029_v59 = vpop.f32.mrf.mxu1 }
 0x6d6   : > { %v1850_v24 = vpack.c.bf16 %v5046_v9, %v4370_v61  ;;  %v5053_v29 = vpop.eup %4373  ;;  %v2194_v3 = vpack.c.bf16 %v5043_v28, %v5043_v28  ;;  %v1048_v54 = vsel %vm1027_vm9, %v4888_v27, 0.0  ;;  %v1524_v27 = vsel %vm1027_vm9, %v4980_v16, 0.0 }
 0x6d7   : > { %v1912_v17 = vmul.f32 1.442695, %v1909_v19  ;;  %1130 = vadd.xlane.f32.xlu0 %v1129_v23  ;;  %v1906_v61 = vmul.f32 1.442695, %v1903_v60 }
 0x6d8   : > { %3669 = vmatmul.msk.bf16.vlgmr.msra.gmra.mxu2 %vm1027_vm9, %v1850_v24 }
 0x6d9   : > { %2335 = vmatpush.bf16.msra.mxu2 %v2326_v21  ;;  %4375 = vpow2.f32 %v1912_v17  ;;  %v2250_v21 = vsel %vm1060_vm8, %v2194_v3, 0 }
 0x6da   : > { %v5061_v25 = vpop.xlane.xlu0 %2290  ;;  %4377 = vpow2.f32 %v1830_v37 }
 0x6db   : > { %4379 = vpow2.f32 %v1904_v50 }
 0x6df   : > { %v5055_v30 = vpop.eup %4375 }
 0x6e0   : > { %v1926_v31 = vpack.c.bf16 %v5055_v30, %v5053_v29  ;;  %v4378_v40 = vpop.eup %4377 }
 0x6e1   : > { %v1840_v33 = vmul.f32 0.0, %v4378_v40  ;;  %v4380_v44 = vpop.eup %4379 }
 0x6e2   : > { %3671 = vmatmul.msk.bf16.vlgmr.msrb.gmra.mxu0 %vm1027_vm9, %v1926_v31  ;;  %v1053_v38 = vpop.xlane.xlu0 %1052  ;;  %v2031_v31 = vpop.f32.mrf.mxu1 }
 0x6e3   : > { %v1055_v48 = vadd.f32 %v1053_v38, %v4931_v18  ;;  %v2034_v37 = vpack.c.bf16 %v2031_v31, %v2029_v59 }
 0x6e5   : > { %v1125_v52 = vmul.f32 %v4936_v22, %v1055_v48 }
 0x6e8   : > { %2108 = vmatmul.bf16.vlgmr.msrb.gmra.mxu2 %v4815_v26 }
 0x742   : > { %v1844_v42 = vpop.xlane.xlu0 %1843 }
 0x743   : > { %v1848_v43 = vadd.f32 %v1844_v42, %v1840_v33 }
 0x745   : > { %v5064_v51 = vmul.f32 %v4380_v44, %v1848_v43 }
 0x74a   : > { %v1131_v26 = vpop.xlane.xlu0 %1130 }
 0x74b   : > { %v1133_v55 = vadd.f32 %v1131_v26, %v1125_v52 }
 0x74d   : > { %4381 = vrcp.f32 %v1133_v55 }
 0x74e   : > { %4383 = vpow2.f32 %v1832_v58  ;;  %v1845_v58 = vsel %vm1027_vm9, %v5046_v9, 0.0 }
 0x74f   : > { %4385 = vpow2.f32 %v1906_v61 }
 0x753   : > { %v4382_v2 = vpop.eup %4381 }
 0x754   : > { %v5068_v56 = vmul.f32 %v4382_v2, %v4951_v35  ;;  %v4384_v18 = vpop.eup %4383  ;;  %v1447_v2 = vsel %vm1027_vm9, %v4972_v10, 0.0  ;;  %v1916_v10 = vsel %vm1027_vm9, %v5053_v29, 0.0 }
 0x755   : > { %v5072_v22 = vmul.f32 0.0, %v4384_v18  ;;  %v5075_v19 = vpop.eup %4385 }
 0x75b   : > { %v1866_v62 = vpop.f32.mrf.mxu2 }
 0x75c   : > { %v1871_v57 = vadd.f32 %v1866_v62, %v1840_v33 }
 0x75e   : > { %v1924_v63 = vmul.f32 %v4380_v44, %v1871_v57 }
 0x75f   : > { %v1942_v0 = vpop.f32.mrf.mxu0 }
 0x760   : > { %v5070_v1 = vadd.f32 %v1942_v0, %v1924_v63 }
 0x763   : > { %v1868_v8 = vpop.f32.mrf.mxu2 }
 0x764   : > { %v1872_v11 = vadd.f32 %v1868_v8, %v5072_v22 }
 0x766   : > { %v5078_v35 = vmul.f32 %v5075_v19, %v1872_v11 }
 0x767   : > { %v5087_v28 = vpop.f32.mrf.mxu0 }
 0x76b   : > { %v2109_v23 = vpop.f32.mrf.mxu2 }
 0x76c   : > { %v2193_v24 = vpack.c.bf16 %v2109_v23, %v2109_v23 }
 0x76e   : > { %v2199_v17 = vsel %vm1002_vm7, %v2193_v24, 0 }
 0x76f   : > { %2208 = vmatpush.bf16.xpose.msra.mxu0 %v2199_v17 }
 0x773   : > { %v2111_v34 = vpop.f32.mrf.mxu2 }
 0x774   : > { %v2268_v50 = vpack.c.bf16 %v2111_v34, %v2111_v34 }
 0x776   : > { %v2271_v38 = vsel %vm1002_vm7, %v2268_v50, 0  ;;  %3816 = vmatmul.msk.bf16.vlgmr.msra.gmra.mxu0 %vm1002_vm7, %v2034_v37 }
 0x777   : > { %2259 = vmatpush.bf16.msrb.mxu0 %v2250_v21  ;;  %2280 = vmatpush.bf16.xpose.msrb.mxu1 %v2271_v38  ;;  %v1919_v21 = vsel %vm1027_vm9, %v5055_v30, 0.0 }
 0x77e   : > { %3818 = vmatmul.msk.bf16.vlgmr.msrb.gmra.mxu1 %vm1002_vm7, %v2034_v37 }
 0x7f3   : > { %v2210_v40 = vpop.f32.mrf.mxu0 }
 0x7f4   : > { %v2215_v33 = vsel %vm1023_vm11, %v2210_v40, -1e+30 }
 0x7f5   : > { %v2217_v42 = vsel %vm1027_vm9, %v2215_v33, -inf }
 0x7f6   : > { %2218 = vmax.xlane.f32.xlu1 %v2217_v42 }
 0x7fb   : > { %v2212_v43 = vpop.f32.mrf.mxu0  ;;  %v2282_v44 = vpop.f32.mrf.mxu1 }
 0x7fc   : > { %v2216_v48 = vsel %vm1024_vm12, %v2212_v43, -1e+30 }
 0x7fd   : > { %v2220_v52 = vsel %vm1027_vm9, %v2216_v48, -inf }
 0x7fe   : > { %2221 = vmax.xlane.f32.xlu2 %v2220_v52 }
 0x803   : > { %v2284_v26 = vpop.f32.mrf.mxu1 }
 0x804   : > { %v2288_v55 = vsel %vm1101_vm10, %v2284_v26, -1e+30 }
 0x805   : > { %v2292_v4 = vsel %vm1027_vm9, %v2288_v55, -inf }
 0x806   : > { %2293 = vmax.xlane.f32.xlu1 %v2292_v4  ;;  %1049 = vadd.xlane.f32.xlu2 %v1048_v54 }
 0x80e   : > { %1448 = vadd.xlane.f32.xlu1 %v1447_v2  ;;  %1451 = vadd.xlane.f32.xlu2 %v1450_v5 }
 0x816   : > { %1846 = vadd.xlane.f32.xlu1 %v1845_v58  ;;  %1127 = vadd.xlane.f32.xlu2 %v1126_v6  ;;  %v1553_v6 = vadd.f32 %v5018_v13, %v5002_v47 }
 0x81e   : > { %1522 = vadd.xlane.f32.xlu1 %v1521_v7  ;;  %1525 = vadd.xlane.f32.xlu2 %v1524_v27 }
 0x826   : > { %1917 = vadd.xlane.f32.xlu2 %v1916_v10 }
 0x869   : > { %v5117_v12 = vpop.xlane.xlu1 %2218 }
 0x86a   : > { %v2229_v9 = vsub.f32 %v2215_v33, %v5117_v12  ;;  %v5122_v20 = vmax.f32 %v5117_v12, %v5061_v25 }
 0x86c   : > { %v2231_v60 = vmul.f32 1.442695, %v2229_v9  ;;  %v2297_v15 = vsub.f32 %v5117_v12, %v5122_v20  ;;  %v2303_v29 = vsub.f32 -1e+30, %v5122_v20 }
 0x86e   : > { %4387 = vpow2.f32 %v2231_v60  ;;  %v2305_v18 = vmul.f32 1.442695, %v2303_v29  ;;  %v2299_v13 = vmul.f32 1.442695, %v2297_v15 }
 0x871   : > { %v5126_v16 = vpop.xlane.xlu2 %2221 }
 0x872   : > { %v2230_v61 = vsub.f32 %v2216_v48, %v5126_v16  ;;  %v2224_v47 = vsub.f32 -inf, %v5126_v16 }
 0x874   : > { %v4388_v62 = vpop.eup %4387  ;;  %v2233_v57 = vmul.f32 1.442695, %v2230_v61 }
 0x875   : > { %v2237_v63 = vsel %vm1027_vm9, %v4388_v62, 0.0 }
 0x876   : > { %4389 = vpow2.f32 %v2233_v57  ;;  %2238 = vadd.xlane.f32.xlu0 %v2237_v63 }
 0x877   : > { %4391 = vpow2.f32 %v2305_v18 }
 0x879   : > { %v2294_v25 = vpop.xlane.xlu1 %2293  ;;  %v1050_v0 = vpop.xlane.xlu2 %1049 }
 0x87a   : > { %v5132_v8 = vmax.f32 %v5126_v16, %v2294_v25  ;;  %v1054_v11 = vadd.f32 %v1050_v0, %v4915_v49 }
 0x87c   : > { %v4390_v59 = vpop.eup %4389  ;;  %v2298_v3 = vsub.f32 %v5126_v16, %v5132_v8  ;;  %v2304_v23 = vsub.f32 %v2288_v55, %v5132_v8  ;;  %v1124_v24 = vmul.f32 %v4918_v53, %v1054_v11 }
 0x87d   : > { %v2240_v17 = vsel %vm1027_vm9, %v4390_v59, 0.0  ;;  %v2245_v31 = vpack.c.bf16 %v4390_v59, %v4388_v62  ;;  %v4392_v50 = vpop.eup %4391  ;;  %v2223_v62 = vsub.f32 -inf, %v5117_v12 }
 0x87e   : > { %v2307_v34 = vmul.f32 1.442695, %v2304_v23  ;;  %2241 = vadd.xlane.f32.xlu1 %v2240_v17  ;;  %1920 = vadd.xlane.f32.xlu0 %v1919_v21  ;;  %v2311_v53 = vsel %vm1027_vm9, %v4392_v50, 0.0 }
 0x87f   : > { %3817 = vmatmul.msk.bf16.vlgmr.msrb.gmra.mxu0 %vm1027_vm9, %v2245_v31  ;;  %v2225_v29 = vmul.f32 1.442695, %v2223_v62  ;;  %v3942_v62 = vld [vmem:[%s4731_s0 + $0xe8] sm:$0xf] }
 0x880   : > { %4393 = vpow2.f32 %v2307_v34 }
 0x881   : > { %v1449_v49 = vpop.xlane.xlu1 %1448  ;;  %v1452_v37 = vpop.xlane.xlu2 %1451 }
 0x882   : > { %v1453_v38 = vadd.f32 %v1449_v49, %v4988_v36  ;;  %v1454_v52 = vadd.f32 %v1452_v37, %v4994_v41 }
 0x884   : > { %v1519_v40 = vmul.f32 %v4991_v39, %v1453_v38  ;;  %v1520_v36 = vmul.f32 %v4997_v45, %v1454_v52 }
 0x886   : > { %2312 = vadd.xlane.f32.xlu1 %v2311_v53  ;;  %v4394_v33 = vpop.eup %4393 }
 0x887   : > { %v2314_v30 = vsel %vm1027_vm9, %v4394_v33, 0.0  ;;  %v2321_v42 = vpack.c.bf16 %v4394_v33, %v4392_v50 }
 0x888   : > { %2315 = vadd.xlane.f32.xlu2 %v2314_v30 }
 0x889   : > { %v1847_v43 = vpop.xlane.xlu1 %1846  ;;  %v1128_v44 = vpop.xlane.xlu2 %1127  ;;  %3819 = vmatmul.msk.bf16.vlgmr.msra.gmra.mxu2 %vm1027_vm9, %v2321_v42 }
 0x88a   : > { %v1132_v48 = vadd.f32 %v1128_v44, %v1124_v24  ;;  %v1849_v25 = vadd.f32 %v1847_v43, %v5072_v22 }
 0x88c   : > { %4395 = vrcp.f32 %v1132_v48  ;;  %v1915_v16 = vmul.f32 %v5075_v19, %v1849_v25  ;;  %v3872_v25 = vld [vmem:[%s4731_s0 + $0xd0] sm:$0xf0] }
 0x891   : > { %v1523_v26 = vpop.xlane.xlu1 %1522  ;;  %v1526_v39 = vpop.xlane.xlu2 %1525 }
 0x892   : > { %v4396_v55 = vpop.eup %4395  ;;  %v1527_v4 = vadd.f32 %v1523_v26, %v1519_v40  ;;  %v1528_v54 = vadd.f32 %v1526_v39, %v1520_v36 }
 0x893   : > { %v1161_v2 = vmul.f32 %v4396_v55, %v4949_v32 }
 0x894   : > { %4397 = vrcp.f32 %v1527_v4  ;;  %v4422_v4 = vld [vmem:[#allocation2 + $0x8] sm:$0xff] }
 0x895   : > { %4399 = vrcp.f32 %v1528_v54 }
 0x899   : > { %v1918_v5 = vpop.xlane.xlu2 %1917 }
 0x89a   : > { %v4398_v58 = vpop.eup %4397  ;;  %v1922_v7 = vadd.f32 %v1918_v5, %v5064_v51 }
 0x89b   : > { %v4400_v41 = vpop.eup %4399  ;;  %v1556_v27 = vmul.f32 %v4398_v58, %v4999_v46  ;;  %v2227_v46 = vmul.f32 1.442695, %v2224_v47 }
 0x89c   : > { %v1557_v45 = vmul.f32 %v4400_v41, %v1553_v6  ;;  %4401 = vrcp.f32 %v1922_v7 }
 0x89d   : > { %v1558_v10 = vadd.f32 %v1556_v27, %v1161_v2  ;;  %4403 = vpow2.f32 %v2225_v29  ;;  %v4229_v29 = vld [vmem:[%s4731_s0 + $0xf4] sm:$0xf0] }
 0x89e   : > { %v1559_v9 = vadd.f32 %v1557_v45, %v5068_v56  ;;  %4405 = vpow2.f32 %v2299_v13  ;;  %v2301_v56 = vmul.f32 1.442695, %v2298_v3  ;;  %v1948_v3 = vadd.f32 %v5087_v28, %v5078_v35  ;;  %v4421_v28 = vld [vmem:[#allocation2] sm:$0xff] }
 0x89f   : > { %4407 = vpow2.f32 %v2227_v46  ;;  %v3943_v13 = vor.u32 %v4229_v29, %v3942_v62  ;;  %v4228_v46 = vld [vmem:[%s4731_s0 + $0xec] sm:$0xf]  ;;  %v3840_v62 = vld [vmem:[%s4731_s0 + $0x50] sm:$0xf0]  ;;  %v3902_v29 = vld [vmem:[%s4731_s0 + $0x48] sm:$0xf] }
 0x8a0   : > { %4409 = vpow2.f32 %v2301_v56  ;;  %v3870_v56 = vld [vmem:[%s4731_s0 + $0xc0] sm:$0xf] }
 0x8a1   : > { %2674 = vmatpush.bf16.msra.mxu1 %v3943_v13 }
 0x8a2   : > { %v4402_v60 = vpop.eup %4401 }
 0x8a3   : > { %v1951_v32 = vmul.f32 %v4402_v60, %v5070_v1  ;;  %v4404_v51 = vpop.eup %4403  ;;  %v4196_v60 = vld [vmem:[%s4731_s0 + $0xe4] sm:$0xf] }
 0x8a4   : > { %v2235_v57 = vmul.f32 0.0, %v4404_v51  ;;  %v4406_v1 = vpop.eup %4405  ;;  %v3944_v51 = vld [vmem:[%s4731_s0 + $0xf8] sm:$0xf0] }
 0x8a5   : > { %v1953_v61 = vadd.f32 %v1951_v32, %v1558_v10  ;;  %v4408_v8 = vpop.eup %4407  ;;  %v3878_v10 = vld [vmem:[%s4731_s0 + $0xe0] sm:$0xf] }
 0x8a6   : > { %v2236_v11 = vmul.f32 0.0, %v4408_v8  ;;  %v4410_v23 = vpop.eup %4409  ;;  %v4227_v8 = vld [vmem:[%s4731_s0 + $0xd4] sm:$0xf0] }
 0x8e9   : > { %v2239_v63 = vpop.xlane.xlu0 %2238 }
 0x8ea   : > { %v2243_v18 = vadd.f32 %v2239_v63, %v2235_v57  ;;  %v4195_v63 = vld [vmem:[%s4731_s0 + $0xcc] sm:$0xf0] }
 0x8ec   : > { %v2309_v0 = vmul.f32 %v4406_v1, %v2243_v18  ;;  %v4194_v18 = vld [vmem:[%s4731_s0 + $0xc4] sm:$0xf] }
 0x8f1   : > { %v2242_v59 = vpop.xlane.xlu1 %2241  ;;  %v1921_v12 = vpop.xlane.xlu0 %1920 }
 0x8f2   : > { %v2244_v20 = vadd.f32 %v2242_v59, %v2236_v11  ;;  %v1923_v15 = vadd.f32 %v1921_v12, %v1915_v16  ;;  %v4226_v59 = vld [vmem:[%s4731_s0 + $0xcc] sm:$0xf]  ;;  %v3936_v12 = vld [vmem:[%s4731_s0 + $0xd8] sm:$0xf0] }
 0x8f4   : > { %4411 = vrcp.f32 %v1923_v15  ;;  %v2310_v24 = vmul.f32 %v4410_v23, %v2244_v20  ;;  %v3939_v20 = vor.u32 %v4226_v59, %v3936_v12  ;;  %v3862_v15 = vld [vmem:[%s4731_s0 + $0xa0] sm:$0xf]  ;;  %v4216_v12 = vld [vmem:[%s4731_s0 + $0x2c] sm:$0xf] }
 0x8f9   : > { %v2313_v37 = vpop.xlane.xlu1 %2312 }
 0x8fa   : > { %v4412_v17 = vpop.eup %4411  ;;  %v2317_v38 = vadd.f32 %v2313_v37, %v2309_v0  ;;  %v3934_v0 = vld [vmem:[%s4731_s0 + $0xc8] sm:$0xf]  ;;  %v3928_v37 = vld [vmem:[%s4731_s0 + $0xb8] sm:$0xf0] }
 0x8fb   : > { %v1952_v21 = vmul.f32 %v4412_v17, %v1948_v3  ;;  %v2316_v53 = vpop.xlane.xlu2 %2315  ;;  %v3935_v16 = vor.u32 %v4227_v8, %v3934_v0  ;;  %v3864_v17 = vld [vmem:[%s4731_s0 + $0xb0] sm:$0xf0]  ;;  %v3894_v8 = vld [vmem:[%s4731_s0 + $0x28] sm:$0xf] }
 0x8fc   : > { %v2261_v31 = vpop.f32.mrf.mxu0  ;;  %4413 = vrcp.f32 %v2317_v38  ;;  %v2318_v33 = vadd.f32 %v2316_v53, %v2310_v24  ;;  %v4192_v24 = vld [vmem:[%s4731_s0 + $0xa4] sm:$0xf]  ;;  %v3854_v38 = vld [vmem:[%s4731_s0 + $0x80] sm:$0xf]  ;;  %v3832_v0 = vld [vmem:[%s4731_s0 + $0x30] sm:$0xf0] }
 0x8fd   : > { %v2266_v22 = vadd.f32 %v2261_v31, %v2235_v57  ;;  %v1954_v34 = vadd.f32 %v1952_v21, %v1559_v9  ;;  %v4197_v9 = vld [vmem:[%s4731_s0 + $0xec] sm:$0xf0]  ;;  %v3947_v57 = vor.u32 %v4228_v46, %v3944_v51  ;;  %2675 = vmatpush.bf16.msra.mxu1 %v3935_v16  ;;  %v3926_v21 = vld [vmem:[%s4731_s0 + $0xa8] sm:$0xf]  ;;  %v4225_v31 = vld [vmem:[%s4731_s0 + $0xb4] sm:$0xf0] }
 0x8fe   : > { %4415 = vrcp.f32 %v2318_v33  ;;  %v3879_v32 = vor.u32 %v4197_v9, %v3878_v10  ;;  %v3856_v33 = vld [vmem:[%s4731_s0 + $0x90] sm:$0xf0]  ;;  %v3838_v9 = vld [vmem:[%s4731_s0 + $0x40] sm:$0xf]  ;;  %v4218_v51 = vld [vmem:[%s4731_s0 + $0x4c] sm:$0xf] }
 0x8ff   : > { %v2319_v49 = vmul.f32 %v4406_v1, %v2266_v22  ;;  %2688 = vmatpush.bf16.msrb.mxu2 %v3947_v57  ;;  %v3871_v1 = vor.u32 %v4195_v63, %v3870_v56  ;;  %v3867_v22 = vor.u32 %v4192_v24, %v3864_v17  ;;  %v3904_v57 = vld [vmem:[%s4731_s0 + $0x58] sm:$0xf0]  ;;  %v3830_v63 = vld [vmem:[%s4731_s0 + $0x20] sm:$0xf]  ;;  %v4182_v17 = vld [vmem:[%s4731_s0 + $0x4] sm:$0xf] }
 0x900   : > { %2507 = vmatpush.bf16.msrb.mxu3 %v3879_v32  ;;  %v4186_v32 = vld [vmem:[%s4731_s0 + $0x44] sm:$0xf]  ;;  %v3907_v56 = vor.u32 %v4218_v51, %v3904_v57  ;;  %v4328_v57 = vld [vmem:[%s5392_s25] ss:$0 sm:$0xff] }
 0x901   : > { %v3843_v13 = vor.u32 %v4186_v32, %v3840_v62 }
 0x902   : > { %v4414_v43 = vpop.eup %4413 }
 0x903   : > { %2689 = vmatpush.bf16.msrb.mxu2 %v3939_v20  ;;  %v3896_v20 = vld [vmem:[%s4731_s0 + $0x38] sm:$0xf0] }
 0x904   : > { %v2263_v50 = vpop.f32.mrf.mxu0  ;;  %v4416_v26 = vpop.eup %4415  ;;  %2508 = vmatpush.bf16.msrb.mxu3 %v3871_v1  ;;  %v4184_v1 = vld [vmem:[%s4731_s0 + $0x24] sm:$0xf]  ;;  %v3899_v24 = vor.u32 %v4216_v12, %v3896_v20  ;;  %v4232_v20 = vld [vmem:[%s5391_s30 + $0x90] sm:$0xff] }
 0x905   : > { %v2267_v19 = vadd.f32 %v2263_v50, %v2236_v11  ;;  %v3875_v11 = vor.u32 %v4194_v18, %v3872_v25  ;;  %v4185_v18 = vld [vmem:[%s4731_s0 + $0x2c] sm:$0xf0]  ;;  %v3835_v16 = vor.u32 %v4184_v1, %v3832_v0  ;;  %v4202_v12 = vld [vmem:[%s5391_s30 + $0x20] sm:$0xff] }
 0x906   : > { %v3831_v25 = vor.u32 %v4185_v18, %v3830_v63 }
 0x907   : > { %v2320_v40 = vmul.f32 %v4410_v23, %v2267_v19  ;;  %v4193_v23 = vld [vmem:[%s4731_s0 + $0xac] sm:$0xf0] }
 0x908   : > { %v3863_v3 = vor.u32 %v4193_v23, %v3862_v15  ;;  %v4191_v19 = vld [vmem:[%s4731_s0 + $0x8c] sm:$0xf0]  ;;  %v3822_v15 = vld [vmem:[%s4731_s0] sm:$0xf] }
 0x909   : > { %v3855_v53 = vor.u32 %v4191_v19, %v3854_v38  ;;  %v3888_v19 = vld [vmem:[%s4731_s0 + $0x18] sm:$0xf0] }
 0x90a   : > { %2509 = vmatpush.bf16.msrb.mxu3 %v3863_v3  ;;  %v4183_v3 = vld [vmem:[%s4731_s0 + $0xc] sm:$0xf0] }
 0x90c   : > { %v2337_v30 = vpop.f32.mrf.mxu2 }
 0x90d   : > { %v2342_v42 = vadd.f32 %v2337_v30, %v2319_v49  ;;  %v4224_v49 = vld [vmem:[%s4731_s0 + $0xac] sm:$0xf]  ;;  %v3918_v30 = vld [vmem:[%s4731_s0 + $0x88] sm:$0xf] }
 0x90e   : > { %v3931_v50 = vor.u32 %v4224_v49, %v3928_v37  ;;  %2510 = vmatpush.bf16.msrb.mxu3 %v3855_v53  ;;  %v3886_v49 = vld [vmem:[%s4731_s0 + $0x8] sm:$0xf]  ;;  %v4215_v37 = vld [vmem:[%s4731_s0 + $0x14] sm:$0xf0] }
 0x90f   : > { %v2346_v44 = vmul.f32 %v4414_v43, %v2342_v42  ;;  %v4223_v42 = vld [vmem:[%s4731_s0 + $0x94] sm:$0xf0]  ;;  %v3887_v38 = vor.u32 %v4215_v37, %v3886_v49  ;;  %v4239_v49 = vld [vmem:[%s5391_s30 + $0xc8] sm:$0xff] }
 0x910   : > { %2690 = vmatpush.bf16.msrb.mxu2 %v3931_v50  ;;  %v4214_v50 = vld [vmem:[%s4731_s0 + $0xc] sm:$0xf] }
 0x911   : > { %v2348_v35 = vadd.f32 %v2346_v44, %v1953_v61  ;;  %v3880_v61 = vld [vmem:[%s4731_s0 + $0xf0] sm:$0xf0]  ;;  %v3919_v44 = vor.u32 %v4223_v42, %v3918_v30  ;;  %v3891_v53 = vor.u32 %v4214_v50, %v3888_v19  ;;  %v4237_v30 = vld [vmem:[%s5391_s30 + $0xb8] sm:$0xff]  ;;  %v4199_v37 = vld [vmem:[%s5391_s30 + $0x8] sm:$0xff] }
 0x912   : > { %v3883_v47 = vor.u32 %v4196_v60, %v3880_v61  ;;  %v4187_v60 = vld [vmem:[%s4731_s0 + $0x4c] sm:$0xf0]  ;;  %v4213_v42 = vld [vmem:[%s5391_s30 + $0x78] sm:$0xff]  ;;  %v4238_v50 = vld [vmem:[%s5391_s30 + $0xc0] sm:$0xff] }
 0x913   : > { %v5166_v48 = vadd.f32 %v4421_v28, %v2348_v35  ;;  %v4222_v35 = vld [vmem:[%s4731_s0 + $0x8c] sm:$0xf]  ;;  %v3920_v28 = vld [vmem:[%s4731_s0 + $0x98] sm:$0xf0]  ;;  %v3839_v61 = vor.u32 %v4187_v60, %v3838_v9  ;;  %v4234_v9 = vld [vmem:[%s5391_s30 + $0xa0] sm:$0xff] }
 0x914   : > { %v2339_v52 = vpop.f32.mrf.mxu2  ;;  %2521 = vmatpush.bf16.msra.mxu0 %v3883_v47  ;;  %v4219_v47 = vld [vmem:[%s4731_s0 + $0x54] sm:$0xf0]  ;;  %v4210_v60 = vld [vmem:[%s5391_s30 + $0x60] sm:$0xff] }
 0x915   : > { %v2343_v36 = vadd.f32 %v2339_v52, %v2320_v40  ;;  %2354 = vadd.xlane.f32.xlu0 %v5166_v48  ;;  %v4190_v40 = vld [vmem:[%s4731_s0 + $0x84] sm:$0xf]  ;;  %v3923_v52 = vor.u32 %v4222_v35, %v3920_v28  ;;  %v3903_v46 = vor.u32 %v4219_v47, %v3902_v29  ;;  %v4205_v35 = vld [vmem:[%s5391_s30 + $0x38] sm:$0xff]  ;;  %v4236_v28 = vld [vmem:[%s5391_s30 + $0xb0] sm:$0xff] }
 0x916   : > { %v3859_v43 = vor.u32 %v4190_v40, %v3856_v33  ;;  %v2405_v19 = vld [vmem:[%s4741_s14] sm:$0xf] }
 0x917   : > { %v2347_v39 = vmul.f32 %v4416_v26, %v2343_v36  ;;  %v3846_v36 = vld [vmem:[%s4731_s0 + $0x60] sm:$0xf]  ;;  %v4189_v26 = vld [vmem:[%s4731_s0 + $0x6c] sm:$0xf0]  ;;  %2691 = vmatpush.bf16.msrb.mxu2 %v3923_v52 }
 0x918   : > { %2522 = vmatpush.bf16.msra.mxu0 %v3875_v11  ;;  %v4217_v11 = vld [vmem:[%s4731_s0 + $0x34] sm:$0xf0]  ;;  %v4212_v52 = vld [vmem:[%s5391_s30 + $0x70] sm:$0xff] }
 0x919   : > { %v2349_v55 = vadd.f32 %v2347_v39, %v1954_v34  ;;  %v3927_v34 = vor.u32 %v4225_v31, %v3926_v21  ;;  %v4188_v39 = vld [vmem:[%s4731_s0 + $0x64] sm:$0xf]  ;;  %v3895_v59 = vor.u32 %v4217_v11, %v3894_v8  ;;  %v3824_v21 = vld [vmem:[%s4731_s0 + $0x10] sm:$0xf0] }
 0x91b   : > { %v5169_v54 = vadd.f32 %v4422_v4, %v2349_v55  ;;  %2676 = vmatpush.bf16.msra.mxu1 %v3927_v34  ;;  %v3847_v55 = vor.u32 %v4189_v26, %v3846_v36  ;;  %v3848_v4 = vld [vmem:[%s4731_s0 + $0x70] sm:$0xf0]  ;;  %v3827_v34 = vor.u32 %v4182_v17, %v3824_v21  ;;  %v4207_v17 = vld [vmem:[%s5391_s30 + $0x48] sm:$0xff] }
 0x91c   : > { %2523 = vmatpush.bf16.msra.mxu0 %v3867_v22  ;;  %v3823_v22 = vor.u32 %v4183_v3, %v3822_v15  ;;  %v4208_v15 = vld [vmem:[%s5391_s30 + $0x50] sm:$0xff]  ;;  %v4231_v3 = vld [vmem:[%s5391_s30 + $0x88] sm:$0xff] }
 0x91d   : > { %2356 = vadd.xlane.f32.xlu1 %v5169_v54  ;;  %2511 = vmatpush.bf16.msrb.mxu3 %v3847_v55  ;;  %v4204_v55 = vld [vmem:[%s5391_s30 + $0x30] sm:$0xff] }
 0x91e   : > { %v4240_v21 = vld [vmem:[%s5391_s30 + $0xd0] sm:$0xff] }
 0x91f   : > { %2677 = vmatpush.bf16.msra.mxu1 %v3919_v44  ;;  %v4245_v44 = vld [vmem:[%s5391_s30 + $0xf8] sm:$0xff] }
 0x920   : > { %2524 = vmatpush.bf16.msra.mxu0 %v3859_v43 }
 0x921   : > { %2512 = vmatpush.bf16.msrb.mxu3 %v3839_v61 }
 0x925   : > { %2513 = vmatpush.bf16.msrb.mxu3 %v3831_v25 }
 0x929   : > { %2514 = vmatpush.bf16.msrb.mxu3 %v3823_v22  ;;  %v4230_v22 = vld [vmem:[%s5391_s30 + $0x80] sm:$0xff] }
 0x92d   : > { %2836 = vmatpush.bf16.msra.mxu3 %v4237_v30  ;;  %v2424_v30 = vperm.slane %v2405_v19, 1 }
 0x931   : > { %2837 = vmatpush.bf16.msra.mxu3 %v4236_v28 }
 0x988   : > { %v2355_v2 = vpop.xlane.xlu0 %2354 }
 0x989   : > { %v2358_v5 = vmul.f32 %v2355_v2, %v4753_v14  ;;  %v3910_v2 = vld [vmem:[%s4731_s0 + $0x68] sm:$0xf] }
 0x98b   : > { %v5174_v58 = vsub.f32 %v5166_v48, %v2358_v5  ;;  %v4221_v5 = vld [vmem:[%s4731_s0 + $0x74] sm:$0xf0] }
 0x98d   : > { %v2362_v6 = vmul.f32 %v5174_v58, %v5174_v58 }
 0x98f   : > { %2364 = vadd.xlane.f32.xlu2 %v2362_v6  ;;  %v3851_v6 = vor.u32 %v4188_v39, %v3848_v4  ;;  %v4244_v39 = vld [vmem:[%s5391_s30 + $0xf0] sm:$0xff] }
 0x990   : > { %v2357_v7 = vpop.xlane.xlu1 %2356 }
 0x991   : > { %v2359_v41 = vmul.f32 %v2357_v7, %v4753_v14  ;;  %v3911_v7 = vor.u32 %v4221_v5, %v3910_v2  ;;  %2525 = vmatpush.bf16.msra.mxu0 %v3851_v6  ;;  %v4235_v5 = vld [vmem:[%s5391_s30 + $0xa8] sm:$0xff] }
 0x992   : > { %v4211_v6 = vld [vmem:[%s5391_s30 + $0x68] sm:$0xff]  ;;  %2838 = vmatpush.bf16.msra.mxu3 %v4235_v5 }
 0x993   : > { %v5180_v27 = vsub.f32 %v5169_v54, %v2359_v41  ;;  %v4220_v41 = vld [vmem:[%s4731_s0 + $0x6c] sm:$0xf]  ;;  %2678 = vmatpush.bf16.msra.mxu1 %v3911_v7 }
 0x994   : > { %v4243_v7 = vld [vmem:[%s5391_s30 + $0xe8] sm:$0xff] }
 0x995   : > { %v2363_v45 = vmul.f32 %v5180_v27, %v5180_v27  ;;  %2526 = vmatpush.bf16.msra.mxu0 %v3843_v13 }
 0x996   : > { %2839 = vmatpush.bf16.msra.mxu3 %v4234_v9 }
 0x997   : > { %2366 = vadd.xlane.f32.xlu0 %v2363_v45  ;;  %v3912_v45 = vld [vmem:[%s4731_s0 + $0x78] sm:$0xf0]  ;;  %2679 = vmatpush.bf16.msra.mxu1 %v3903_v46 }
 0x998   : > { %v3915_v10 = vor.u32 %v4220_v41, %v3912_v45  ;;  %v4203_v41 = vld [vmem:[%s5391_s30 + $0x28] sm:$0xff] }
 0x999   : > { %2527 = vmatpush.bf16.msra.mxu0 %v3835_v16  ;;  %v4209_v16 = vld [vmem:[%s5391_s30 + $0x58] sm:$0xff] }
 0x99a   : > { %2692 = vmatpush.bf16.msrb.mxu2 %v3915_v10 }
 0x99b   : > { %2680 = vmatpush.bf16.msra.mxu1 %v3895_v59  ;;  %v4242_v59 = vld [vmem:[%s5391_s30 + $0xe0] sm:$0xff] }
 0x99d   : > { %2528 = vmatpush.bf16.msra.mxu0 %v3827_v34  ;;  %v4206_v34 = vld [vmem:[%s5391_s30 + $0x40] sm:$0xff] }
 0x99e   : > { %2693 = vmatpush.bf16.msrb.mxu2 %v3907_v56 }
 0x99f   : > { %2681 = vmatpush.bf16.msra.mxu1 %v3887_v38  ;;  %v4198_v38 = vld [vmem:[%s5391_s30] sm:$0xff] }
 0x9a1   : > { %2850 = vmatpush.bf16.msrb.mxu0 %v4245_v44 }
 0x9a2   : > { %2694 = vmatpush.bf16.msrb.mxu2 %v3899_v24  ;;  %v4201_v24 = vld [vmem:[%s5391_s30 + $0x18] sm:$0xff] }
 0x9a3   : > { %2960 = vmatpush.bf16.msrb.mxu1 %v4205_v35 }
 0x9a5   : > { %2851 = vmatpush.bf16.msrb.mxu0 %v4244_v39 }
 0x9a6   : > { %2695 = vmatpush.bf16.msrb.mxu2 %v3891_v53  ;;  %v2589_v53 = vrot.slane %v2405_v19, 2 }
 0x9a7   : > { %2961 = vmatpush.bf16.msrb.mxu1 %v4204_v55 }
 0x9a8   : > { %v2591_v55 = vperm.slane %v2589_v53, 1 }
 0x9a9   : > { %2852 = vmatpush.bf16.msrb.mxu0 %v4243_v7 }
 0x9aa   : > { %2974 = vmatpush.bf16.msra.mxu2 %v4213_v42  ;;  %v2590_v42 = vperm.slane %v2589_v53, 0 }
 0x9ab   : > { %2962 = vmatpush.bf16.msrb.mxu1 %v4203_v41 }
 0x9ad   : > { %2853 = vmatpush.bf16.msrb.mxu0 %v4242_v59 }
 0x9ae   : > { %2975 = vmatpush.bf16.msra.mxu2 %v4212_v52 }
 0x9af   : > { %2963 = vmatpush.bf16.msrb.mxu1 %v4202_v12 }
 0x9b2   : > { %2976 = vmatpush.bf16.msra.mxu2 %v4211_v6 }
 0x9b3   : > { %2964 = vmatpush.bf16.msrb.mxu1 %v4201_v24 }
 0x9b6   : > { %2977 = vmatpush.bf16.msra.mxu2 %v4210_v60 }
 0x9ba   : > { %2978 = vmatpush.bf16.msra.mxu2 %v4209_v16 }
 0x9be   : > { %2979 = vmatpush.bf16.msra.mxu2 %v4208_v15 }
 0x9c2   : > { %2980 = vmatpush.bf16.msra.mxu2 %v4207_v17 }
 0x9c6   : > { %2981 = vmatpush.bf16.msra.mxu2 %v4206_v34 }
 0xa02   : > { %v2365_v23 = vpop.xlane.xlu2 %2364 }
 0xa03   : > { %v2368_v31 = vmul.f32 %v2365_v23, %v4753_v14  ;;  %v4241_v23 = vld [vmem:[%s5391_s30 + $0xd8] sm:$0xff] }
 0xa04   : > { %2854 = vmatpush.bf16.msrb.mxu0 %v4241_v23 }
 0xa05   : > { %v2370_v40 = vadd.f32 1e-05, %v2368_v31  ;;  %v4200_v31 = vld [vmem:[%s5391_s30 + $0x10] sm:$0xff] }
 0xa06   : > { %2965 = vmatpush.bf16.msrb.mxu1 %v4200_v31 }
 0xa07   : > { %4417 = vrsqrt.f32 %v2370_v40  ;;  %vm2378_vm14 = vweird.f32 %v2370_v40 }
 0xa08   : > { %2855 = vmatpush.bf16.msrb.mxu0 %v4240_v21 }
 0xa0a   : > { %v2367_v33 = vpop.xlane.xlu0 %2366  ;;  %2966 = vmatpush.bf16.msrb.mxu1 %v4199_v37 }
 0xa0b   : > { %v2369_v43 = vmul.f32 %v2367_v33, %v4753_v14 }
 0xa0c   : > { %2856 = vmatpush.bf16.msrb.mxu0 %v4239_v49 }
 0xa0d   : > { %v4418_v36 = vpop.eup %4417  ;;  %v2371_v26 = vadd.f32 1e-05, %v2369_v43 }
 0xa0e   : > { %v2373_v4 = vmul.f32 %v4418_v36, %v2370_v40  ;;  %vm2379_vm13 = vweird.f32 %v4418_v36  ;;  %2967 = vmatpush.bf16.msrb.mxu1 %v4198_v38 }
 0xa0f   : > { %4419 = vrsqrt.f32 %v2371_v26  ;;  %vm2380_vm15 = vmor %vm2378_vm14, %vm2379_vm13  ;;  %vm2388_vm1 = vweird.f32 %v2371_v26 }
 0xa10   : > { %v2374_v2 = vmul.f32 %v4418_v36, %v2373_v4  ;;  %2857 = vmatpush.bf16.msrb.mxu0 %v4238_v50 }
 0xa12   : > { %v2375_v45 = vmul.f32 0.5, %v2374_v2 }
 0xa14   : > { %v2376_v10 = vsub.f32 1.5, %v2375_v45 }
 0xa15   : > { %v4420_v32 = vpop.eup %4419 }
 0xa16   : > { %v2377_v61 = vmul.f32 %v4418_v36, %v2376_v10  ;;  %v2383_v62 = vmul.f32 %v4420_v32, %v2371_v26  ;;  %vm2389_vm0 = vweird.f32 %v4420_v32 }
 0xa17   : > { %vm2390_vm2 = vmor %vm2388_vm1, %vm2389_vm0 }
 0xa18   : > { %v2384_v29 = vmul.f32 %v4420_v32, %v2383_v62  ;;  %v2381_v47 = vsel %vm2380_vm15, %v4418_v36, %v2377_v61  ;;  %v2423_v36 = vperm.slane %v2405_v19, 0 }
 0xa19   : > { %v2392_v51 = vmul.f32 %v2381_v47, %v5174_v58  ;;  %v4329_v58 = vld [vmem:[%s671_s10] ss:$0 sm:$0xff]  ;;  %s5394_s10 = sld [smem:[#allocation22_spill]] (!%p4076_p3) }
 0xa1a   : > { %v2385_v13 = vmul.f32 0.5, %v2384_v29 }
 0xa1b   : > { %v2397_v1 = vmul.f32 %v4328_v57, %v2392_v51 }
 0xa1c   : > { %v2386_v46 = vsub.f32 1.5, %v2385_v13 }
 0xa1d   : > { %v2402_v0 = vadd.f32 %v4329_v58, %v2397_v1 }
 0xa1e   : > { %v2387_v56 = vmul.f32 %v4420_v32, %v2386_v46 }
 0xa20   : > { %v2391_v63 = vsel %vm2390_vm2, %v4420_v32, %v2387_v56 }
 0xa21   : > { %v2393_v18 = vmul.f32 %v2391_v63, %v5180_v27  ;;  %v4233_v27 = vld [vmem:[%s5391_s30 + $0x98] sm:$0xff] }
 0xa22   : > { %2840 = vmatpush.bf16.msra.mxu3 %v4233_v27 }
 0xa23   : > { %v2398_v25 = vmul.f32 %v4328_v57, %v2393_v18 }
 0xa25   : > { %v2403_v8 = vadd.f32 %v4329_v58, %v2398_v25 }
 0xa26   : > { %2841 = vmatpush.bf16.msra.mxu3 %v4232_v20 }
 0xa27   : > { %v2404_v11 = vpack.c.bf16 %v2403_v8, %v2402_v0  ;;  %v4330_v8 = vld [vmem:[%s683_s11] ss:$0 sm:$0xff] }
 0xa29   : > { %2515 = vmatmul.bf16.vlgmr.msrb.gmra.mxu3 %v2404_v11  ;;  %2529 = vmatmul.bf16.vlgmr.msra.gmra.mxu0 %v2404_v11 }
 0xa2a   : > { %2682 = vmatmul.bf16.vlgmr.msra.gmra.mxu1 %v2404_v11  ;;  %2696 = vmatmul.bf16.vlgmr.msrb.gmra.mxu2 %v2404_v11 }
 0xa2b   : > { %2842 = vmatpush.bf16.msra.mxu3 %v4231_v3 }
 0xa2f   : > { %2843 = vmatpush.bf16.msra.mxu3 %v4230_v22 }
 0xaa6   : > { %v2530_v40 = vpop.f32.mrf.mxu0 }
 0xaa7   : > { %v2683_v33 = vpop.f32.mrf.mxu1  ;;  %v2531_v44 = vadd.f32 %v2530_v40, %v2424_v30 }
 0xaa8   : > { %v2684_v28 = vadd.f32 %v2683_v33, %v2590_v42 }
 0xaa9   : > { %v2536_v2 = vmax.f32 %v2531_v44, 0.0 }
 0xaaa   : > { %v2702_v6 = vmax.f32 %v2684_v28, 0.0 }
 0xaac   : > { %v2516_v43 = vpop.f32.mrf.mxu3 }
 0xaad   : > { %v2697_v35 = vpop.f32.mrf.mxu2  ;;  %v2517_v41 = vadd.f32 %v2516_v43, %v2423_v36 }
 0xaae   : > { %v2532_v52 = vpop.f32.mrf.mxu0  ;;  %v2698_v10 = vadd.f32 %v2697_v35, %v2591_v55 }
 0xaaf   : > { %v2533_v26 = vadd.f32 %v2532_v52, %v2424_v30  ;;  %v2685_v39 = vpop.f32.mrf.mxu1  ;;  %v2535_v29 = vmax.f32 %v2517_v41, 0.0 }
 0xab0   : > { %v2686_v4 = vadd.f32 %v2685_v39, %v2590_v42  ;;  %v2703_v13 = vmax.f32 %v2698_v10, 0.0 }
 0xab1   : > { %v2538_v5 = vmax.f32 %v2533_v26, 0.0 }
 0xab2   : > { %v2704_v7 = vmax.f32 %v2686_v4, 0.0 }
 0xab3   : > { %v2540_v45 = vpack.c.bf16 %v2538_v5, %v2536_v2 }
 0xab4   : > { %v2706_v9 = vpack.c.bf16 %v2704_v7, %v2702_v6  ;;  %v2518_v60 = vpop.f32.mrf.mxu3 }
 0xab5   : > { %v2519_v32 = vadd.f32 %v2518_v60, %v2423_v36  ;;  %v2699_v61 = vpop.f32.mrf.mxu2  ;;  %2982 = vmatmul.bf16.vlgmr.msra.gmra.mxu2 %v2540_v45 }
 0xab6   : > { %v2700_v62 = vadd.f32 %v2699_v61, %v2591_v55  ;;  %2844 = vmatmul.bf16.vlgmr.msra.gmra.mxu3 %v2706_v9 }
 0xab7   : > { %v2537_v47 = vmax.f32 %v2519_v32, 0.0 }
 0xab8   : > { %v2705_v46 = vmax.f32 %v2700_v62, 0.0 }
 0xab9   : > { %v2539_v51 = vpack.c.bf16 %v2537_v47, %v2535_v29 }
 0xaba   : > { %v2707_v57 = vpack.c.bf16 %v2705_v46, %v2703_v13 }
 0xabb   : > { %2968 = vmatmul.bf16.vlgmr.msrb.gmra.mxu1 %v2539_v51 }
 0xabc   : > { %2858 = vmatmul.bf16.vlgmr.msrb.gmra.mxu0 %v2707_v57 }
 0xb38   : > { %v2969_v56 = vpop.f32.mrf.mxu1  ;;  %v2983_v58 = vpop.f32.mrf.mxu2 }
 0xb39   : > { %v2845_v63 = vpop.f32.mrf.mxu3  ;;  %v2859_v18 = vpop.f32.mrf.mxu0 }
 0xb3a   : > { %v2860_v1 = vadd.f32 %v2859_v18, %v2845_v63 }
 0xb3c   : > { %v2970_v25 = vadd.f32 %v2969_v56, %v2860_v1 }
 0xb3e   : > { %v2984_v0 = vadd.f32 %v2983_v58, %v2970_v25 }
 0xb40   : > { %v2988_v11 = vadd.f32 %v2984_v0, %v5166_v48  ;;  %v2971_v20 = vpop.f32.mrf.mxu1  ;;  %v2985_v23 = vpop.f32.mrf.mxu2 }
 0xb41   : > { %v2847_v27 = vpop.f32.mrf.mxu3  ;;  %v2861_v16 = vpop.f32.mrf.mxu0 }
 0xb42   : > { %v2994_v59 = vadd.f32 %v4330_v8, %v2988_v11  ;;  %v2862_v12 = vadd.f32 %v2861_v16, %v2847_v27 }
 0xb44   : > { %2996 = vst [vmem:[#allocation2] sm:$0xff] %v2994_v59  ;;  %v2972_v15 = vadd.f32 %v2971_v20, %v2862_v12 }
 0xb46   : > { %v2986_v24 = vadd.f32 %v2985_v23, %v2972_v15 }
 0xb48   : > { %v2989_v3 = vadd.f32 %v2986_v24, %v5169_v54  ;;  %3001 = sbr.rel (%p4076_p3) target bundleno = 3170 (0xc62), region = 88 }
 0xb4a   : > { %v2995_v17 = vadd.f32 %v4330_v8, %v2989_v3 }
 0xb4c   : > { %2997 = vst [vmem:[#allocation2 + $0x8] sm:$0xff] %v2995_v17 }
 0xb4d   : > { %3004 = vadd.xlane.f32.xlu0 %v2994_v59  ;;  %v4423_v2 = vld [vmem:[%s5394_s10] ss:$0 sm:$0xff] }
 0xb4e   : > { %v4424_v41 = vld [vmem:[%s5395_s17] ss:$0 sm:$0xff] }
 0xb55   : > { %3006 = vadd.xlane.f32.xlu0 %v2995_v17 }
 0xbc0   : > { %v3005_v21 = vpop.xlane.xlu0 %3004 }
 0xbc1   : > { %v3008_v48 = vmul.f32 %v3005_v21, %v4753_v14 }
 0xbc3   : > { %v3010_v31 = vsub.f32 %v2994_v59, %v3008_v48 }
 0xbc5   : > { %v3012_v22 = vmul.f32 %v3010_v31, %v3010_v31 }
 0xbc7   : > { %3014 = vadd.xlane.f32.xlu1 %v3012_v22 }
 0xbc8   : > { %v3007_v34 = vpop.xlane.xlu0 %3006 }
 0xbc9   : > { %v3009_v49 = vmul.f32 %v3007_v34, %v4753_v14 }
 0xbcb   : > { %v3011_v37 = vsub.f32 %v2995_v17, %v3009_v49 }
 0xbcd   : > { %v3013_v50 = vmul.f32 %v3011_v37, %v3011_v37 }
 0xbcf   : > { %3016 = vadd.xlane.f32.xlu1 %v3013_v50 }
 0xc3a   : > { %v3015_v54 = vpop.xlane.xlu1 %3014 }
 0xc3b   : > { %v3018_v38 = vmul.f32 %v3015_v54, %v4753_v14 }
 0xc3d   : > { %v3020_v19 = vadd.f32 1e-05, %v3018_v38 }
 0xc3f   : > { %4425 = vrsqrt.f32 %v3020_v19  ;;  %vm3028_vm4 = vweird.f32 %v3020_v19 }
 0xc42   : > { %v3017_v40 = vpop.xlane.xlu1 %3016 }
 0xc43   : > { %v3019_v53 = vmul.f32 %v3017_v40, %v4753_v14 }
 0xc45   : > { %v4426_v33 = vpop.eup %4425  ;;  %v3021_v30 = vadd.f32 1e-05, %v3019_v53 }
 0xc46   : > { %v3023_v42 = vmul.f32 %v4426_v33, %v3020_v19  ;;  %vm3029_vm3 = vweird.f32 %v4426_v33 }
 0xc47   : > { %4427 = vrsqrt.f32 %v3021_v30  ;;  %vm3030_vm5 = vmor %vm3028_vm4, %vm3029_vm3  ;;  %vm3038_vm7 = vweird.f32 %v3021_v30 }
 0xc48   : > { %v3024_v43 = vmul.f32 %v4426_v33, %v3023_v42 }
 0xc4a   : > { %v3025_v44 = vmul.f32 0.5, %v3024_v43 }
 0xc4c   : > { %v3026_v35 = vsub.f32 1.5, %v3025_v44 }
 0xc4d   : > { %v4428_v28 = vpop.eup %4427 }
 0xc4e   : > { %v3027_v52 = vmul.f32 %v4426_v33, %v3026_v35  ;;  %v3033_v36 = vmul.f32 %v4428_v28, %v3021_v30  ;;  %vm3039_vm6 = vweird.f32 %v4428_v28 }
 0xc4f   : > { %vm3040_vm8 = vmor %vm3038_vm7, %vm3039_vm6 }
 0xc50   : > { %v3034_v26 = vmul.f32 %v4428_v28, %v3033_v36  ;;  %v3031_v39 = vsel %vm3030_vm5, %v4426_v33, %v3027_v52 }
 0xc51   : > { %v3042_v14 = vmul.f32 %v3031_v39, %v3010_v31 }
 0xc52   : > { %v3035_v55 = vmul.f32 0.5, %v3034_v26 }
 0xc53   : > { %v3047_v7 = vmul.f32 %v4423_v2, %v3042_v14 }
 0xc54   : > { %v3036_v4 = vsub.f32 1.5, %v3035_v55 }
 0xc55   : > { %v3052_v9 = vadd.f32 %v4424_v41, %v3047_v7 }
 0xc56   : > { %v3037_v5 = vmul.f32 %v4428_v28, %v3036_v4 }
 0xc58   : > { %v3041_v6 = vsel %vm3040_vm8, %v4428_v28, %v3037_v5 }
 0xc59   : > { %v3043_v45 = vmul.f32 %v3041_v6, %v3011_v37 }
 0xc5b   : > { %v3048_v10 = vmul.f32 %v4423_v2, %v3043_v45 }
 0xc5d   : > { %v3053_v60 = vadd.f32 %v4424_v41, %v3048_v10 }
 0xc5f   : > { %v4249_v32 = vpack.c.bf16 %v3053_v60, %v3052_v9 }
 0xc61   : > { %4250 = vst [vmem:[%s4746_s24] sm:$0xff] %v4249_v32  }
 0xc62 PF: > { %s5396_s11 = sld [smem:[#allocation10_spill]] }
 0xc63   : > { %s5397_s29 = sld [smem:[#allocation6_spill]] }
 0xc64   : > { %s5398_s30 = sld [smem:[#allocation7_spill]] }
 0xc65   : > { %s5399_s15 = sld [smem:[#allocation13_spill]] }
 0xc66   : > { %s5400_s16 = sld [smem:[#allocation8_spill]] }
 0xc67   : > { %s5401_s17 = sld [smem:[#allocation9_spill]] }
 0xc68   : > { %s27_s20 = sadd.s32 1, %s5396_s11   ;;  %s5402_s18 = sld [smem:[#allocation11_spill]] }
 0xc69   : > { %p24_p4 = scmp.ge.s32.totalorder %s27_s20, 6   ;;  %s5403_s19 = sld [smem:[#allocation12_spill]] }
 0xc6b   :  { %26 = sbr.rel (!%p24_p4) target bundleno = 16 (0x10), region = 166 }
 0xc70   :  { %3079 = vsyncpa [#allocation4], 1 }
 0xc71   :  { %3081 = vsyncpa [#allocation4 + $0x1], 1 }

</bundles_post_ra>
